<compile_context>
chip_gen: v5e
topology: v5e:2x2
jax: 0.10.0
libtpu: 0.0.40
codegen_flags: <defaults>
</compile_context>

<pallas_src>
import math
import functools

import jax
import jax.numpy as jnp
from jax import lax
from jax.experimental import pallas as pl
from jax.experimental.pallas import tpu as pltpu


def _mha_kernel(x_ref, mask_ref,
                wq_ref, bq_ref, wk_ref, bk_ref, wv_ref, bv_ref,
                wd_ref, bd_ref, gamma_ref, beta_ref,
                o_ref, *, n_heads, head_size, eps):
    x = x_ref[...]                                   # (S, H), kept in input dtype (MXU operand)
    xf = x.astype(jnp.float32)                       # f32 copy for residual / LayerNorm
    mask = mask_ref[...].astype(jnp.float32)         # (S, S) additive mask (broadcast over heads)

    # ---- Q / K / V projections: operands in input dtype, f32 accumulation ----
    q = jnp.dot(x, wq_ref[...], preferred_element_type=jnp.float32) + bq_ref[...]
    k = jnp.dot(x, wk_ref[...], preferred_element_type=jnp.float32) + bk_ref[...]
    v = jnp.dot(x, wv_ref[...], preferred_element_type=jnp.float32) + bv_ref[...]
    qc = q.astype(x.dtype)
    kc = k.astype(x.dtype)
    vc = v.astype(x.dtype)

    inv_sqrt_d = 1.0 / math.sqrt(head_size)
    dn = (((1,), (1,)), ((), ()))                    # contract last dims: Q_h @ K_h^T

    # The module's softmax_x normalizes over the HEAD axis (dim=1), so the
    # partition at each (q, k) position is the sum of exp(score) over heads.
    e_heads = []
    part = None
    for h in range(n_heads):
        sl = slice(h * head_size, (h + 1) * head_size)
        s_h = lax.dot_general(qc[:, sl], kc[:, sl], dn,
                              preferred_element_type=jnp.float32)    # (S, S)
        s_h = s_h * inv_sqrt_d + mask
        e_h = jnp.exp(s_h)
        e_heads.append(e_h)
        part = e_h if part is None else part + e_h

    inv_part = pl.reciprocal(part, approx=False)     # one exact 1/x reused by all heads

    # ---- context per head, concatenated back to (S, H) ----
    # TODO(synk): training-mode attn_dropout / out_dropout (random masking) omitted; eval semantics.
    ctx_parts = []
    for h in range(n_heads):
        sl = slice(h * head_size, (h + 1) * head_size)
        p_h = (e_heads[h] * inv_part).astype(x.dtype)
        ctx_parts.append(jnp.dot(p_h, vc[:, sl],
                                 preferred_element_type=jnp.float32))
    ctx = jnp.concatenate(ctx_parts, axis=-1).astype(x.dtype)        # (S, H)

    # ---- output projection + residual + LayerNorm (single-pass stats, biased var) ----
    hid = jnp.dot(ctx, wd_ref[...], preferred_element_type=jnp.float32) + bd_ref[...]
    y = hid + xf
    mean = jnp.mean(y, axis=-1, keepdims=True)
    mean_sq = jnp.mean(y * y, axis=-1, keepdims=True)
    var = mean_sq - mean * mean
    y = (y - mean) * lax.rsqrt(var + eps)
    y = y * gamma_ref[...] + beta_ref[...]
    o_ref[...] = y.astype(o_ref.dtype)


def mha_pallas(x, attention_mask, wq, bq, wk, bk, wv, bv, wd, bd, gamma, beta,
               *, n_heads, eps):
    """x: (B, S, H); attention_mask: additive, broadcastable to (B, 1, S, S).
    Weights are stored [in, out] (transposed vs. torch.nn.Linear)."""
    B, S, H = x.shape
    if H % n_heads != 0:
        raise ValueError(f"hidden size {H} not a multiple of n_heads {n_heads}")
    d = H // n_heads
    assert S % 8 == 0, "sequence length must be a multiple of 8 for TPU tiling"

    x2d = x.reshape(B * S, H)
    # Broadcast the additive mask over heads (head-independent mask, as in the
    # usual padding-mask use of this module) and flatten batch into rows.
    mask2d = jnp.broadcast_to(attention_mask.astype(jnp.float32),
                              (B, 1, S, S)).reshape(B * S, S)

    row = lambda a: a.reshape(1, -1).astype(jnp.float32)
    bq2, bk2, bv2, bd2 = row(bq), row(bk), row(bv), row(bd)
    gamma2, beta2 = row(gamma), row(beta)

    itemsize = jnp.dtype(x.dtype).itemsize
    cost = pl.CostEstimate(
        flops=int(4 * 2 * B * S * H * H            # QKV + dense projections
                  + 2 * 2 * B * n_heads * S * S * d),  # scores + context
        transcendentals=int(B * n_heads * S * S),
        bytes_accessed=int(itemsize * (2 * B * S * H + 4 * H * H)
                           + 4 * (B * S * S + 6 * H)),
    )

    out = pl.pallas_call(
        functools.partial(_mha_kernel, n_heads=n_heads, head_size=d, eps=eps),
        out_shape=jax.ShapeDtypeStruct((B * S, H), x.dtype),
        grid_spec=pltpu.PrefetchScalarGridSpec(
            num_scalar_prefetch=0,
            grid=(B,),
            in_specs=[
                pl.BlockSpec((S, H), lambda b: (b, 0)),   # x rows of batch b
                pl.BlockSpec((S, S), lambda b: (b, 0)),   # additive mask rows
                pl.BlockSpec((H, H), lambda b: (0, 0)),   # Wq
                pl.BlockSpec((1, H), lambda b: (0, 0)),   # bq
                pl.BlockSpec((H, H), lambda b: (0, 0)),   # Wk
                pl.BlockSpec((1, H), lambda b: (0, 0)),   # bk
                pl.BlockSpec((H, H), lambda b: (0, 0)),   # Wv
                pl.BlockSpec((1, H), lambda b: (0, 0)),   # bv
                pl.BlockSpec((H, H), lambda b: (0, 0)),   # W_dense
                pl.BlockSpec((1, H), lambda b: (0, 0)),   # b_dense
                pl.BlockSpec((1, H), lambda b: (0, 0)),   # LayerNorm gamma
                pl.BlockSpec((1, H), lambda b: (0, 0)),   # LayerNorm beta
            ],
            out_specs=pl.BlockSpec((S, H), lambda b: (b, 0)),
        ),
        compiler_params=pltpu.CompilerParams(
            dimension_semantics=("parallel",),
            vmem_limit_bytes=32 * 1024 * 1024,
        ),
        cost_estimate=cost,
    )(x2d, mask2d, wq, bq2, wk, bk2, wv, bv2, wd, bd2, gamma2, beta2)

    return out.reshape(B, S, H)


def mha_ref(x, attention_mask, wq, bq, wk, bk, wv, bv, wd, bd, gamma, beta,
            *, n_heads, eps):
    """Pure-JAX reference mirroring the PyTorch forward (eval mode)."""
    B, S, H = x.shape
    d = H // n_heads

    def split(t):  # (B, S, H) -> (B, nh, S, d)
        return t.reshape(B, S, n_heads, d).transpose(0, 2, 1, 3)

    q = split(x @ wq + bq)
    k = split(x @ wk + bk)
    v = split(x @ wv + bv)
    scores = jnp.einsum("bhqd,bhkd->bhqk", q, k) / math.sqrt(d)
    scores = scores + attention_mask
    e = jnp.exp(scores)
    part = e.sum(axis=1, keepdims=True)        # softmax_x: sum over heads (dim=1)
    probs = e / part
    ctx = jnp.einsum("bhqk,bhkd->bhqd", probs, v)
    ctx = ctx.transpose(0, 2, 1, 3).reshape(B, S, H)
    hid = ctx @ wd + bd
    y = hid + x
    mean = jnp.mean(y, axis=-1, keepdims=True)
    var = jnp.mean((y - mean) ** 2, axis=-1, keepdims=True)
    return (y - mean) / jnp.sqrt(var + eps) * gamma + beta


if __name__ == "__main__":
    # Small but lane-dense shapes (H and S multiples of 128 per perf review).
    B, S = 2, 128
    n_heads = 4
    hidden_size = 128
    layer_norm_eps = 1e-12

    key = jax.random.PRNGKey(0)
    keys = jax.random.split(key, 10)

    x = jax.random.normal(keys[0], (B, S, hidden_size), dtype=jnp.float32)
    # Mild additive mask (padding-mask shaped (B,1,1,S)); kept small-magnitude so
    # the module's head-sum softmax never hits exp-underflow 0/0 (which the
    # original PyTorch module would also NaN on with -1e4 masks).
    attention_mask = jax.random.uniform(keys[1], (B, 1, 1, S), jnp.float32, -1.0, 0.0)

    bound = 1.0 / math.sqrt(hidden_size)

    def init_linear(kw, kb):
        w = jax.random.uniform(kw, (hidden_size, hidden_size), jnp.float32, -bound, bound)
        b = jax.random.uniform(kb, (hidden_size,), jnp.float32, -bound, bound)
        return w, b

    wq, bq = init_linear(keys[2], keys[3])
    wk, bk = init_linear(keys[4], keys[5])
    wv, bv = init_linear(keys[6], keys[7])
    wd, bd = init_linear(keys[8], keys[9])
    gamma = jnp.ones((hidden_size,), jnp.float32)
    beta = jnp.zeros((hidden_size,), jnp.float32)

    out = mha_pallas(x, attention_mask, wq, bq, wk, bk, wv, bv, wd, bd, gamma, beta,
                     n_heads=n_heads, eps=layer_norm_eps)
    out = jax.block_until_ready(out)

    ref = mha_ref(x, attention_mask, wq, bq, wk, bk, wv, bv, wd, bd, gamma, beta,
                  n_heads=n_heads, eps=layer_norm_eps)
    assert out.shape == (B, S, hidden_size)
    assert bool(jnp.allclose(out, ref, atol=2e-2, rtol=2e-2)), "mismatch vs reference"

    print("KERNEL_OK")
</pallas_src>

<mosaic_0001>
module attributes {stable_mosaic.version = 11 : i64} {
  func.func @_mha_kernel(%arg0: i32, %arg1: memref<128x128xf32, #tpu.memory_space<vmem>>, %arg2: memref<128x128xf32, #tpu.memory_space<vmem>>, %arg3: memref<128x128xf32, #tpu.memory_space<vmem>>, %arg4: memref<1x128xf32, #tpu.memory_space<vmem>>, %arg5: memref<128x128xf32, #tpu.memory_space<vmem>>, %arg6: memref<1x128xf32, #tpu.memory_space<vmem>>, %arg7: memref<128x128xf32, #tpu.memory_space<vmem>>, %arg8: memref<1x128xf32, #tpu.memory_space<vmem>>, %arg9: memref<128x128xf32, #tpu.memory_space<vmem>>, %arg10: memref<1x128xf32, #tpu.memory_space<vmem>>, %arg11: memref<1x128xf32, #tpu.memory_space<vmem>>, %arg12: memref<1x128xf32, #tpu.memory_space<vmem>>, %arg13: memref<128x128xf32, #tpu.memory_space<vmem>>) attributes {dimension_semantics = [#tpu.dimension_semantics<parallel>], iteration_bounds = array<i64: 2>, scalar_prefetch = 0 : i64, scratch_operands = 0 : i64, tpu.core_type = #tpu.core_type<tc>, window_params = [{transform_indices = @transform_0, window_bounds = array<i64: 128, 128>}, {transform_indices = @transform_1, window_bounds = array<i64: 128, 128>}, {pipeline_mode = #tpu.pipeline_mode<synchronous>, transform_indices = @transform_2, window_bounds = array<i64: 128, 128>}, {pipeline_mode = #tpu.pipeline_mode<synchronous>, transform_indices = @transform_3, window_bounds = array<i64: 1, 128>}, {pipeline_mode = #tpu.pipeline_mode<synchronous>, transform_indices = @transform_4, window_bounds = array<i64: 128, 128>}, {pipeline_mode = #tpu.pipeline_mode<synchronous>, transform_indices = @transform_5, window_bounds = array<i64: 1, 128>}, {pipeline_mode = #tpu.pipeline_mode<synchronous>, transform_indices = @transform_6, window_bounds = array<i64: 128, 128>}, {pipeline_mode = #tpu.pipeline_mode<synchronous>, transform_indices = @transform_7, window_bounds = array<i64: 1, 128>}, {pipeline_mode = #tpu.pipeline_mode<synchronous>, transform_indices = @transform_8, window_bounds = array<i64: 128, 128>}, {pipeline_mode = #tpu.pipeline_mode<synchronous>, transform_indices = @transform_9, window_bounds = array<i64: 1, 128>}, {pipeline_mode = #tpu.pipeline_mode<synchronous>, transform_indices = @transform_10, window_bounds = array<i64: 1, 128>}, {pipeline_mode = #tpu.pipeline_mode<synchronous>, transform_indices = @transform_11, window_bounds = array<i64: 1, 128>}, {transform_indices = @transform_12, window_bounds = array<i64: 128, 128>}]} {
    %c0 = arith.constant 0 : index
    %c0_0 = arith.constant 0 : index
    %0 = vector.load %arg1[%c0, %c0_0] : memref<128x128xf32, #tpu.memory_space<vmem>>, vector<128x128xf32>
    %c0_1 = arith.constant 0 : index
    %c0_2 = arith.constant 0 : index
    %1 = vector.load %arg2[%c0_1, %c0_2] : memref<128x128xf32, #tpu.memory_space<vmem>>, vector<128x128xf32>
    %c0_3 = arith.constant 0 : index
    %c0_4 = arith.constant 0 : index
    %2 = vector.load %arg3[%c0_3, %c0_4] : memref<128x128xf32, #tpu.memory_space<vmem>>, vector<128x128xf32>
    %cst = arith.constant dense<0.000000e+00> : vector<128x128xf32>
    %3 = tpu.matmul %0, %2, %cst {dimension_numbers = #tpu.dot_dimension_numbers<[1], [0], [0], [1], [0, 0, 1, 1], [], []>} : vector<128x128xf32>, vector<128x128xf32>, vector<128x128xf32> -> vector<128x128xf32>
    %c0_5 = arith.constant 0 : index
    %c0_6 = arith.constant 0 : index
    %4 = vector.load %arg4[%c0_5, %c0_6] : memref<1x128xf32, #tpu.memory_space<vmem>>, vector<1x128xf32>
    %5 = vector.broadcast %4 : vector<1x128xf32> to vector<128x128xf32>
    %6 = arith.addf %3, %5 : vector<128x128xf32>
    %c0_7 = arith.constant 0 : index
    %c0_8 = arith.constant 0 : index
    %7 = vector.load %arg5[%c0_7, %c0_8] : memref<128x128xf32, #tpu.memory_space<vmem>>, vector<128x128xf32>
    %cst_9 = arith.constant dense<0.000000e+00> : vector<128x128xf32>
    %8 = tpu.matmul %0, %7, %cst_9 {dimension_numbers = #tpu.dot_dimension_numbers<[1], [0], [0], [1], [0, 0, 1, 1], [], []>} : vector<128x128xf32>, vector<128x128xf32>, vector<128x128xf32> -> vector<128x128xf32>
    %c0_10 = arith.constant 0 : index
    %c0_11 = arith.constant 0 : index
    %9 = vector.load %arg6[%c0_10, %c0_11] : memref<1x128xf32, #tpu.memory_space<vmem>>, vector<1x128xf32>
    %10 = vector.broadcast %9 : vector<1x128xf32> to vector<128x128xf32>
    %11 = arith.addf %8, %10 : vector<128x128xf32>
    %c0_12 = arith.constant 0 : index
    %c0_13 = arith.constant 0 : index
    %12 = vector.load %arg7[%c0_12, %c0_13] : memref<128x128xf32, #tpu.memory_space<vmem>>, vector<128x128xf32>
    %cst_14 = arith.constant dense<0.000000e+00> : vector<128x128xf32>
    %13 = tpu.matmul %0, %12, %cst_14 {dimension_numbers = #tpu.dot_dimension_numbers<[1], [0], [0], [1], [0, 0, 1, 1], [], []>} : vector<128x128xf32>, vector<128x128xf32>, vector<128x128xf32> -> vector<128x128xf32>
    %c0_15 = arith.constant 0 : index
    %c0_16 = arith.constant 0 : index
    %14 = vector.load %arg8[%c0_15, %c0_16] : memref<1x128xf32, #tpu.memory_space<vmem>>, vector<1x128xf32>
    %15 = vector.broadcast %14 : vector<1x128xf32> to vector<128x128xf32>
    %16 = arith.addf %13, %15 : vector<128x128xf32>
    %17 = vector.extract_strided_slice %6 {offsets = [0, 0], sizes = [128, 32], strides = [1, 1]} : vector<128x128xf32> to vector<128x32xf32>
    %18 = vector.extract_strided_slice %11 {offsets = [0, 0], sizes = [128, 32], strides = [1, 1]} : vector<128x128xf32> to vector<128x32xf32>
    %cst_17 = arith.constant dense<0.000000e+00> : vector<128x128xf32>
    %19 = tpu.matmul %17, %18, %cst_17 {dimension_numbers = #tpu.dot_dimension_numbers<[1], [1], [0], [0], [0, 0, 1, 0], [], []>} : vector<128x32xf32>, vector<128x32xf32>, vector<128x128xf32> -> vector<128x128xf32>
    %cst_18 = arith.constant 0.176776692 : f32
    %20 = vector.broadcast %cst_18 : f32 to vector<128x128xf32>
    %21 = arith.mulf %19, %20 : vector<128x128xf32>
    %22 = arith.addf %21, %1 : vector<128x128xf32>
    %23 = math.exp %22 : vector<128x128xf32>
    %24 = vector.extract_strided_slice %6 {offsets = [0, 32], sizes = [128, 32], strides = [1, 1]} : vector<128x128xf32> to vector<128x32xf32>
    %25 = vector.extract_strided_slice %11 {offsets = [0, 32], sizes = [128, 32], strides = [1, 1]} : vector<128x128xf32> to vector<128x32xf32>
    %cst_19 = arith.constant dense<0.000000e+00> : vector<128x128xf32>
    %26 = tpu.matmul %24, %25, %cst_19 {dimension_numbers = #tpu.dot_dimension_numbers<[1], [1], [0], [0], [0, 0, 1, 0], [], []>} : vector<128x32xf32>, vector<128x32xf32>, vector<128x128xf32> -> vector<128x128xf32>
    %cst_20 = arith.constant 0.176776692 : f32
    %27 = vector.broadcast %cst_20 : f32 to vector<128x128xf32>
    %28 = arith.mulf %26, %27 : vector<128x128xf32>
    %29 = arith.addf %28, %1 : vector<128x128xf32>
    %30 = math.exp %29 : vector<128x128xf32>
    %31 = arith.addf %23, %30 : vector<128x128xf32>
    %32 = vector.extract_strided_slice %6 {offsets = [0, 64], sizes = [128, 32], strides = [1, 1]} : vector<128x128xf32> to vector<128x32xf32>
    %33 = vector.extract_strided_slice %11 {offsets = [0, 64], sizes = [128, 32], strides = [1, 1]} : vector<128x128xf32> to vector<128x32xf32>
    %cst_21 = arith.constant dense<0.000000e+00> : vector<128x128xf32>
    %34 = tpu.matmul %32, %33, %cst_21 {dimension_numbers = #tpu.dot_dimension_numbers<[1], [1], [0], [0], [0, 0, 1, 0], [], []>} : vector<128x32xf32>, vector<128x32xf32>, vector<128x128xf32> -> vector<128x128xf32>
    %cst_22 = arith.constant 0.176776692 : f32
    %35 = vector.broadcast %cst_22 : f32 to vector<128x128xf32>
    %36 = arith.mulf %34, %35 : vector<128x128xf32>
    %37 = arith.addf %36, %1 : vector<128x128xf32>
    %38 = math.exp %37 : vector<128x128xf32>
    %39 = arith.addf %31, %38 : vector<128x128xf32>
    %40 = vector.extract_strided_slice %6 {offsets = [0, 96], sizes = [128, 32], strides = [1, 1]} : vector<128x128xf32> to vector<128x32xf32>
    %41 = vector.extract_strided_slice %11 {offsets = [0, 96], sizes = [128, 32], strides = [1, 1]} : vector<128x128xf32> to vector<128x32xf32>
    %cst_23 = arith.constant dense<0.000000e+00> : vector<128x128xf32>
    %42 = tpu.matmul %40, %41, %cst_23 {dimension_numbers = #tpu.dot_dimension_numbers<[1], [1], [0], [0], [0, 0, 1, 0], [], []>} : vector<128x32xf32>, vector<128x32xf32>, vector<128x128xf32> -> vector<128x128xf32>
    %cst_24 = arith.constant 0.176776692 : f32
    %43 = vector.broadcast %cst_24 : f32 to vector<128x128xf32>
    %44 = arith.mulf %42, %43 : vector<128x128xf32>
    %45 = arith.addf %44, %1 : vector<128x128xf32>
    %46 = math.exp %45 : vector<128x128xf32>
    %47 = arith.addf %39, %46 : vector<128x128xf32>
    %48 = tpu.reciprocal %47 : vector<128x128xf32> -> vector<128x128xf32>
    %49 = arith.mulf %23, %48 : vector<128x128xf32>
    %50 = vector.extract_strided_slice %16 {offsets = [0, 0], sizes = [128, 32], strides = [1, 1]} : vector<128x128xf32> to vector<128x32xf32>
    %cst_25 = arith.constant dense<0.000000e+00> : vector<128x32xf32>
    %51 = tpu.matmul %49, %50, %cst_25 {dimension_numbers = #tpu.dot_dimension_numbers<[1], [0], [0], [1], [0, 0, 1, 1], [], []>} : vector<128x128xf32>, vector<128x32xf32>, vector<128x32xf32> -> vector<128x32xf32>
    %52 = arith.mulf %30, %48 : vector<128x128xf32>
    %53 = vector.extract_strided_slice %16 {offsets = [0, 32], sizes = [128, 32], strides = [1, 1]} : vector<128x128xf32> to vector<128x32xf32>
    %cst_26 = arith.constant dense<0.000000e+00> : vector<128x32xf32>
    %54 = tpu.matmul %52, %53, %cst_26 {dimension_numbers = #tpu.dot_dimension_numbers<[1], [0], [0], [1], [0, 0, 1, 1], [], []>} : vector<128x128xf32>, vector<128x32xf32>, vector<128x32xf32> -> vector<128x32xf32>
    %55 = arith.mulf %38, %48 : vector<128x128xf32>
    %56 = vector.extract_strided_slice %16 {offsets = [0, 64], sizes = [128, 32], strides = [1, 1]} : vector<128x128xf32> to vector<128x32xf32>
    %cst_27 = arith.constant dense<0.000000e+00> : vector<128x32xf32>
    %57 = tpu.matmul %55, %56, %cst_27 {dimension_numbers = #tpu.dot_dimension_numbers<[1], [0], [0], [1], [0, 0, 1, 1], [], []>} : vector<128x128xf32>, vector<128x32xf32>, vector<128x32xf32> -> vector<128x32xf32>
    %58 = arith.mulf %46, %48 : vector<128x128xf32>
    %59 = vector.extract_strided_slice %16 {offsets = [0, 96], sizes = [128, 32], strides = [1, 1]} : vector<128x128xf32> to vector<128x32xf32>
    %cst_28 = arith.constant dense<0.000000e+00> : vector<128x32xf32>
    %60 = tpu.matmul %58, %59, %cst_28 {dimension_numbers = #tpu.dot_dimension_numbers<[1], [0], [0], [1], [0, 0, 1, 1], [], []>} : vector<128x128xf32>, vector<128x32xf32>, vector<128x32xf32> -> vector<128x32xf32>
    %61 = tpu.concatenate %51, %54, %57, %60 in 1 : vector<128x32xf32>, vector<128x32xf32>, vector<128x32xf32>, vector<128x32xf32> -> vector<128x128xf32>
    %c0_29 = arith.constant 0 : index
    %c0_30 = arith.constant 0 : index
    %62 = vector.load %arg9[%c0_29, %c0_30] : memref<128x128xf32, #tpu.memory_space<vmem>>, vector<128x128xf32>
    %cst_31 = arith.constant dense<0.000000e+00> : vector<128x128xf32>
    %63 = tpu.matmul %61, %62, %cst_31 {dimension_numbers = #tpu.dot_dimension_numbers<[1], [0], [0], [1], [0, 0, 1, 1], [], []>} : vector<128x128xf32>, vector<128x128xf32>, vector<128x128xf32> -> vector<128x128xf32>
    %c0_32 = arith.constant 0 : index
    %c0_33 = arith.constant 0 : index
    %64 = vector.load %arg10[%c0_32, %c0_33] : memref<1x128xf32, #tpu.memory_space<vmem>>, vector<1x128xf32>
    %65 = vector.broadcast %64 : vector<1x128xf32> to vector<128x128xf32>
    %66 = arith.addf %63, %65 : vector<128x128xf32>
    %67 = arith.addf %66, %0 : vector<128x128xf32>
    %cst_34 = arith.constant dense<0.000000e+00> : vector<128xf32>
    %68 = vector.multi_reduction <add>, %67, %cst_34 [1] : vector<128x128xf32> to vector<128xf32>
    %69 = vector.shape_cast %68 : vector<128xf32> to vector<128x1xf32>
    %cst_35 = arith.constant 1.280000e+02 : f32
    %70 = vector.broadcast %cst_35 : f32 to vector<128x1xf32>
    %71 = arith.divf %69, %70 : vector<128x1xf32>
    %72 = arith.mulf %67, %67 : vector<128x128xf32>
    %cst_36 = arith.constant dense<0.000000e+00> : vector<128xf32>
    %73 = vector.multi_reduction <add>, %72, %cst_36 [1] : vector<128x128xf32> to vector<128xf32>
    %74 = vector.shape_cast %73 : vector<128xf32> to vector<128x1xf32>
    %cst_37 = arith.constant 1.280000e+02 : f32
    %75 = vector.broadcast %cst_37 : f32 to vector<128x1xf32>
    %76 = arith.divf %74, %75 : vector<128x1xf32>
    %77 = arith.mulf %71, %71 : vector<128x1xf32>
    %78 = arith.subf %76, %77 : vector<128x1xf32>
    %79 = vector.broadcast %71 : vector<128x1xf32> to vector<128x128xf32>
    %80 = arith.subf %67, %79 : vector<128x128xf32>
    %cst_38 = arith.constant 9.99999996E-13 : f32
    %81 = vector.broadcast %cst_38 : f32 to vector<128x1xf32>
    %82 = arith.addf %78, %81 : vector<128x1xf32>
    %83 = math.rsqrt %82 : vector<128x1xf32>
    %84 = vector.broadcast %83 : vector<128x1xf32> to vector<128x128xf32>
    %85 = arith.mulf %80, %84 : vector<128x128xf32>
    %c0_39 = arith.constant 0 : index
    %c0_40 = arith.constant 0 : index
    %86 = vector.load %arg11[%c0_39, %c0_40] : memref<1x128xf32, #tpu.memory_space<vmem>>, vector<1x128xf32>
    %87 = vector.broadcast %86 : vector<1x128xf32> to vector<128x128xf32>
    %88 = arith.mulf %85, %87 : vector<128x128xf32>
    %c0_41 = arith.constant 0 : index
    %c0_42 = arith.constant 0 : index
    %89 = vector.load %arg12[%c0_41, %c0_42] : memref<1x128xf32, #tpu.memory_space<vmem>>, vector<1x128xf32>
    %90 = vector.broadcast %89 : vector<1x128xf32> to vector<128x128xf32>
    %91 = arith.addf %88, %90 : vector<128x128xf32>
    %c0_43 = arith.constant 0 : index
    %c0_44 = arith.constant 0 : index
    %92 = vector.load %arg13[%c0_43, %c0_44] : memref<128x128xf32, #tpu.memory_space<vmem>>, vector<128x128xf32>
    tpu.vector_store %arg13[%c0_43, %c0_44], %91 {strides = array<i32>} : memref<128x128xf32, #tpu.memory_space<vmem>>, vector<128x128xf32>,
    return
  }
  func.func @transform_0(%arg0: i32) -> (i32, i32) {
    %c0_i32 = arith.constant 0 : i32
    %c0_i32_0 = arith.constant 0 : i32
    return %arg0, %c0_i32 : i32, i32
  }
  func.func @transform_1(%arg0: i32) -> (i32, i32) {
    %c0_i32 = arith.constant 0 : i32
    %c0_i32_0 = arith.constant 0 : i32
    return %arg0, %c0_i32 : i32, i32
  }
  func.func @transform_2(%arg0: i32) -> (i32, i32) {
    %c0_i32 = arith.constant 0 : i32
    %c0_i32_0 = arith.constant 0 : i32
    %c0_i32_1 = arith.constant 0 : i32
    return %c0_i32, %c0_i32_0 : i32, i32
  }
  func.func @transform_3(%arg0: i32) -> (i32, i32) {
    %c0_i32 = arith.constant 0 : i32
    %c0_i32_0 = arith.constant 0 : i32
    %c0_i32_1 = arith.constant 0 : i32
    return %c0_i32, %c0_i32_0 : i32, i32
  }
  func.func @transform_4(%arg0: i32) -> (i32, i32) {
    %c0_i32 = arith.constant 0 : i32
    %c0_i32_0 = arith.constant 0 : i32
    %c0_i32_1 = arith.constant 0 : i32
    return %c0_i32, %c0_i32_0 : i32, i32
  }
  func.func @transform_5(%arg0: i32) -> (i32, i32) {
    %c0_i32 = arith.constant 0 : i32
    %c0_i32_0 = arith.constant 0 : i32
    %c0_i32_1 = arith.constant 0 : i32
    return %c0_i32, %c0_i32_0 : i32, i32
  }
  func.func @transform_6(%arg0: i32) -> (i32, i32) {
    %c0_i32 = arith.constant 0 : i32
    %c0_i32_0 = arith.constant 0 : i32
    %c0_i32_1 = arith.constant 0 : i32
    return %c0_i32, %c0_i32_0 : i32, i32
  }
  func.func @transform_7(%arg0: i32) -> (i32, i32) {
    %c0_i32 = arith.constant 0 : i32
    %c0_i32_0 = arith.constant 0 : i32
    %c0_i32_1 = arith.constant 0 : i32
    return %c0_i32, %c0_i32_0 : i32, i32
  }
  func.func @transform_8(%arg0: i32) -> (i32, i32) {
    %c0_i32 = arith.constant 0 : i32
    %c0_i32_0 = arith.constant 0 : i32
    %c0_i32_1 = arith.constant 0 : i32
    return %c0_i32, %c0_i32_0 : i32, i32
  }
  func.func @transform_9(%arg0: i32) -> (i32, i32) {
    %c0_i32 = arith.constant 0 : i32
    %c0_i32_0 = arith.constant 0 : i32
    %c0_i32_1 = arith.constant 0 : i32
    return %c0_i32, %c0_i32_0 : i32, i32
  }
  func.func @transform_10(%arg0: i32) -> (i32, i32) {
    %c0_i32 = arith.constant 0 : i32
    %c0_i32_0 = arith.constant 0 : i32
    %c0_i32_1 = arith.constant 0 : i32
    return %c0_i32, %c0_i32_0 : i32, i32
  }
  func.func @transform_11(%arg0: i32) -> (i32, i32) {
    %c0_i32 = arith.constant 0 : i32
    %c0_i32_0 = arith.constant 0 : i32
    %c0_i32_1 = arith.constant 0 : i32
    return %c0_i32, %c0_i32_0 : i32, i32
  }
  func.func @transform_12(%arg0: i32) -> (i32, i32) {
    %c0_i32 = arith.constant 0 : i32
    %c0_i32_0 = arith.constant 0 : i32
    return %arg0, %c0_i32 : i32, i32
  }
}

</mosaic_0001>

<bundles_post_ra>
// kernel: tpu_custom_call.1
= control target key start
LH: loop header
LB: loop body
LE: loop exit
PB: predicated region body
PF: predicated region fallthrough
CT: control target
= control target key end

     0   :  { %s6762_s0 = inlined_call_operand.hbm [shape: f32[256,128], index: 0, kind: input, shape index: {}]   ;;  %s6763_s1 = inlined_call_operand.hbm [shape: f32[256,128], index: 1, kind: input, shape index: {}]   ;;  %s6764_s2 = inlined_call_operand.hbm [shape: f32[128,128], index: 2, kind: input, shape index: {}]   ;;  %s6765_s3 = inlined_call_operand.vmem [shape: f32[1,128], index: 3, kind: input, shape index: {}]   ;;  %s6766_s4 = inlined_call_operand.hbm [shape: f32[128,128], index: 4, kind: input, shape index: {}]   ;;  %s6767_s5 = inlined_call_operand.vmem [shape: f32[1,128], index: 5, kind: input, shape index: {}]   ;;  %s6768_s6 = inlined_call_operand.hbm [shape: f32[128,128], index: 6, kind: input, shape index: {}]   ;;  %s6769_s7 = inlined_call_operand.vmem [shape: f32[1,128], index: 7, kind: input, shape index: {}]   ;;  %s6770_s8 = inlined_call_operand.hbm [shape: f32[128,128], index: 8, kind: input, shape index: {}]   ;;  %s6771_s9 = inlined_call_operand.vmem [shape: f32[1,128], index: 9, kind: input, shape index: {}]   ;;  %s6772_s10 = inlined_call_operand.vmem [shape: f32[1,128], index: 10, kind: input, shape index: {}]   ;;  %s6773_s11 = inlined_call_operand.vmem [shape: f32[1,128], index: 11, kind: input, shape index: {}]   ;;  %s6774_s12 = inlined_call_operand.hbm [shape: f32[256,128], index: 12, kind: output, shape index: {}]  }
   0x1   :  { %6786 = sst [smem:[#allocation26_spill]] %s6762_s0 }
   0x2   :  { %6787 = sst [smem:[#allocation27_spill]] %s6764_s2 }
   0x3   :  { %6788 = sst [smem:[#allocation28_spill]] %s6766_s4 }
   0x4   :  { %6789 = sst [smem:[#allocation29_spill]] %s6768_s6 }
   0x5   :  { %6790 = sst [smem:[#allocation30_spill]] %s6770_s8 }
   0x6   :  { %17 = vsyncpa [#allocation3], 0 }
   0x7   :  { %19 = vsyncpa [#allocation3 + $0x1], 0 }
   0x8   :  { %20 = vsyncpa [#allocation6], 0 }
   0x9   :  { %22 = vsyncpa [#allocation6 + $0x1], 0 }
   0xa   :  { %23 = vsyncpa [#allocation9], 0 }
   0xb   :  { %24 = vsyncpa [#allocation12], 0 }
   0xc   :  { %25 = vsyncpa [#allocation4], 0 }
   0xd   :  { %27 = vsyncpa [#allocation4 + $0x1], 0  ;;  %s4600_s21 = smov 0   ;;  %s4602_s22 = smov 0  }
   0xe   :  { %s4604_s23 = smov 0   ;;  %s4606_s24 = smov 0  }
   0xf LB: > { %6791 = sst [smem:[#allocation20_spill]] %s4509_s21  ;;  %s4621_s25 = sadd.s32 4294967295, %s4521_s24   ;;  %s4521_s24 = sphi %s4606_s24, %s6830_s24   ;;  %s4517_s23 = sphi %s4604_s23, %s6832_s23   ;;  %s4513_s22 = sphi %s4602_s22, %s6834_s22   ;;  %s4509_s21 = sphi %s4600_s21, %s6833_s21  }
  0x10   : > { %6792 = sst [smem:[#allocation21_spill]] %s4517_s23  ;;  %s3493_s26 = sadd.s32 4294967294, %s4521_s24  }
  0x11   : > { %p53_p0 = scmp.ne.s32.totalorder %s4513_s22, %s4509_s21  ;;  %p54_p1 = scmp.eq.s32.totalorder %s4621_s25, 0 }
  0x12   : > { %p313_p2 = scmp.eq.s32.totalorder %s4621_s25, 1  ;;  %p319_p3 = scmp.eq.s32.totalorder %s3493_s26, 1 }
  0x13   : > { %p4630_p4 = por %p54_p1, %p53_p0  ;;  %p3494_p5 = scmp.ge.s32.totalorder %s4521_s24, 1 }
  0x14   : > { %p4635_p6 = por %p319_p3, %p53_p0  ;;  %p326_p7 = scmp.lt.s32.totalorder %s4521_s24, 3 }
  0x15   : > { %s6796_s2 = sld [smem:[#allocation27_spill]]  ;;  %s4523_s15 = smov [#allocation7]  }
  0x16   : > { %s6794_s28 = scalar_select %p4635_p6, 1, 0 }
  0x17   : > { %p4643_p8 = pnand %p3494_p5, %p326_p7  ;;  %s339_s16 = sshll.u32 %s4523_s15, 4  ;;  %s340_s16 = int_to_ptr.vmem [resolvable:$true] %s339_s16 }
  0x18   : > { %6795 = sst [smem:[#allocation22_spill]] %s6794_s28  ;;  %s6777_s26 = smov 128  }
  0x19   : > { %p3720_p9 = pneg %p4643_p8  ;;  %s6799_s4 = sld [smem:[#allocation28_spill]] }
  0x1a   : > { %s6779_s29 = smov 8   ;;  %s4526_s30 = smov [#allocation8]  }
  0x1b   : > { %s337_s13 = sshll.u32 %s6796_s2, 4  ;;  %p4651_p10 = pnand %p3720_p9, %p54_p1  ;;  %s338_s13 = int_to_ptr.hbm [resolvable:$true] %s337_s13 }
  0x1c   : > { %s356_s15 = sshll.u32 %s4526_s30, 4  ;;  %s6800_s6 = sld [smem:[#allocation29_spill]]  ;;  %s357_s15 = int_to_ptr.vmem [resolvable:$true] %s356_s15 }
  0x1d   : > { %3723 = dma.hbm_to_vmem [thread:$0]  (!%p4651_p10), %s338_s13, 2048, %s340_s16, [#allocation6], %s6777_s26, %s6777_s26, %s6779_s29  }
  0x1e   : > { %s6801_s8 = sld [smem:[#allocation30_spill]]  ;;  %s4527_s19 = smov [#allocation10]  }
  0x1f   : > { %s354_s20 = sshll.u32 %s6799_s4, 4  ;;  %s373_s2 = sshll.u32 %s4527_s19, 4  ;;  %s355_s20 = int_to_ptr.hbm [resolvable:$true] %s354_s20  ;;  %s374_s2 = int_to_ptr.vmem [resolvable:$true] %s373_s2 }
  0x20   : > { %3726 = dma.hbm_to_vmem [thread:$0]  (!%p4651_p10), %s355_s20, 2048, %s357_s15, [#allocation9], %s6777_s26, %s6777_s26, %s6779_s29  }
  0x21   : > { %s4528_s28 = smov [#allocation11]   ;;  %s4686_s30 = sadd.s32 1, %s4521_s24  }
  0x22   : > { %s371_s21 = sshll.u32 %s6800_s6, 4  ;;  %s390_s20 = sshll.u32 %s4528_s28, 4  ;;  %s372_s21 = int_to_ptr.hbm [resolvable:$true] %s371_s21  ;;  %s391_s20 = int_to_ptr.vmem [resolvable:$true] %s390_s20 }
  0x23   : > { %3729 = dma.hbm_to_vmem [thread:$0]  (!%p4651_p10), %s372_s21, 2048, %s374_s2, [#allocation9], %s6777_s26, %s6777_s26, %s6779_s29  }
  0x24   : > { %s388_s18 = sshll.u32 %s6801_s8, 4  ;;  %6802 = sst [smem:[#allocation23_spill]] %s4686_s30  ;;  %s389_s18 = int_to_ptr.hbm [resolvable:$true] %s388_s18 }
  0x25   : > { %3732 = dma.hbm_to_vmem [thread:$0]  (!%p4651_p10), %s389_s18, 2048, %s391_s20, [#allocation12], %s6777_s26, %s6777_s26, %s6779_s29  }
  0x26   : > { %s40_s15 = sadd.s32 1, %s4517_s23  ;;  %s37_s13 = ssub.s32 %s4521_s24, %s4686_s30 }
  0x27   : > { %p47_p12 = scmp.ne.s32.totalorder %s4517_s23, %s4513_s22  ;;  %p38_p13 = scmp.eq.s32.totalorder %s37_s13, 0 }
  0x28   : > { %p48_p0 = scmp.eq.s32.totalorder %s4521_s24, 0  ;;  %p3748_p5 = scmp.lt.s32.totalorder %s4521_s24, 2 }
  0x29   : > { %p4696_p3 = por %p313_p2, %p47_p12  ;;  %s413_s17 = sand.u32 1, %s4517_s23  }
  0x2a   : > { %s4702_s16 = scalar_select %p38_p13, %s4517_s23, %s40_s15  }
  0x2b   : > { %s6803_s21 = scalar_select %p4696_p3, 1, 0 }
  0x2c   : > { %6805 = sst [smem:[#allocation25_spill]] %s4702_s16  ;;  %p49_p7 = por %p48_p0, %p47_p12 }
  0x2d   : > { %6804 = sst [smem:[#allocation24_spill]] %s6803_s21  ;;  %s4705_s19 = sshll.u32 %s413_s17, 7 }
  0x2e   : > { %s3647_s18 = sshll.u32 %s4521_s24, 7  ;;  %s6806_s0 = sld [smem:[#allocation26_spill]] }
  0x2f   : > { %s417_s13 = scalar_lea.vmem [#allocation2], %s4705_s19  ;;  %p4712_p2 = pnand %p3748_p5, %p49_p7 }
  0x30   : > { %s425_s26 = sshll.u32 %s417_s13, 4  ;;  %s444_s8 = scalar_lea.hbm %s6763_s1, %s3647_s18  ;;  %s426_s26 = int_to_ptr.vmem [resolvable:$true] %s425_s26 }
  0x31   : > { %s445_s16 = sshll.u32 %s444_s8, 4  ;;  %s414_s23 = scalar_lea.sflag [#allocation3], %s413_s17  ;;  %s446_s16 = int_to_ptr.hbm [resolvable:$true] %s445_s16 }
  0x32   : > { %p4383_p10 = pneg %p4712_p2 }
  0x34   : > { %s422_s20 = scalar_lea.hbm %s6806_s0, %s3647_s18  ;;  %s4386_s13 = scalar_lea.hbm %s6806_s0, 256 }
  0x35   : > { %s423_s29 = sshll.u32 %s422_s20, 4  ;;  %s424_s29 = int_to_ptr.hbm [resolvable:$true] %s423_s29 }
  0x36   : > { %s4379_s30 = sshra.s32 %s424_s29, 4  ;;  %s4380_s30 = int_to_ptr.hbm [resolvable:$true] %s4379_s30 }
  0x37   : > { %s4381_s2 = scalar_lea.hbm %s4380_s30, 128  ;;  %p4387_p0 = scmp.lt.s32.totalorder %s4380_s30, %s6806_s0 }
  0x38   : > { %p4382_p9 = scmp.ne.s32.totalorder %s4380_s30, %s4381_s2  ;;  %p4388_p5 = scmp.lt.s32.totalorder %s4386_s13, %s4381_s2 }
  0x3a   : > { %p4384_p12 = pnand %p4383_p10, %p4382_p9  ;;  %p4389_p7 = por %p4388_p5, %p4387_p0 }
  0x3c   : > { %p4385_p13 = pneg %p4384_p12 }
  0x3e   : > { %p4390_p11 = pnand %p4389_p7, %p4385_p13 }
  0x40   : > { %4393 = shalt.err (!%p4390_p11)
}
  0x41   : > { %s6808_s8 = smov 8   ;;  %s6809_s17 = smov 128  }
  0x42   : > { %3736 = dma.hbm_to_vmem [thread:$0]  (!%p4712_p2), %s424_s29, 2048, %s426_s26, %s414_s23, %s6809_s17, %s6809_s17, %s6808_s8  }
  0x43   : > { %s439_s18 = scalar_lea.vmem [#allocation5], %s4705_s19  ;;  %s435_s20 = sand.u32 1, %s4521_s24  }
  0x44   : > { %s447_s28 = sshll.u32 %s439_s18, 4  ;;  %s436_s6 = scalar_lea.sflag [#allocation6], %s435_s20  ;;  %s448_s28 = int_to_ptr.vmem [resolvable:$true] %s447_s28 }
  0x45   : > { %s4409_s30 = sshra.s32 %s446_s16, 4  ;;  %s4416_s0 = scalar_lea.hbm %s6763_s1, 256  ;;  %s4410_s30 = int_to_ptr.hbm [resolvable:$true] %s4409_s30 }
  0x46   : > { %s4411_s2 = scalar_lea.hbm %s4410_s30, 128  ;;  %p4417_p13 = scmp.lt.s32.totalorder %s4410_s30, %s6763_s1 }
  0x47   : > { %p4412_p9 = scmp.ne.s32.totalorder %s4410_s30, %s4411_s2  ;;  %p4418_p0 = scmp.lt.s32.totalorder %s4416_s0, %s4411_s2 }
  0x49   : > { %p4414_p11 = pnand %p4412_p9, %p4383_p10  ;;  %p4419_p5 = por %p4418_p0, %p4417_p13 }
  0x4b   : > { %p4415_p12 = pneg %p4414_p11 }
  0x4d   : > { %p4420_p7 = pnand %p4419_p5, %p4415_p12 }
  0x4f   : > { %4423 = shalt.err (!%p4420_p7)
}
  0x50   : > { %3739 = dma.hbm_to_vmem [thread:$0]  (!%p4712_p2), %s446_s16, 2048, %s448_s28, %s436_s6, %s6809_s17, %s6809_s17, %s6808_s8  }
  0x51   : > { %459 = sbr.rel (%p4643_p8) target bundleno = 1480 (0x5c8), region = 68  ;;  %s4754_s26 = sand.u32 (!%p4643_p8), 1, %s4513_s22  }
  0x52   : > { %s4757_s29 = sshll.u32 (!%p4643_p8), %s4754_s26, 7  ;;  %s462_s0 = scalar_lea.sflag (!%p4643_p8), [#allocation3], %s4754_s26 }
  0x53   : > { %s4761_s21 = scalar_lea.vmem (!%p4643_p8), [#allocation2], %s4757_s29 }
  0x56   : > { %4484 = dma.done.wait (%p4630_p4), %s462_s0, 2048  }
  0x57   : > { %4486 = vsyncadd (%p4630_p4), %s462_s0, 4294965248  ;;  %s471_s4 = sand.u32 1, %s4621_s25   ;;  %s4769_s16 = scalar_lea.vmem [#allocation5], %s4757_s29 }
  0x58   : > { %s472_s14 = scalar_lea.sflag [#allocation6], %s471_s4 }
  0x59   : > { %4488 = dma.done.wait (%p4630_p4), %s472_s14, 2048  }
  0x5a   : > { %4490 = vsyncadd (%p4630_p4), %s472_s14, 4294965248 }
  0x5b   : > { %4492 = dma.done.wait (%p54_p1), [#allocation6], 2048  }
  0x5c   : > { %4494 = vsyncadd (%p54_p1), [#allocation6], 4294965248 }
  0x5d   : > { %4496 = dma.done.wait (%p54_p1), [#allocation9], 4096  }
  0x5e   : > { %4498 = vsyncadd (%p54_p1), [#allocation9], 4294963200 }
  0x5f   : > { %4500 = dma.done.wait (%p54_p1), [#allocation12], 2048  }
  0x60   : > { %4502 = vsyncadd (%p54_p1), [#allocation12], 4294965248  ;;  %v677_v0 = vld [vmem:[#allocation8 + $0x78] sm:$0xff]  ;;  %v676_v1 = vld [vmem:[#allocation8 + $0x70] sm:$0xff]  ;;  %s4529_s8 = smov 64   ;;  %s4530_s17 = smov 96  }
  0x61   : > { %682 = vmatpush.msra.mxu1 %v677_v0  ;;  %v675_v2 = vld [vmem:[#allocation8 + $0x68] sm:$0xff]  ;;  %v674_v3 = vld [vmem:[#allocation8 + $0x60] sm:$0xff]  ;;  %v673_v4 = vld [vmem:[#allocation8 + $0x58] sm:$0xff]  ;;  %s4531_s18 = smov 32   ;;  %vm832_vm0 = vcmask 261120   ;;  %s6554_s4 = scalar_lea.vmem [#allocation13], %s4757_s29 }
  0x62   : > { %v672_v5 = vld [vmem:[#allocation8 + $0x50] sm:$0xff]  ;;  %v671_v6 = vld [vmem:[#allocation8 + $0x48] sm:$0xff]  ;;  %v670_v7 = vld [vmem:[#allocation8 + $0x40] sm:$0xff]  ;;  %s3649_s29 = sshll.u32 %s4621_s25, 7  ;;  %s3356_s27 = sshll.u32 %s6554_s4, 4  ;;  %s3357_s27 = int_to_ptr.vmem [resolvable:$true] %s3356_s27 }
  0x63   : > { %683 = vmatpush.msra.mxu1 %v676_v1  ;;  %v669_v8 = vld [vmem:[#allocation8 + $0x38] sm:$0xff]  ;;  %v668_v9 = vld [vmem:[#allocation8 + $0x30] sm:$0xff]  ;;  %v667_v10 = vld [vmem:[#allocation8 + $0x28] sm:$0xff]  ;;  %s3355_s25 = scalar_lea.hbm %s6774_s12, %s3649_s29  ;;  %s4459_s30 = scalar_lea.hbm %s6774_s12, 256 }
  0x64   : > { %v666_v11 = vld [vmem:[#allocation8 + $0x20] sm:$0xff]  ;;  %v665_v12 = vld [vmem:[#allocation8 + $0x18] sm:$0xff]  ;;  %v664_v14 = vld [vmem:[#allocation8 + $0x10] sm:$0xff] }
  0x65   : > { %684 = vmatpush.msra.mxu1 %v675_v2  ;;  %v762_v13 = vld [vmem:[#allocation10 + $0x78] sm:$0xff]  ;;  %v761_v15 = vld [vmem:[#allocation10 + $0x70] sm:$0xff]  ;;  %v760_v16 = vld [vmem:[#allocation10 + $0x68] sm:$0xff] }
  0x66   : > { %767 = vmatpush.msra.mxu2 %v762_v13  ;;  %v663_v17 = vld [vmem:[#allocation8 + $0x8] sm:$0xff]  ;;  %v759_v18 = vld [vmem:[#allocation10 + $0x60] sm:$0xff]  ;;  %v758_v21 = vld [vmem:[#allocation10 + $0x58] sm:$0xff] }
  0x67   : > { %685 = vmatpush.msra.mxu1 %v674_v3  ;;  %v662_v19 = vld [vmem:[#allocation8] sm:$0xff]  ;;  %v757_v22 = vld [vmem:[#allocation10 + $0x50] sm:$0xff]  ;;  %v756_v23 = vld [vmem:[#allocation10 + $0x48] sm:$0xff] }
  0x68   : > { %768 = vmatpush.msra.mxu2 %v761_v15  ;;  %v4788_v20 = vld [vmem:[%s4761_s21] sm:$0xff]  ;;  %v4792_v25 = vld [vmem:[%s4761_s21 + $0x8] sm:$0xff]  ;;  %v754_v26 = vld [vmem:[#allocation10 + $0x38] sm:$0xff] }
  0x69   : > { %686 = vmatpush.msra.mxu1 %v673_v4  ;;  %v755_v24 = vld [vmem:[#allocation10 + $0x40] sm:$0xff]  ;;  %v753_v27 = vld [vmem:[#allocation10 + $0x30] sm:$0xff]  ;;  %v752_v28 = vld [vmem:[#allocation10 + $0x28] sm:$0xff] }
  0x6a   : > { %769 = vmatpush.msra.mxu2 %v760_v16  ;;  %v751_v29 = vld [vmem:[#allocation10 + $0x20] sm:$0xff]  ;;  %v4796_v30 = vld [vmem:[%s4761_s21 + $0x10] sm:$0xff]  ;;  %v750_v31 = vld [vmem:[#allocation10 + $0x18] sm:$0xff] }
  0x6b   : > { %687 = vmatpush.msra.mxu1 %v672_v5  ;;  %v749_v32 = vld [vmem:[#allocation10 + $0x10] sm:$0xff]  ;;  %v748_v33 = vld [vmem:[#allocation10 + $0x8] sm:$0xff]  ;;  %v747_v34 = vld [vmem:[#allocation10] sm:$0xff] }
  0x6c   : > { %770 = vmatpush.msra.mxu2 %v759_v18  ;;  %v4800_v35 = vld [vmem:[%s4761_s21 + $0x18] sm:$0xff]  ;;  %v4805_v36 = vld [vmem:[%s4761_s21 + $0x20] sm:$0xff]  ;;  %v4810_v37 = vld [vmem:[%s4761_s21 + $0x28] sm:$0xff] }
  0x6d   : > { %688 = vmatpush.msra.mxu1 %v671_v6  ;;  %v4815_v38 = vld [vmem:[%s4761_s21 + $0x30] sm:$0xff]  ;;  %v4820_v39 = vld [vmem:[%s4761_s21 + $0x38] sm:$0xff]  ;;  %v4825_v40 = vld [vmem:[%s4761_s21 + $0x40] sm:$0xff] }
  0x6e   : > { %771 = vmatpush.msra.mxu2 %v758_v21  ;;  %v4830_v41 = vld [vmem:[%s4761_s21 + $0x48] sm:$0xff]  ;;  %v4835_v42 = vld [vmem:[%s4761_s21 + $0x50] sm:$0xff]  ;;  %v4840_v43 = vld [vmem:[%s4761_s21 + $0x58] sm:$0xff] }
  0x6f   : > { %689 = vmatpush.msra.mxu1 %v670_v7  ;;  %v4845_v44 = vld [vmem:[%s4761_s21 + $0x60] sm:$0xff]  ;;  %v592_v45 = vld [vmem:[#allocation7 + $0x78] sm:$0xff]  ;;  %v591_v46 = vld [vmem:[#allocation7 + $0x70] sm:$0xff] }
  0x70   : > { %772 = vmatpush.msra.mxu2 %v757_v22  ;;  %597 = vmatpush.msra.mxu0 %v592_v45  ;;  %v590_v47 = vld [vmem:[#allocation7 + $0x68] sm:$0xff]  ;;  %v589_v49 = vld [vmem:[#allocation7 + $0x60] sm:$0xff]  ;;  %v588_v50 = vld [vmem:[#allocation7 + $0x58] sm:$0xff] }
  0x71   : > { %690 = vmatpush.msra.mxu1 %v669_v8  ;;  %v4850_v48 = vld [vmem:[%s4761_s21 + $0x68] sm:$0xff]  ;;  %v587_v51 = vld [vmem:[#allocation7 + $0x50] sm:$0xff]  ;;  %v585_v54 = vld [vmem:[#allocation7 + $0x40] sm:$0xff] }
  0x72   : > { %773 = vmatpush.msra.mxu2 %v756_v23  ;;  %598 = vmatpush.msra.mxu0 %v591_v46  ;;  %v586_v52 = vld [vmem:[#allocation7 + $0x48] sm:$0xff]  ;;  %v4855_v53 = vld [vmem:[%s4761_s21 + $0x70] sm:$0xff]  ;;  %v584_v55 = vld [vmem:[#allocation7 + $0x38] sm:$0xff] }
  0x73   : > { %691 = vmatpush.msra.mxu1 %v668_v9  ;;  %v583_v56 = vld [vmem:[#allocation7 + $0x30] sm:$0xff]  ;;  %v582_v57 = vld [vmem:[#allocation7 + $0x28] sm:$0xff]  ;;  %v4860_v58 = vld [vmem:[%s4761_s21 + $0x78] sm:$0xff] }
  0x74   : > { %774 = vmatpush.msra.mxu2 %v755_v24  ;;  %599 = vmatpush.msra.mxu0 %v590_v47  ;;  %v581_v59 = vld [vmem:[#allocation7 + $0x20] sm:$0xff]  ;;  %v580_v60 = vld [vmem:[#allocation7 + $0x18] sm:$0xff]  ;;  %v579_v61 = vld [vmem:[#allocation7 + $0x10] sm:$0xff] }
  0x75   : > { %692 = vmatpush.msra.mxu1 %v667_v10  ;;  %v578_v62 = vld [vmem:[#allocation7 + $0x8] sm:$0xff]  ;;  %v577_v0 = vld [vmem:[#allocation7] sm:$0xff] }
  0x76   : > { %775 = vmatpush.msra.mxu2 %v754_v26  ;;  %600 = vmatpush.msra.mxu0 %v589_v49  ;;  %v4889_v7 = vld [vmem:[%s6767_s5] ss:$0 sm:$0xff] }
  0x77   : > { %693 = vmatpush.msra.mxu1 %v666_v11 }
  0x78   : > { %776 = vmatpush.msra.mxu2 %v753_v27  ;;  %601 = vmatpush.msra.mxu0 %v588_v50  ;;  %v5031_v50 = vld [vmem:[%s6765_s3] ss:$0 sm:$0xff] }
  0x79   : > { %694 = vmatpush.msra.mxu1 %v665_v12 }
  0x7a   : > { %777 = vmatpush.msra.mxu2 %v752_v28  ;;  %602 = vmatpush.msra.mxu0 %v587_v51 }
  0x7b   : > { %695 = vmatpush.msra.mxu1 %v664_v14 }
  0x7c   : > { %778 = vmatpush.msra.mxu2 %v751_v29  ;;  %603 = vmatpush.msra.mxu0 %v586_v52 }
  0x7d   : > { %696 = vmatpush.msra.mxu1 %v663_v17 }
  0x7e   : > { %779 = vmatpush.msra.mxu2 %v750_v31  ;;  %604 = vmatpush.msra.mxu0 %v585_v54 }
  0x7f   : > { %697 = vmatpush.msra.mxu1 %v662_v19 }
  0x80   : > { %698 = vmatmul.f32.vlgmr.msra.gmra.mxu1 %v4788_v20  ;;  %780 = vmatpush.msra.mxu2 %v749_v32 }
  0x81   : > { %605 = vmatpush.msra.mxu0 %v584_v55 }
  0x82   : > { %781 = vmatpush.msra.mxu2 %v748_v33 }
  0x83   : > { %606 = vmatpush.msra.mxu0 %v583_v56 }
  0x84   : > { %782 = vmatpush.msra.mxu2 %v747_v34 }
  0x85   : > { %783 = vmatmul.f32.vlgmr.msra.gmra.mxu2 %v4788_v20  ;;  %607 = vmatpush.msra.mxu0 %v582_v57 }
  0x87   : > { %608 = vmatpush.msra.mxu0 %v581_v59 }
  0x88   : > { %701 = vmatmul.f32.gmra.mxu1 %v4792_v25 }
  0x89   : > { %609 = vmatpush.msra.mxu0 %v580_v60 }
  0x8b   : > { %610 = vmatpush.msra.mxu0 %v579_v61 }
  0x8d   : > { %786 = vmatmul.f32.gmra.mxu2 %v4792_v25  ;;  %611 = vmatpush.msra.mxu0 %v578_v62 }
  0x8f   : > { %612 = vmatpush.msra.mxu0 %v577_v0 }
  0x90   : > { %704 = vmatmul.f32.gmra.mxu1 %v4796_v30  ;;  %613 = vmatmul.f32.vlgmr.msra.gmra.mxu0 %v4788_v20 }
  0x95   : > { %789 = vmatmul.f32.gmra.mxu2 %v4796_v30 }
  0x98   : > { %707 = vmatmul.f32.gmra.mxu1 %v4800_v35  ;;  %616 = vmatmul.f32.gmra.mxu0 %v4792_v25 }
  0x9d   : > { %792 = vmatmul.f32.gmra.mxu2 %v4800_v35 }
  0xa0   : > { %710 = vmatmul.f32.gmra.mxu1 %v4805_v36  ;;  %619 = vmatmul.f32.gmra.mxu0 %v4796_v30 }
  0xa5   : > { %795 = vmatmul.f32.gmra.mxu2 %v4805_v36 }
  0xa8   : > { %713 = vmatmul.f32.gmra.mxu1 %v4810_v37  ;;  %622 = vmatmul.f32.gmra.mxu0 %v4800_v35 }
  0xad   : > { %798 = vmatmul.f32.gmra.mxu2 %v4810_v37 }
  0xb0   : > { %716 = vmatmul.f32.gmra.mxu1 %v4815_v38  ;;  %625 = vmatmul.f32.gmra.mxu0 %v4805_v36 }
  0xb5   : > { %801 = vmatmul.f32.gmra.mxu2 %v4815_v38 }
  0xb8   : > { %719 = vmatmul.f32.gmra.mxu1 %v4820_v39  ;;  %628 = vmatmul.f32.gmra.mxu0 %v4810_v37 }
  0xbd   : > { %804 = vmatmul.f32.gmra.mxu2 %v4820_v39 }
  0xc0   : > { %722 = vmatmul.f32.gmra.mxu1 %v4825_v40  ;;  %631 = vmatmul.f32.gmra.mxu0 %v4815_v38 }
  0xc5   : > { %807 = vmatmul.f32.gmra.mxu2 %v4825_v40 }
  0xc8   : > { %725 = vmatmul.f32.gmra.mxu1 %v4830_v41  ;;  %634 = vmatmul.f32.gmra.mxu0 %v4820_v39 }
  0xcd   : > { %810 = vmatmul.f32.gmra.mxu2 %v4830_v41 }
  0xd0   : > { %728 = vmatmul.f32.gmra.mxu1 %v4835_v42  ;;  %637 = vmatmul.f32.gmra.mxu0 %v4825_v40 }
  0xd5   : > { %813 = vmatmul.f32.gmra.mxu2 %v4835_v42 }
  0xd8   : > { %731 = vmatmul.f32.gmra.mxu1 %v4840_v43  ;;  %640 = vmatmul.f32.gmra.mxu0 %v4830_v41 }
  0xdd   : > { %816 = vmatmul.f32.gmra.mxu2 %v4840_v43 }
  0xe0   : > { %734 = vmatmul.f32.gmra.mxu1 %v4845_v44  ;;  %643 = vmatmul.f32.gmra.mxu0 %v4835_v42 }
  0xe5   : > { %819 = vmatmul.f32.gmra.mxu2 %v4845_v44 }
  0xe8   : > { %737 = vmatmul.f32.gmra.mxu1 %v4850_v48  ;;  %646 = vmatmul.f32.gmra.mxu0 %v4840_v43 }
  0xed   : > { %822 = vmatmul.f32.gmra.mxu2 %v4850_v48 }
  0xf0   : > { %740 = vmatmul.f32.gmra.mxu1 %v4855_v53  ;;  %649 = vmatmul.f32.gmra.mxu0 %v4845_v44 }
  0xf5   : > { %825 = vmatmul.f32.gmra.mxu2 %v4855_v53 }
  0xf8   : > { %743 = vmatmul.f32.gmra.mxu1 %v4860_v58  ;;  %652 = vmatmul.f32.gmra.mxu0 %v4850_v48 }
  0xfd   : > { %v4864_v63 = vpop.f32.mrf.mxu1  ;;  %828 = vmatmul.f32.gmra.mxu2 %v4860_v58 }
  0xfe   : > { %v700_v60 = vadd.f32 %v4889_v7, %v4864_v63 }
 0x100   : > { %655 = vmatmul.f32.gmra.mxu0 %v4855_v53  ;;  %v5038_v53 = vld [vmem:[%s6769_s7] ss:$0 sm:$0xff] }
 0x105   : > { %v4868_v1 = vpop.f32.mrf.mxu1 }
 0x106   : > { %v703_v49 = vadd.f32 %v4889_v7, %v4868_v1 }
 0x108   : > { %v4879_v4 = vpop.f32.mrf.mxu2  ;;  %658 = vmatmul.f32.gmra.mxu0 %v4860_v58 }
 0x109   : > { %v5048_v57 = vadd.f32 %v5038_v53, %v4879_v4 }
 0x10d   : > { %v4872_v2 = vpop.f32.mrf.mxu1  ;;  %v614_v43 = vpop.f32.mrf.mxu0 }
 0x10e   : > { %v706_v45 = vadd.f32 %v4889_v7, %v4872_v2  ;;  %v615_v59 = vadd.f32 %v5031_v50, %v614_v43 }
 0x110   : > { %v4884_v6 = vpop.f32.mrf.mxu2 }
 0x111   : > { %v5052_v58 = vadd.f32 %v5038_v53, %v4884_v6 }
 0x113   : > { %v5064_v61 = vpack.i.bf16 %v5048_v57, %v5052_v58 }
 0x115   : > { %v4876_v3 = vpop.f32.mrf.mxu1  ;;  %v617_v47 = vpop.f32.mrf.mxu0 }
 0x116   : > { %v709_v42 = vadd.f32 %v4889_v7, %v4876_v3 }
 0x118   : > { %v4901_v10 = vpop.f32.mrf.mxu2 }
 0x119   : > { %v5087_v6 = vadd.f32 %v5038_v53, %v4901_v10 }
 0x11d   : > { %v4881_v5 = vpop.f32.mrf.mxu1  ;;  %v620_v52 = vpop.f32.mrf.mxu0 }
 0x11e   : > { %v712_v39 = vadd.f32 %v4889_v7, %v4881_v5 }
 0x120   : > { %v4913_v14 = vpop.f32.mrf.mxu2 }
 0x125   : > { %v714_v8 = vpop.f32.mrf.mxu1  ;;  %v623_v63 = vpop.f32.mrf.mxu0 }
 0x126   : > { %v4892_v9 = vadd.f32 %v4889_v7, %v714_v8  ;;  %v618_v8 = vadd.f32 %v5031_v50, %v617_v47 }
 0x128   : > { %1373 = vrot.lane.b32.xlu2 %v4892_v9, %s4529_s8  ;;  %1100 = vrot.lane.b32.xlu1 %v4892_v9, %s4530_s17  ;;  %v4928_v18 = vpop.f32.mrf.mxu2 }
 0x129   : > { %1646 = vrot.lane.b32.xlu0 %v4892_v9, %s4531_s18 }
 0x12d   : > { %v717_v11 = vpop.f32.mrf.mxu1 }
 0x12e   : > { %v4904_v12 = vadd.f32 %v4889_v7, %v717_v11 }
 0x130   : > { %1375 = vrot.lane.b32.xlu2 %v4904_v12, %s4529_s8  ;;  %1102 = vrot.lane.b32.xlu1 %v4904_v12, %s4530_s17  ;;  %v4946_v21 = vpop.f32.mrf.mxu2 }
 0x131   : > { %1648 = vrot.lane.b32.xlu0 %v4904_v12, %s4531_s18 }
 0x135   : > { %v720_v13 = vpop.f32.mrf.mxu1 }
 0x136   : > { %v4916_v15 = vadd.f32 %v4889_v7, %v720_v13 }
 0x138   : > { %1377 = vrot.lane.b32.xlu2 %v4916_v15, %s4529_s8  ;;  %1104 = vrot.lane.b32.xlu1 %v4916_v15, %s4530_s17  ;;  %v4954_v24 = vpop.f32.mrf.mxu2 }
 0x139   : > { %1650 = vrot.lane.b32.xlu0 %v4916_v15, %s4531_s18 }
 0x13d   : > { %v723_v16 = vpop.f32.mrf.mxu1 }
 0x13e   : > { %v4926_v17 = vadd.f32 %v4889_v7, %v723_v16 }
 0x140   : > { %1379 = vrot.lane.b32.xlu2 %v4926_v17, %s4529_s8  ;;  %1106 = vrot.lane.b32.xlu1 %v4926_v17, %s4530_s17  ;;  %v4961_v28 = vpop.f32.mrf.mxu2 }
 0x141   : > { %1652 = vrot.lane.b32.xlu0 %v4926_v17, %s4531_s18 }
 0x145   : > { %v726_v19 = vpop.f32.mrf.mxu1 }
 0x146   : > { %v4938_v20 = vadd.f32 %v4889_v7, %v726_v19 }
 0x148   : > { %1381 = vrot.lane.b32.xlu2 %v4938_v20, %s4529_s8  ;;  %1108 = vrot.lane.b32.xlu1 %v4938_v20, %s4530_s17  ;;  %v4969_v32 = vpop.f32.mrf.mxu2 }
 0x149   : > { %1654 = vrot.lane.b32.xlu0 %v4938_v20, %s4531_s18 }
 0x14d   : > { %v729_v22 = vpop.f32.mrf.mxu1 }
 0x14e   : > { %v730_v23 = vadd.f32 %v4889_v7, %v729_v22 }
 0x150   : > { %1383 = vrot.lane.b32.xlu2 %v730_v23, %s4529_s8  ;;  %1110 = vrot.lane.b32.xlu1 %v730_v23, %s4530_s17  ;;  %v4978_v35 = vpop.f32.mrf.mxu2 }
 0x151   : > { %1656 = vrot.lane.b32.xlu0 %v730_v23, %s4531_s18 }
 0x155   : > { %v732_v25 = vpop.f32.mrf.mxu1 }
 0x156   : > { %v733_v26 = vadd.f32 %v4889_v7, %v732_v25 }
 0x158   : > { %1385 = vrot.lane.b32.xlu2 %v733_v26, %s4529_s8  ;;  %1112 = vrot.lane.b32.xlu1 %v733_v26, %s4530_s17  ;;  %v4987_v38 = vpop.f32.mrf.mxu2 }
 0x159   : > { %1658 = vrot.lane.b32.xlu0 %v733_v26, %s4531_s18 }
 0x15d   : > { %v735_v27 = vpop.f32.mrf.mxu1 }
 0x15e   : > { %v736_v29 = vadd.f32 %v4889_v7, %v735_v27 }
 0x160   : > { %1387 = vrot.lane.b32.xlu2 %v736_v29, %s4529_s8  ;;  %1114 = vrot.lane.b32.xlu1 %v736_v29, %s4530_s17  ;;  %v4999_v41 = vpop.f32.mrf.mxu2 }
 0x161   : > { %1660 = vrot.lane.b32.xlu0 %v736_v29, %s4531_s18 }
 0x165   : > { %v738_v30 = vpop.f32.mrf.mxu1 }
 0x166   : > { %v739_v31 = vadd.f32 %v4889_v7, %v738_v30  ;;  %v624_v30 = vadd.f32 %v5031_v50, %v623_v63 }
 0x168   : > { %1389 = vrot.lane.b32.xlu2 %v739_v31, %s4529_s8  ;;  %1116 = vrot.lane.b32.xlu1 %v739_v31, %s4530_s17  ;;  %v5012_v46 = vpop.f32.mrf.mxu2 }
 0x169   : > { %1662 = vrot.lane.b32.xlu0 %v739_v31, %s4531_s18  ;;  %v5124_v22 = vadd.f32 %v5038_v53, %v5012_v46 }
 0x16d   : > { %v741_v33 = vpop.f32.mrf.mxu1 }
 0x16e   : > { %v742_v34 = vadd.f32 %v4889_v7, %v741_v33  ;;  %v800_v33 = vadd.f32 %v5038_v53, %v4946_v21  ;;  %v806_v21 = vadd.f32 %v5038_v53, %v4961_v28 }
 0x170   : > { %1118 = vrot.lane.b32.xlu2 %v742_v34, %s4530_s17  ;;  %1664 = vrot.lane.b32.xlu1 %v742_v34, %s4531_s18  ;;  %v823_v51 = vpop.f32.mrf.mxu2 }
 0x171   : > { %v5119_v19 = vadd.f32 %v5038_v53, %v823_v51 }
 0x175   : > { %v744_v36 = vpop.f32.mrf.mxu1 }
 0x176   : > { %v745_v37 = vadd.f32 %v4889_v7, %v744_v36  ;;  %v5091_v7 = vadd.f32 %v5038_v53, %v4913_v14  ;;  %v809_v36 = vadd.f32 %v5038_v53, %v4969_v32 }
 0x178   : > { %3514 = vmatpush.xpose.msk.msra.mxu3 %vm832_vm0, %v745_v37  ;;  %1391 = vrot.lane.b32.xlu2 %v742_v34, %s4529_s8  ;;  %v826_v2 = vpop.f32.mrf.mxu2 }
 0x179   : > { %1393 = vrot.lane.b32.xlu1 %v745_v37, %s4529_s8  ;;  %1666 = vrot.lane.b32.xlu0 %v745_v37, %s4531_s18  ;;  %v5113_v16 = vadd.f32 %v5038_v53, %v826_v2 }
 0x17c   : > { %3515 = vmatpush.xpose.msk.msra.mxu3 %vm832_vm0, %v742_v34  ;;  %v812_v34 = vadd.f32 %v5038_v53, %v4978_v35 }
 0x17e   : > { %v5207_v63 = vpack.i.bf16 %v809_v36, %v812_v34 }
 0x180   : > { %3516 = vmatpush.xpose.msk.msra.mxu3 %vm832_vm0, %v739_v31  ;;  %1371 = vrot.lane.b32.xlu2 %v712_v39, %s4529_s8  ;;  %v829_v11 = vpop.f32.mrf.mxu2  ;;  %v797_v31 = vadd.f32 %v5038_v53, %v4928_v18 }
 0x181   : > { %1120 = vrot.lane.b32.xlu0 %v745_v37, %s4530_s17  ;;  %1098 = vrot.lane.b32.xlu1 %v712_v39, %s4530_s17  ;;  %v5104_v10 = vadd.f32 %v5038_v53, %v829_v11 }
 0x182   : > { %v4996_v40 = vpop.permute.xlu2 %1373  ;;  %v5159_v37 = vpack.i.bf16 %v797_v31, %v800_v33 }
 0x184   : > { %3517 = vmatpush.xpose.msk.msra.mxu3 %vm832_vm0, %v736_v29  ;;  %v5143_v29 = vadd.f32 %v5038_v53, %v4987_v38  ;;  %v803_v38 = vadd.f32 %v5038_v53, %v4954_v24 }
 0x186   : > { %v5189_v46 = vpack.i.bf16 %v803_v38, %v806_v21 }
 0x188   : > { %3518 = vmatpush.xpose.msk.msra.mxu3 %vm832_vm0, %v733_v26  ;;  %1369 = vrot.lane.b32.xlu2 %v709_v42, %s4529_s8 }
 0x189   : > { %1644 = vrot.lane.b32.xlu0 %v712_v39, %s4531_s18  ;;  %1096 = vrot.lane.b32.xlu1 %v709_v42, %s4530_s17 }
 0x18a   : > { %v5007_v44 = vpop.permute.xlu2 %1375 }
 0x18c   : > { %3519 = vmatpush.xpose.msk.msra.mxu3 %vm832_vm0, %v730_v23  ;;  %v5132_v23 = vadd.f32 %v5038_v53, %v4999_v41 }
 0x190   : > { %3520 = vmatpush.xpose.msk.msra.mxu3 %vm832_vm0, %v4938_v20  ;;  %1367 = vrot.lane.b32.xlu2 %v706_v45, %s4529_s8 }
 0x191   : > { %1642 = vrot.lane.b32.xlu0 %v709_v42, %s4531_s18  ;;  %1094 = vrot.lane.b32.xlu1 %v706_v45, %s4530_s17 }
 0x192   : > { %v5019_v48 = vpop.permute.xlu2 %1377 }
 0x194   : > { %3521 = vmatpush.xpose.msk.msra.mxu3 %vm832_vm0, %v4926_v17  ;;  %v621_v17 = vadd.f32 %v5031_v50, %v620_v52 }
 0x198   : > { %3522 = vmatpush.xpose.msk.msra.mxu3 %vm832_vm0, %v4916_v15  ;;  %1365 = vrot.lane.b32.xlu2 %v703_v49, %s4529_s8 }
 0x199   : > { %1640 = vrot.lane.b32.xlu0 %v706_v45, %s4531_s18  ;;  %1092 = vrot.lane.b32.xlu1 %v703_v49, %s4530_s17 }
 0x19a   : > { %v5040_v54 = vpop.permute.xlu2 %1379  ;;  %v5042_v55 = vpop.permute.xlu1 %1100 }
 0x19b   : > { %v5044_v56 = vpop.permute.xlu0 %1646 }
 0x19c   : > { %3523 = vmatpush.xpose.msk.msra.mxu3 %vm832_vm0, %v4904_v12  ;;  %v5099_v12 = vpack.i.bf16 %v5087_v6, %v5091_v7 }
 0x1a0   : > { %3524 = vmatpush.xpose.msk.msra.mxu3 %vm832_vm0, %v4892_v9  ;;  %1604 = vrot.lane.b32.xlu2 %v615_v59, %s4531_s18  ;;  %v626_v9 = vpop.f32.mrf.mxu0 }
 0x1a1   : > { %1638 = vrot.lane.b32.xlu0 %v703_v49, %s4531_s18  ;;  %1090 = vrot.lane.b32.xlu1 %v700_v60, %s4530_s17 }
 0x1a2   : > { %v5068_v62 = vpop.permute.xlu2 %1381  ;;  %v5070_v0 = vpop.permute.xlu1 %1102 }
 0x1a3   : > { %v5072_v1 = vpop.permute.xlu0 %1648 }
 0x1a4   : > { %3525 = vmatpush.xpose.msk.msra.mxu3 %vm832_vm0, %v712_v39  ;;  %v627_v39 = vadd.f32 %v5031_v50, %v626_v9 }
 0x1a8   : > { %3526 = vmatpush.xpose.msk.msra.mxu3 %vm832_vm0, %v709_v42  ;;  %1331 = vrot.lane.b32.xlu2 %v615_v59, %s4529_s8  ;;  %v629_v20 = vpop.f32.mrf.mxu0 }
 0x1a9   : > { %1636 = vrot.lane.b32.xlu0 %v700_v60, %s4531_s18  ;;  %1058 = vrot.lane.b32.xlu1 %v615_v59, %s4530_s17  ;;  %v630_v24 = vadd.f32 %v5031_v50, %v629_v20 }
 0x1aa   : > { %v5079_v3 = vpop.permute.xlu2 %1383  ;;  %v5081_v4 = vpop.permute.xlu1 %1104 }
 0x1ab   : > { %v5083_v5 = vpop.permute.xlu0 %1650 }
 0x1ac   : > { %3527 = vmatpush.xpose.msk.msra.mxu3 %vm832_vm0, %v706_v45 }
 0x1b0   : > { %3528 = vmatpush.xpose.msk.msra.mxu3 %vm832_vm0, %v703_v49  ;;  %1333 = vrot.lane.b32.xlu2 %v618_v8, %s4529_s8  ;;  %v632_v18 = vpop.f32.mrf.mxu0 }
 0x1b1   : > { %1363 = vrot.lane.b32.xlu0 %v700_v60, %s4529_s8  ;;  %1060 = vrot.lane.b32.xlu1 %v618_v8, %s4530_s17  ;;  %v633_v51 = vadd.f32 %v5031_v50, %v632_v18 }
 0x1b2   : > { %v5106_v13 = vpop.permute.xlu2 %1385  ;;  %v5108_v14 = vpop.permute.xlu1 %1106 }
 0x1b3   : > { %v5110_v15 = vpop.permute.xlu0 %1652 }
 0x1b4   : > { %3529 = vmatpush.xpose.msk.msra.mxu3 %vm832_vm0, %v700_v60 }
 0x1b7   : > { %3530 = vmatmul.msk.f32.vlgmr.msra.gmra.mxu3 %vm832_vm0, %v615_v59 }
 0x1b8   : > { %2117 = vmatpush.msrb.mxu3 %v5104_v10  ;;  %1335 = vrot.lane.b32.xlu2 %v621_v17, %s4529_s8  ;;  %v635_v43 = vpop.f32.mrf.mxu0 }
 0x1b9   : > { %1606 = vrot.lane.b32.xlu0 %v618_v8, %s4531_s18  ;;  %1062 = vrot.lane.b32.xlu1 %v621_v17, %s4530_s17 }
 0x1ba   : > { %2118 = vmatpush.msrb.mxu3 %v5113_v16  ;;  %v5135_v25 = vpop.permute.xlu2 %1387  ;;  %v5137_v26 = vpop.permute.xlu1 %1108 }
 0x1bb   : > { %v5139_v27 = vpop.permute.xlu0 %1654 }
 0x1bc   : > { %2119 = vmatpush.msrb.mxu3 %v5119_v19 }
 0x1be   : > { %2120 = vmatpush.msrb.mxu3 %v5124_v22 }
 0x1bf   : > { %3531 = vmatmul.msk.f32.gmra.mxu3 %vm832_vm0, %v618_v8 }
 0x1c0   : > { %2121 = vmatpush.msrb.mxu3 %v5132_v23  ;;  %1337 = vrot.lane.b32.xlu2 %v624_v30, %s4529_s8  ;;  %v638_v52 = vpop.f32.mrf.mxu0 }
 0x1c1   : > { %1608 = vrot.lane.b32.xlu0 %v621_v17, %s4531_s18  ;;  %1064 = vrot.lane.b32.xlu1 %v624_v30, %s4530_s17  ;;  %v639_v8 = vadd.f32 %v5031_v50, %v638_v52 }
 0x1c2   : > { %2122 = vmatpush.msrb.mxu3 %v5143_v29  ;;  %v5165_v35 = vpop.permute.xlu2 %1389  ;;  %v5167_v32 = vpop.permute.xlu1 %1110 }
 0x1c3   : > { %v5172_v41 = vpop.permute.xlu0 %1656 }
 0x1c4   : > { %2123 = vmatpush.msrb.mxu3 %v812_v34 }
 0x1c6   : > { %2124 = vmatpush.msrb.mxu3 %v809_v36 }
 0x1c7   : > { %3532 = vmatmul.msk.f32.gmra.mxu3 %vm832_vm0, %v621_v17 }
 0x1c8   : > { %2125 = vmatpush.msrb.mxu3 %v806_v21  ;;  %1339 = vrot.lane.b32.xlu2 %v627_v39, %s4529_s8 }
 0x1c9   : > { %1610 = vrot.lane.b32.xlu0 %v624_v30, %s4531_s18  ;;  %1066 = vrot.lane.b32.xlu1 %v627_v39, %s4530_s17 }
 0x1ca   : > { %2126 = vmatpush.msrb.mxu3 %v803_v38  ;;  %v5178_v28 = vpop.permute.xlu2 %1118  ;;  %v5180_v42 = vpop.permute.xlu1 %1112 }
 0x1cb   : > { %v5184_v45 = vpop.permute.xlu0 %1658 }
 0x1cc   : > { %2127 = vmatpush.msrb.mxu3 %v800_v33 }
 0x1ce   : > { %2128 = vmatpush.msrb.mxu3 %v797_v31  ;;  %v5228_v31 = vpack.i.bf16 %v5143_v29, %v5132_v23 }
 0x1cf   : > { %3533 = vmatmul.msk.f32.gmra.mxu3 %vm832_vm0, %v624_v30 }
 0x1d0   : > { %2129 = vmatpush.msrb.mxu3 %v5091_v7  ;;  %1341 = vrot.lane.b32.xlu2 %v630_v24, %s4529_s8 }
 0x1d1   : > { %1612 = vrot.lane.b32.xlu0 %v627_v39, %s4531_s18  ;;  %1068 = vrot.lane.b32.xlu1 %v630_v24, %s4530_s17 }
 0x1d2   : > { %2130 = vmatpush.msrb.mxu3 %v5087_v6  ;;  %v1392_v47 = vpop.permute.xlu2 %1391  ;;  %v5194_v49 = vpop.permute.xlu1 %1114 }
 0x1d3   : > { %v1661_v53 = vpop.permute.xlu0 %1660 }
 0x1d4   : > { %2131 = vmatpush.msrb.mxu3 %v5052_v58  ;;  %v636_v58 = vadd.f32 %v5031_v50, %v635_v43 }
 0x1d6   : > { %2132 = vmatpush.msrb.mxu3 %v5048_v57  ;;  %v641_v57 = vpop.f32.mrf.mxu0 }
 0x1d7   : > { %3534 = vmatmul.msk.f32.gmra.mxu3 %vm832_vm0, %v627_v39  ;;  %v642_v30 = vadd.f32 %v5031_v50, %v641_v57 }
 0x1d8   : > { %1343 = vrot.lane.b32.xlu2 %v633_v51, %s4529_s8 }
 0x1d9   : > { %1614 = vrot.lane.b32.xlu0 %v630_v24, %s4531_s18  ;;  %1070 = vrot.lane.b32.xlu1 %v633_v51, %s4530_s17 }
 0x1da   : > { %v1117_v59 = vpop.permute.xlu1 %1116  ;;  %v5202_v60 = vpop.permute.xlu2 %1371 }
 0x1db   : > { %v1663_v7 = vpop.permute.xlu0 %1662 }
 0x1de   : > { %v644_v11 = vpop.f32.mrf.mxu0 }
 0x1df   : > { %3535 = vmatmul.msk.f32.gmra.mxu3 %vm832_vm0, %v630_v24  ;;  %v645_v23 = vadd.f32 %v5031_v50, %v644_v11 }
 0x1e0   : > { %1345 = vrot.lane.b32.xlu2 %v636_v58, %s4529_s8 }
 0x1e1   : > { %1616 = vrot.lane.b32.xlu0 %v633_v51, %s4531_s18  ;;  %1072 = vrot.lane.b32.xlu1 %v636_v58, %s4530_s17 }
 0x1e2   : > { %v1665_v2 = vpop.permute.xlu1 %1664  ;;  %v5211_v6 = vpop.permute.xlu2 %1369 }
 0x1e6   : > { %v647_v18 = vpop.f32.mrf.mxu0 }
 0x1e7   : > { %3536 = vmatmul.msk.f32.gmra.mxu3 %vm832_vm0, %v633_v51 }
 0x1e8   : > { %1347 = vrot.lane.b32.xlu2 %v639_v8, %s4529_s8 }
 0x1e9   : > { %1618 = vrot.lane.b32.xlu0 %v636_v58, %s4531_s18  ;;  %1074 = vrot.lane.b32.xlu1 %v639_v8, %s4530_s17 }
 0x1ea   : > { %v5218_v9 = vpop.permute.xlu2 %1367 }
 0x1eb   : > { %v1394_v17 = vpop.permute.xlu1 %1393  ;;  %v1667_v20 = vpop.permute.xlu0 %1666 }
 0x1ec   : > { %3578 = vmatpush.xpose.msk.msrb.mxu1 %vm832_vm0, %v1394_v17  ;;  %3610 = vmatpush.xpose.msk.msrb.mxu2 %vm832_vm0, %v1667_v20 }
 0x1ee   : > { %v650_v38 = vpop.f32.mrf.mxu0 }
 0x1ef   : > { %3537 = vmatmul.msk.f32.gmra.mxu3 %vm832_vm0, %v636_v58 }
 0x1f0   : > { %3579 = vmatpush.xpose.msk.msrb.mxu1 %vm832_vm0, %v1392_v47  ;;  %3611 = vmatpush.xpose.msk.msrb.mxu2 %vm832_vm0, %v1665_v2 }
 0x1f1   : > { %1620 = vrot.lane.b32.xlu0 %v639_v8, %s4531_s18  ;;  %1076 = vrot.lane.b32.xlu1 %v642_v30, %s4530_s17 }
 0x1f2   : > { %1349 = vrot.lane.b32.xlu2 %v642_v30, %s4529_s8  ;;  %v5233_v33 = vpop.permute.xlu2 %1365 }
 0x1f3   : > { %v1121_v34 = vpop.permute.xlu0 %1120  ;;  %v5235_v36 = vpop.permute.xlu1 %1098 }
 0x1f4   : > { %3546 = vmatpush.xpose.msk.msrb.mxu0 %vm832_vm0, %v1121_v34  ;;  %3580 = vmatpush.xpose.msk.msrb.mxu1 %vm832_vm0, %v5165_v35 }
 0x1f5   : > { %3612 = vmatpush.xpose.msk.msrb.mxu2 %vm832_vm0, %v1663_v7 }
 0x1f7   : > { %3538 = vmatmul.msk.f32.gmra.mxu3 %vm832_vm0, %v639_v8 }
 0x1f8   : > { %3547 = vmatpush.xpose.msk.msrb.mxu0 %vm832_vm0, %v5178_v28  ;;  %3581 = vmatpush.xpose.msk.msrb.mxu1 %vm832_vm0, %v5135_v25  ;;  %v648_v25 = vadd.f32 %v5031_v50, %v647_v18 }
 0x1f9   : > { %3613 = vmatpush.xpose.msk.msrb.mxu2 %vm832_vm0, %v1661_v53  ;;  %1622 = vrot.lane.b32.xlu0 %v642_v30, %s4531_s18 }
 0x1fa   : > { %1078 = vrot.lane.b32.xlu1 %v645_v23, %s4530_s17  ;;  %1351 = vrot.lane.b32.xlu2 %v645_v23, %s4529_s8  ;;  %v5251_v29 = vpop.permute.xlu2 %1604 }
 0x1fb   : > { %v1645_v21 = vpop.permute.xlu0 %1644  ;;  %v5253_v35 = vpop.permute.xlu1 %1096 }
 0x1fc   : > { %3548 = vmatpush.xpose.msk.msrb.mxu0 %vm832_vm0, %v1117_v59  ;;  %3582 = vmatpush.xpose.msk.msrb.mxu1 %vm832_vm0, %v5106_v13  ;;  %v3853_v59 = vpack.i.bf16 %v5113_v16, %v5104_v10 }
 0x1fd   : > { %3614 = vmatpush.xpose.msk.msrb.mxu2 %vm832_vm0, %v5184_v45 }
 0x1ff   : > { %3539 = vmatmul.msk.f32.gmra.mxu3 %vm832_vm0, %v642_v30 }
 0x200   : > { %3549 = vmatpush.xpose.msk.msrb.mxu0 %vm832_vm0, %v5194_v49  ;;  %3583 = vmatpush.xpose.msk.msrb.mxu1 %vm832_vm0, %v5079_v3  ;;  %v651_v3 = vadd.f32 %v5031_v50, %v650_v38 }
 0x201   : > { %3615 = vmatpush.xpose.msk.msrb.mxu2 %vm832_vm0, %v5172_v41  ;;  %1624 = vrot.lane.b32.xlu0 %v645_v23, %s4531_s18  ;;  %v653_v41 = vpop.f32.mrf.mxu0 }
 0x202   : > { %1080 = vrot.lane.b32.xlu1 %v648_v25, %s4530_s17  ;;  %1353 = vrot.lane.b32.xlu2 %v648_v25, %s4529_s8  ;;  %v5271_v13 = vpop.permute.xlu2 %1331 }
 0x203   : > { %v1643_v39 = vpop.permute.xlu0 %1642  ;;  %v5273_v28 = vpop.permute.xlu1 %1094 }
 0x204   : > { %3550 = vmatpush.xpose.msk.msrb.mxu0 %vm832_vm0, %v5180_v42  ;;  %3584 = vmatpush.xpose.msk.msrb.mxu1 %vm832_vm0, %v5068_v62 }
 0x205   : > { %3616 = vmatpush.xpose.msk.msrb.mxu2 %vm832_vm0, %v5139_v27 }
 0x207   : > { %3540 = vmatmul.msk.f32.gmra.mxu3 %vm832_vm0, %v645_v23 }
 0x208   : > { %3551 = vmatpush.xpose.msk.msrb.mxu0 %vm832_vm0, %v5167_v32  ;;  %3585 = vmatpush.xpose.msk.msrb.mxu1 %vm832_vm0, %v5040_v54  ;;  %v654_v54 = vadd.f32 %v5031_v50, %v653_v41 }
 0x209   : > { %3617 = vmatpush.xpose.msk.msrb.mxu2 %vm832_vm0, %v5110_v15  ;;  %1626 = vrot.lane.b32.xlu0 %v648_v25, %s4531_s18 }
 0x20a   : > { %1082 = vrot.lane.b32.xlu1 %v651_v3, %s4530_s17  ;;  %1355 = vrot.lane.b32.xlu2 %v651_v3, %s4529_s8  ;;  %v5292_v62 = vpop.permute.xlu2 %1333 }
 0x20b   : > { %v1641_v27 = vpop.permute.xlu0 %1640  ;;  %v1093_v42 = vpop.permute.xlu1 %1092 }
 0x20c   : > { %3552 = vmatpush.xpose.msk.msrb.mxu0 %vm832_vm0, %v5137_v26  ;;  %3586 = vmatpush.xpose.msk.msrb.mxu1 %vm832_vm0, %v5019_v48 }
 0x20d   : > { %3618 = vmatpush.xpose.msk.msrb.mxu2 %vm832_vm0, %v5083_v5  ;;  %v656_v5 = vpop.f32.mrf.mxu0 }
 0x20f   : > { %3541 = vmatmul.msk.f32.gmra.mxu3 %vm832_vm0, %v648_v25 }
 0x210   : > { %3553 = vmatpush.xpose.msk.msrb.mxu0 %vm832_vm0, %v5108_v14  ;;  %3587 = vmatpush.xpose.msk.msrb.mxu1 %vm832_vm0, %v5007_v44  ;;  %v657_v44 = vadd.f32 %v5031_v50, %v656_v5 }
 0x211   : > { %3619 = vmatpush.xpose.msk.msrb.mxu2 %vm832_vm0, %v5072_v1  ;;  %1628 = vrot.lane.b32.xlu0 %v651_v3, %s4531_s18 }
 0x212   : > { %1084 = vrot.lane.b32.xlu1 %v654_v54, %s4530_s17  ;;  %1357 = vrot.lane.b32.xlu2 %v654_v54, %s4529_s8  ;;  %v5311_v48 = vpop.permute.xlu2 %1335 }
 0x213   : > { %v1639_v15 = vpop.permute.xlu0 %1638  ;;  %v1091_v26 = vpop.permute.xlu1 %1090 }
 0x214   : > { %3554 = vmatpush.xpose.msk.msrb.mxu0 %vm832_vm0, %v5081_v4  ;;  %3588 = vmatpush.xpose.msk.msrb.mxu1 %vm832_vm0, %v4996_v40 }
 0x215   : > { %3620 = vmatpush.xpose.msk.msrb.mxu2 %vm832_vm0, %v5044_v56 }
 0x217   : > { %3542 = vmatmul.msk.f32.gmra.mxu3 %vm832_vm0, %v651_v3 }
 0x218   : > { %3555 = vmatpush.xpose.msk.msrb.mxu0 %vm832_vm0, %v5070_v0  ;;  %3589 = vmatpush.xpose.msk.msrb.mxu1 %vm832_vm0, %v5202_v60  ;;  %v3803_v0 = vpack.i.bf16 %v5124_v22, %v5119_v19  ;;  %v659_v19 = vpop.f32.mrf.mxu0 }
 0x219   : > { %3621 = vmatpush.xpose.msk.msrb.mxu2 %vm832_vm0, %v1645_v21  ;;  %1630 = vrot.lane.b32.xlu0 %v654_v54, %s4531_s18  ;;  %v660_v43 = vadd.f32 %v5031_v50, %v659_v19 }
 0x21a   : > { %1086 = vrot.lane.b32.xlu1 %v657_v44, %s4530_s17  ;;  %1359 = vrot.lane.b32.xlu2 %v657_v44, %s4529_s8  ;;  %v5329_v40 = vpop.permute.xlu2 %1337 }
 0x21b   : > { %v1637_v56 = vpop.permute.xlu0 %1636  ;;  %v1059_v1 = vpop.permute.xlu1 %1058 }
 0x21c   : > { %3556 = vmatpush.xpose.msk.msrb.mxu0 %vm832_vm0, %v5042_v55  ;;  %3590 = vmatpush.xpose.msk.msrb.mxu1 %vm832_vm0, %v5211_v6 }
 0x21d   : > { %3622 = vmatpush.xpose.msk.msrb.mxu2 %vm832_vm0, %v1643_v39 }
 0x21f   : > { %3543 = vmatmul.msk.f32.gmra.mxu3 %vm832_vm0, %v654_v54 }
 0x220   : > { %3557 = vmatpush.xpose.msk.msrb.mxu0 %vm832_vm0, %v5235_v36  ;;  %3591 = vmatpush.xpose.msk.msrb.mxu1 %vm832_vm0, %v5218_v9 }
 0x221   : > { %3623 = vmatpush.xpose.msk.msrb.mxu2 %vm832_vm0, %v1641_v27  ;;  %1632 = vrot.lane.b32.xlu0 %v657_v44, %s4531_s18 }
 0x222   : > { %3804 = vrot.lane.b32.xlu1 %v3803_v0, %s4530_s17  ;;  %3799 = vrot.lane.b32.xlu2 %v3803_v0, %s4531_s18  ;;  %v1340_v55 = vpop.permute.xlu2 %1339 }
 0x223   : > { %v1364_v4 = vpop.permute.xlu0 %1363  ;;  %v1061_v14 = vpop.permute.xlu1 %1060 }
 0x224   : > { %3558 = vmatpush.xpose.msk.msrb.mxu0 %vm832_vm0, %v5253_v35  ;;  %3592 = vmatpush.xpose.msk.msrb.mxu1 %vm832_vm0, %v5233_v33 }
 0x225   : > { %3624 = vmatpush.xpose.msk.msrb.mxu2 %vm832_vm0, %v1639_v15 }
 0x227   : > { %3544 = vmatmul.msk.f32.gmra.mxu3 %vm832_vm0, %v657_v44 }
 0x228   : > { %3559 = vmatpush.xpose.msk.msrb.mxu0 %vm832_vm0, %v5273_v28  ;;  %3593 = vmatpush.xpose.msk.msrb.mxu1 %vm832_vm0, %v1364_v4 }
 0x229   : > { %3625 = vmatpush.xpose.msk.msrb.mxu2 %vm832_vm0, %v1637_v56  ;;  %3814 = vrot.lane.b32.xlu0 %v3803_v0, %s4529_s8  ;;  %v5483_v0 = vld [vmem:[%s4769_s16] sm:$0xff] }
 0x22a   : > { %3819 = vrot.lane.b32.xlu1 %v5228_v31, %s4530_s17  ;;  %3809 = vrot.lane.b32.xlu2 %v5228_v31, %s4531_s18  ;;  %v1342_v22 = vpop.permute.xlu2 %1341 }
 0x22b   : > { %v1607_v32 = vpop.permute.xlu0 %1606  ;;  %v1063_v24 = vpop.permute.xlu1 %1062  ;;  %3594 = vmatmul.msk.f32.vlgmr.msrb.gmra.mxu1 %vm832_vm0, %v5271_v13 }
 0x22c   : > { %3626 = vmatmul.msk.f32.vlgmr.msrb.gmra.mxu2 %vm832_vm0, %v5251_v29  ;;  %3560 = vmatpush.xpose.msk.msrb.mxu0 %vm832_vm0, %v1093_v42 }
 0x22f   : > { %3545 = vmatmul.msk.f32.gmra.mxu3 %vm832_vm0, %v660_v43 }
 0x230   : > { %3561 = vmatpush.xpose.msk.msrb.mxu0 %vm832_vm0, %v1091_v26 }
 0x231   : > { %1634 = vrot.lane.b32.xlu0 %v660_v43, %s4531_s18 }
 0x232   : > { %1088 = vrot.lane.b32.xlu1 %v660_v43, %s4530_s17  ;;  %1361 = vrot.lane.b32.xlu2 %v660_v43, %s4529_s8  ;;  %v1344_v45 = vpop.permute.xlu2 %1343 }
 0x233   : > { %v1609_v47 = vpop.permute.xlu0 %1608  ;;  %3562 = vmatmul.msk.f32.vlgmr.msrb.gmra.mxu0 %vm832_vm0, %v1059_v1  ;;  %v1065_v50 = vpop.permute.xlu1 %1064  ;;  %3595 = vmatmul.msk.f32.gmra.mxu1 %vm832_vm0, %v5292_v62 }
 0x234   : > { %3627 = vmatmul.msk.f32.gmra.mxu2 %vm832_vm0, %v1607_v32 }
 0x239   : > { %3829 = vrot.lane.b32.xlu0 %v5228_v31, %s4529_s8 }
 0x23a   : > { %3834 = vrot.lane.b32.xlu1 %v5207_v63, %s4530_s17  ;;  %3824 = vrot.lane.b32.xlu2 %v5207_v63, %s4531_s18  ;;  %v1346_v49 = vpop.permute.xlu2 %1345  ;;  %v5383_v51 = vpop.f32.mrf.mxu3 }
 0x23b   : > { %v1611_v52 = vpop.permute.xlu0 %1610  ;;  %3563 = vmatmul.msk.f32.gmra.mxu0 %vm832_vm0, %v1061_v14  ;;  %v1067_v53 = vpop.permute.xlu1 %1066  ;;  %3596 = vmatmul.msk.f32.gmra.mxu1 %vm832_vm0, %v5311_v48  ;;  %v994_v1 = vmul.f32 0.17677669, %v5383_v51  ;;  %v5489_v14 = vld [vmem:[%s4769_s16 + $0x8] sm:$0xff]  ;;  %v5506_v51 = vld [vmem:[%s4769_s16 + $0x20] sm:$0xff] }
 0x23c   : > { %3628 = vmatmul.msk.f32.gmra.mxu2 %vm832_vm0, %v1609_v47 }
 0x23d   : > { %v1010_v43 = vadd.f32 %v994_v1, %v5483_v0 }
 0x241   : > { %3844 = vrot.lane.b32.xlu0 %v5207_v63, %s4529_s8 }
 0x242   : > { %3854 = vrot.lane.b32.xlu1 %v3853_v59, %s4530_s17  ;;  %3839 = vrot.lane.b32.xlu2 %v5189_v46, %s4531_s18  ;;  %v1348_v60 = vpop.permute.xlu2 %1347  ;;  %v5396_v58 = vpop.f32.mrf.mxu3 }
 0x243   : > { %v1613_v57 = vpop.permute.xlu0 %1612  ;;  %3564 = vmatmul.msk.f32.gmra.mxu0 %vm832_vm0, %v1063_v24  ;;  %v1069_v2 = vpop.permute.xlu1 %1068  ;;  %3597 = vmatmul.msk.f32.gmra.mxu1 %vm832_vm0, %v5329_v40 }
 0x244   : > { %3629 = vmatmul.msk.f32.gmra.mxu2 %vm832_vm0, %v1611_v52 }
 0x249   : > { %3849 = vrot.lane.b32.xlu0 %v3853_v59, %s4531_s18 }
 0x24a   : > { %3859 = vrot.lane.b32.xlu1 %v5189_v46, %s4530_s17  ;;  %3864 = vrot.lane.b32.xlu2 %v5159_v37, %s4531_s18  ;;  %v5407_v10 = vpop.f32.mrf.mxu3 }
 0x24b   : > { %v1615_v16 = vpop.permute.xlu0 %1614  ;;  %3565 = vmatmul.msk.f32.gmra.mxu0 %vm832_vm0, %v1065_v50  ;;  %v1071_v63 = vpop.permute.xlu1 %1070  ;;  %3598 = vmatmul.msk.f32.gmra.mxu1 %vm832_vm0, %v1340_v55  ;;  %v995_v55 = vmul.f32 0.17677669, %v5396_v58  ;;  %v996_v19 = vmul.f32 0.17677669, %v5407_v10  ;;  %v1026_v10 = vmul.f32 1.442695, %v1010_v43 }
 0x24c   : > { %3630 = vmatmul.msk.f32.gmra.mxu2 %vm832_vm0, %v1613_v57  ;;  %v1350_v6 = vpop.permute.xlu2 %1349  ;;  %v5516_v57 = vld [vmem:[%s4769_s16 + $0x30] sm:$0xff] }
 0x24d   : > { %4044 = vpow2.f32 %v1026_v10 }
 0x251   : > { %3869 = vrot.lane.b32.xlu0 %v3853_v59, %s4529_s8  ;;  %v5511_v59 = vld [vmem:[%s4769_s16 + $0x28] sm:$0xff] }
 0x252   : > { %3879 = vrot.lane.b32.xlu1 %v5159_v37, %s4530_s17  ;;  %3884 = vrot.lane.b32.xlu2 %v5099_v12, %s4531_s18  ;;  %v5417_v7 = vpop.f32.mrf.mxu3 }
 0x253   : > { %v1617_v8 = vpop.permute.xlu0 %1616  ;;  %3566 = vmatmul.msk.f32.gmra.mxu0 %vm832_vm0, %v1067_v53  ;;  %v1073_v9 = vpop.permute.xlu1 %1072  ;;  %3599 = vmatmul.msk.f32.gmra.mxu1 %vm832_vm0, %v1342_v22  ;;  %v5493_v22 = vld [vmem:[%s4769_s16 + $0x10] sm:$0xff]  ;;  %v997_v32 = vmul.f32 0.17677669, %v5417_v7 }
 0x254   : > { %3631 = vmatmul.msk.f32.gmra.mxu2 %vm832_vm0, %v1615_v16  ;;  %v1352_v11 = vpop.permute.xlu2 %1351  ;;  %v1012_v53 = vadd.f32 %v996_v19, %v5493_v22  ;;  %v5546_v19 = vpop.eup %4044 }
 0x259   : > { %3874 = vrot.lane.b32.xlu0 %v5189_v46, %s4529_s8 }
 0x25a   : > { %3894 = vrot.lane.b32.xlu1 %v5099_v12, %s4530_s17  ;;  %3899 = vrot.lane.b32.xlu2 %v5064_v61, %s4531_s18  ;;  %v5428_v17 = vpop.f32.mrf.mxu3 }
 0x25b   : > { %v1619_v20 = vpop.permute.xlu0 %1618  ;;  %3567 = vmatmul.msk.f32.gmra.mxu0 %vm832_vm0, %v1069_v2  ;;  %v1075_v30 = vpop.permute.xlu1 %1074  ;;  %3600 = vmatmul.msk.f32.gmra.mxu1 %vm832_vm0, %v1344_v45  ;;  %v5500_v45 = vld [vmem:[%s4769_s16 + $0x18] sm:$0xff]  ;;  %v998_v47 = vmul.f32 0.17677669, %v5428_v17  ;;  %v5524_v17 = vld [vmem:[%s4769_s16 + $0x40] sm:$0xff] }
 0x25c   : > { %3632 = vmatmul.msk.f32.gmra.mxu2 %vm832_vm0, %v1617_v8  ;;  %v1354_v31 = vpop.permute.xlu2 %1353  ;;  %v1013_v58 = vadd.f32 %v997_v32, %v5500_v45 }
 0x25d   : > { %v1014_v16 = vadd.f32 %v998_v47, %v5506_v51 }
 0x261   : > { %3889 = vrot.lane.b32.xlu0 %v5159_v37, %s4529_s8 }
 0x262   : > { %3909 = vrot.lane.b32.xlu1 %v5064_v61, %s4530_s17  ;;  %3914 = vrot.lane.b32.xlu2 %v5064_v61, %s4529_s8  ;;  %v5439_v46 = vpop.f32.mrf.mxu3 }
 0x263   : > { %v1621_v33 = vpop.permute.xlu0 %1620  ;;  %3568 = vmatmul.msk.f32.gmra.mxu0 %vm832_vm0, %v1071_v63  ;;  %v1077_v34 = vpop.permute.xlu1 %1076  ;;  %3601 = vmatmul.msk.f32.gmra.mxu1 %vm832_vm0, %v1346_v49  ;;  %v1011_v49 = vadd.f32 %v995_v55, %v5489_v14  ;;  %v999_v52 = vmul.f32 0.17677669, %v5439_v46  ;;  %v5520_v63 = vld [vmem:[%s4769_s16 + $0x38] sm:$0xff]  ;;  %v1032_v46 = vmul.f32 1.442695, %v1013_v58 }
 0x264   : > { %3633 = vmatmul.msk.f32.gmra.mxu2 %vm832_vm0, %v1619_v20  ;;  %v1356_v36 = vpop.permute.xlu2 %1355  ;;  %v1030_v20 = vmul.f32 1.442695, %v1012_v53 }
 0x269   : > { %3904 = vrot.lane.b32.xlu0 %v5099_v12, %s4529_s8 }
 0x26a   : > { %v5448_v61 = vpop.f32.mrf.mxu3 }
 0x26b   : > { %v1623_v37 = vpop.permute.xlu0 %1622  ;;  %3569 = vmatmul.msk.f32.gmra.mxu0 %vm832_vm0, %v1073_v9  ;;  %3602 = vmatmul.msk.f32.gmra.mxu1 %vm832_vm0, %v1348_v60  ;;  %v1000_v60 = vmul.f32 0.17677669, %v5448_v61  ;;  %v1028_v9 = vmul.f32 1.442695, %v1011_v49  ;;  %v1034_v61 = vmul.f32 1.442695, %v1014_v16 }
 0x26c   : > { %v1079_v18 = vpop.permute.xlu1 %1078  ;;  %3634 = vmatmul.msk.f32.gmra.mxu2 %vm832_vm0, %v1621_v33  ;;  %v1358_v23 = vpop.permute.xlu2 %1357  ;;  %v573_v49 = vld [vmem:[%s4769_s16 + $0x60] sm:$0xff] }
 0x26d   : > { %4046 = vpow2.f32 %v1028_v9 }
 0x26e   : > { %4048 = vpow2.f32 %v1030_v20 }
 0x26f   : > { %4050 = vpow2.f32 %v1032_v46 }
 0x270   : > { %4052 = vpow2.f32 %v1034_v61 }
 0x272   : > { %v967_v35 = vpop.f32.mrf.mxu3 }
 0x273   : > { %v1625_v29 = vpop.permute.xlu0 %1624  ;;  %3570 = vmatmul.msk.f32.gmra.mxu0 %vm832_vm0, %v1075_v30  ;;  %3603 = vmatmul.msk.f32.gmra.mxu1 %vm832_vm0, %v1350_v6  ;;  %v1001_v2 = vmul.f32 0.17677669, %v967_v35  ;;  %v1016_v30 = vadd.f32 %v1000_v60, %v5516_v57  ;;  %v5548_v47 = vpop.eup %4046 }
 0x274   : > { %v1081_v21 = vpop.permute.xlu1 %1080  ;;  %3635 = vmatmul.msk.f32.gmra.mxu2 %vm832_vm0, %v1623_v37  ;;  %v1360_v12 = vpop.permute.xlu2 %1359 }
 0x275   : > { %v1017_v33 = vadd.f32 %v1001_v2, %v5520_v63  ;;  %v5556_v58 = vpop.eup %4048 }
 0x27a   : > { %v970_v39 = vpop.f32.mrf.mxu3 }
 0x27b   : > { %v1627_v25 = vpop.permute.xlu0 %1626  ;;  %3571 = vmatmul.msk.f32.gmra.mxu0 %vm832_vm0, %v1077_v34  ;;  %3604 = vmatmul.msk.f32.gmra.mxu1 %vm832_vm0, %v1352_v11  ;;  %v1002_v6 = vmul.f32 0.17677669, %v970_v39  ;;  %v1015_v11 = vadd.f32 %v999_v52, %v5511_v59  ;;  %v5529_v34 = vld [vmem:[%s4769_s16 + $0x48] sm:$0xff] }
 0x27c   : > { %v1083_v38 = vpop.permute.xlu1 %1082  ;;  %3636 = vmatmul.msk.f32.gmra.mxu2 %vm832_vm0, %v1625_v29  ;;  %v5457_v13 = vpop.permute.xlu2 %3799 }
 0x27d   : > { %v3801_v2 = vunpack.i.l.bf16 %v5457_v13 }
 0x282   : > { %v973_v62 = vpop.f32.mrf.mxu3 }
 0x283   : > { %v1629_v28 = vpop.permute.xlu0 %1628  ;;  %3572 = vmatmul.msk.f32.gmra.mxu0 %vm832_vm0, %v1079_v18  ;;  %3605 = vmatmul.msk.f32.gmra.mxu1 %vm832_vm0, %v1354_v31  ;;  %v1003_v31 = vmul.f32 0.17677669, %v973_v62  ;;  %v1018_v18 = vadd.f32 %v1002_v6, %v5524_v17 }
 0x284   : > { %v1085_v3 = vpop.permute.xlu1 %1084  ;;  %3637 = vmatmul.msk.f32.gmra.mxu2 %vm832_vm0, %v1627_v25  ;;  %v5462_v41 = vpop.permute.xlu2 %3809  ;;  %v1038_v25 = vmul.f32 1.442695, %v1016_v30 }
 0x285   : > { %v3812_v10 = vunpack.i.h.bf16 %v5462_v41 }
 0x28a   : > { %v976_v5 = vpop.f32.mrf.mxu3 }
 0x28b   : > { %v1631_v27 = vpop.permute.xlu0 %1630  ;;  %3573 = vmatmul.msk.f32.gmra.mxu0 %vm832_vm0, %v1081_v21  ;;  %3606 = vmatmul.msk.f32.gmra.mxu1 %vm832_vm0, %v1356_v36  ;;  %v1036_v21 = vmul.f32 1.442695, %v1015_v11 }
 0x28c   : > { %v1087_v42 = vpop.permute.xlu1 %1086  ;;  %3638 = vmatmul.msk.f32.gmra.mxu2 %vm832_vm0, %v1629_v28  ;;  %v1362_v54 = vpop.permute.xlu2 %1361  ;;  %v1040_v28 = vmul.f32 1.442695, %v1017_v33 }
 0x28d   : > { %4054 = vpow2.f32 %v1036_v21 }
 0x28e   : > { %4056 = vpow2.f32 %v1038_v25 }
 0x28f   : > { %4058 = vpow2.f32 %v1040_v28 }
 0x292   : > { %v979_v56 = vpop.f32.mrf.mxu3 }
 0x293   : > { %v1633_v48 = vpop.permute.xlu0 %1632  ;;  %3574 = vmatmul.msk.f32.gmra.mxu0 %vm832_vm0, %v1083_v38  ;;  %3607 = vmatmul.msk.f32.gmra.mxu1 %vm832_vm0, %v1358_v23  ;;  %v1004_v23 = vmul.f32 0.17677669, %v976_v5  ;;  %v1019_v38 = vadd.f32 %v1003_v31, %v5529_v34  ;;  %v1005_v39 = vmul.f32 0.17677669, %v979_v56 }
 0x294   : > { %v5469_v15 = vpop.permute.xlu1 %3804  ;;  %3639 = vmatmul.msk.f32.gmra.mxu2 %vm832_vm0, %v1631_v27  ;;  %v5472_v26 = vpop.permute.xlu2 %3824  ;;  %v1042_v27 = vmul.f32 1.442695, %v1018_v18  ;;  %v3811_v18 = vunpack.i.l.bf16 %v5462_v41 }
 0x295   : > { %v1044_v56 = vmul.f32 1.442695, %v1019_v38  ;;  %v3806_v28 = vunpack.i.l.bf16 %v5469_v15 }
 0x296   : > { %4060 = vpow2.f32 %v1042_v27 }
 0x297   : > { %4062 = vpow2.f32 %v1044_v56 }
 0x29a   : > { %v982_v7 = vpop.f32.mrf.mxu3 }
 0x29b   : > { %v5474_v44 = vpop.permute.xlu0 %3814  ;;  %3575 = vmatmul.msk.f32.gmra.mxu0 %vm832_vm0, %v1085_v3  ;;  %3608 = vmatmul.msk.f32.gmra.mxu1 %vm832_vm0, %v1360_v12  ;;  %v5540_v12 = vld [vmem:[%s4769_s16 + $0x50] sm:$0xff]  ;;  %v572_v3 = vld [vmem:[%s4769_s16 + $0x58] sm:$0xff] }
 0x29c   : > { %v5478_v40 = vpop.permute.xlu1 %3819  ;;  %3640 = vmatmul.msk.f32.gmra.mxu2 %vm832_vm0, %v1633_v48  ;;  %v5486_v4 = vpop.permute.xlu2 %3839  ;;  %v1021_v32 = vadd.f32 %v1005_v39, %v572_v3  ;;  %v3807_v39 = vunpack.i.h.bf16 %v5469_v15  ;;  %v3817_v15 = vunpack.i.h.bf16 %v5474_v44 }
 0x29e   : > { %v1048_v31 = vmul.f32 1.442695, %v1021_v32 }
 0x2a2   : > { %v985_v43 = vpop.f32.mrf.mxu3 }
 0x2a3   : > { %v1635_v24 = vpop.permute.xlu0 %1634  ;;  %3576 = vmatmul.msk.f32.gmra.mxu0 %vm832_vm0, %v1087_v42  ;;  %3609 = vmatmul.msk.f32.gmra.mxu1 %vm832_vm0, %v1362_v54  ;;  %v1020_v42 = vadd.f32 %v1004_v23, %v5540_v12  ;;  %v1007_v33 = vmul.f32 0.17677669, %v985_v43  ;;  %v574_v23 = vld [vmem:[%s4769_s16 + $0x68] sm:$0xff] }
 0x2a4   : > { %v1089_v50 = vpop.permute.xlu1 %1088  ;;  %3641 = vmatmul.msk.f32.gmra.mxu2 %vm832_vm0, %v1635_v24  ;;  %v5531_v36 = vpop.permute.xlu2 %3864  ;;  %v1006_v24 = vmul.f32 0.17677669, %v982_v7 }
 0x2a5   : > { %v1046_v16 = vmul.f32 1.442695, %v1020_v42  ;;  %v5560_v7 = vpop.eup %4050  ;;  %v1023_v32 = vadd.f32 %v1007_v33, %v574_v23 }
 0x2a6   : > { %v5564_v30 = vpop.eup %4052  ;;  %v1022_v46 = vadd.f32 %v1006_v24, %v573_v49 }
 0x2a7   : > { %v5566_v61 = vpop.eup %4054 }
 0x2a8   : > { %v1476_v8 = vpop.f32.mrf.mxu1  ;;  %v5570_v38 = vpop.eup %4056  ;;  %v1050_v56 = vmul.f32 1.442695, %v1022_v46 }
 0x2a9   : > { %v1524_v35 = vmul.f32 0.17677669, %v1476_v8  ;;  %v5574_v42 = vpop.eup %4058 }
 0x2ab   : > { %v5533_v37 = vpop.permute.xlu0 %3829  ;;  %3577 = vmatmul.msk.f32.gmra.mxu0 %vm832_vm0, %v1089_v50  ;;  %v1540_v1 = vadd.f32 %v1524_v35, %v5483_v0  ;;  %v3802_v50 = vunpack.i.h.bf16 %v5457_v13 }
 0x2ac   : > { %v5537_v29 = vpop.permute.xlu1 %3834  ;;  %v5562_v9 = vpop.permute.xlu2 %3884 }
 0x2ad   : > { %v1556_v8 = vmul.f32 1.442695, %v1540_v1  ;;  %v5578_v1 = vpop.eup %4060 }
 0x2af   : > { %v1749_v62 = vpop.f32.mrf.mxu2 }
 0x2b0   : > { %v1797_v54 = vmul.f32 0.17677669, %v1749_v62  ;;  %v1203_v48 = vpop.f32.mrf.mxu0  ;;  %v1479_v5 = vpop.f32.mrf.mxu1 }
 0x2b1   : > { %v1251_v55 = vmul.f32 0.17677669, %v1203_v48  ;;  %v1525_v20 = vmul.f32 0.17677669, %v1479_v5 }
 0x2b2   : > { %v1813_v52 = vadd.f32 %v1797_v54, %v5483_v0  ;;  %v3827_v54 = vunpack.i.h.bf16 %v5472_v26 }
 0x2b3   : > { %v1267_v53 = vadd.f32 %v1251_v55, %v5483_v0  ;;  %v5554_v60 = vpop.permute.xlu0 %3844  ;;  %v1541_v48 = vadd.f32 %v1525_v20, %v5489_v14  ;;  %v3826_v55 = vunpack.i.l.bf16 %v5472_v26 }
 0x2b4   : > { %v3855_v6 = vpop.permute.xlu1 %3854  ;;  %v1829_v21 = vmul.f32 1.442695, %v1813_v52  ;;  %v5584_v52 = vpop.eup %4062 }
 0x2b5   : > { %v1283_v11 = vmul.f32 1.442695, %v1267_v53  ;;  %v3856_v0 = vunpack.i.l.bf16 %v3855_v6  ;;  %v3857_v35 = vunpack.i.h.bf16 %v3855_v6  ;;  %v3816_v53 = vunpack.i.l.bf16 %v5474_v44 }
 0x2b6   : > { %v3821_v6 = vunpack.i.l.bf16 %v5478_v40  ;;  %v1558_v46 = vmul.f32 1.442695, %v1541_v48 }
 0x2b7   : > { %4064 = vpow2.f32 %v1283_v11  ;;  %v1752_v25 = vpop.f32.mrf.mxu2  ;;  %2262 = vmatpush.msra.mxu0 %v3856_v0 }
 0x2b8   : > { %4066 = vpow2.f32 %v1046_v16  ;;  %v1798_v3 = vmul.f32 0.17677669, %v1752_v25  ;;  %v1206_v62 = vpop.f32.mrf.mxu0  ;;  %v1482_v27 = vpop.f32.mrf.mxu1  ;;  %v3822_v16 = vunpack.i.h.bf16 %v5478_v40 }
 0x2b9   : > { %4068 = vpow2.f32 %v1556_v8  ;;  %v1252_v5 = vmul.f32 0.17677669, %v1206_v62  ;;  %2263 = vmatpush.msra.mxu0 %v3857_v35  ;;  %v988_v8 = vpop.f32.mrf.mxu3  ;;  %v1526_v33 = vmul.f32 0.17677669, %v1482_v27  ;;  %v5601_v62 = vpop.permute.xlu2 %3899 }
 0x2ba   : > { %4070 = vpow2.f32 %v1048_v31  ;;  %v1814_v24 = vadd.f32 %v1798_v3, %v5489_v14  ;;  %v1008_v3 = vmul.f32 0.17677669, %v988_v8 }
 0x2bb   : > { %4072 = vpow2.f32 %v1829_v21  ;;  %v1268_v43 = vadd.f32 %v1252_v5, %v5489_v14  ;;  %2264 = vmatpush.msra.mxu0 %v3806_v28  ;;  %v3850_v49 = vpop.permute.xlu0 %3849  ;;  %v1052_v21 = vmul.f32 1.442695, %v1023_v32  ;;  %v3841_v28 = vunpack.i.l.bf16 %v5486_v4  ;;  %v575_v32 = vld [vmem:[%s4769_s16 + $0x70] sm:$0xff] }
 0x2bc   : > { %v3851_v11 = vunpack.i.l.bf16 %v3850_v49  ;;  %v5589_v20 = vpop.permute.xlu1 %3859  ;;  %4074 = vpow2.f32 %v1050_v56  ;;  %v3852_v35 = vunpack.i.h.bf16 %v3850_v49  ;;  %v1831_v48 = vmul.f32 1.442695, %v1814_v24 }
 0x2bd   : > { %v5591_v0 = vpop.eup %4064  ;;  %v1285_v14 = vmul.f32 1.442695, %v1268_v43  ;;  %2265 = vmatpush.msra.mxu0 %v3807_v39  ;;  %v3836_v24 = vunpack.i.l.bf16 %v5537_v29  ;;  %v3837_v5 = vunpack.i.h.bf16 %v5537_v29  ;;  %v3831_v29 = vunpack.i.l.bf16 %v5533_v37 }
 0x2be   : > { %v5594_v23 = vpop.eup %4066  ;;  %v1315_v40 = vadd.f32 %v5591_v0, %v5546_v19  ;;  %2520 = vmatpush.msra.mxu2 %v3851_v11 }
 0x2bf   : > { %v5598_v25 = vpop.eup %4068  ;;  %4076 = vpow2.f32 %v1285_v14  ;;  %v1755_v39 = vpop.f32.mrf.mxu2  ;;  %2266 = vmatpush.msra.mxu0 %v3821_v6  ;;  %v1542_v6 = vadd.f32 %v1526_v33, %v5493_v22 }
 0x2c0   : > { %v5603_v27 = vpop.eup %4070  ;;  %v1588_v43 = vadd.f32 %v5598_v25, %v1315_v40  ;;  %v1799_v49 = vmul.f32 0.17677669, %v1755_v39  ;;  %v1209_v11 = vpop.f32.mrf.mxu0  ;;  %2521 = vmatpush.msra.mxu2 %v3852_v35  ;;  %4078 = vpow2.f32 %v1558_v46  ;;  %v1024_v35 = vadd.f32 %v1008_v3, %v575_v32 }
 0x2c1   : > { %v1485_v31 = vpop.f32.mrf.mxu1  ;;  %v5609_v8 = vpop.eup %4072  ;;  %v1253_v14 = vmul.f32 0.17677669, %v1209_v11  ;;  %2267 = vmatpush.msra.mxu0 %v3822_v16  ;;  %4080 = vpow2.f32 %v1052_v21 }
 0x2c2   : > { %v5615_v56 = vadd.f32 %v5609_v8, %v1588_v43  ;;  %v1527_v40 = vmul.f32 0.17677669, %v1485_v31  ;;  %2522 = vmatpush.msra.mxu2 %v3801_v2  ;;  %4082 = vpow2.f32 %v1831_v48  ;;  %v1815_v39 = vadd.f32 %v1799_v49, %v5493_v22  ;;  %v5621_v11 = vpop.eup %4074 }
 0x2c3   : > { %v1269_v46 = vadd.f32 %v1253_v14, %v5493_v22  ;;  %2268 = vmatpush.msra.mxu0 %v3836_v24  ;;  %v3870_v33 = vpop.permute.xlu0 %3869  ;;  %v1560_v22 = vmul.f32 1.442695, %v1542_v6  ;;  %v3861_v48 = vunpack.i.l.bf16 %v5589_v20  ;;  %v3862_v6 = vunpack.i.h.bf16 %v5589_v20 }
 0x2c4   : > { %4084 = vrcp.f32 %v5615_v56  ;;  %v3871_v31 = vunpack.i.l.bf16 %v3870_v33  ;;  %v3880_v21 = vpop.permute.xlu1 %3879  ;;  %2523 = vmatpush.msra.mxu2 %v3802_v50  ;;  %v1543_v24 = vadd.f32 %v1527_v40, %v5500_v45  ;;  %v3872_v14 = vunpack.i.h.bf16 %v3870_v33 }
 0x2c5   : > { %v5628_v2 = vpop.eup %4076  ;;  %v1287_v32 = vmul.f32 1.442695, %v1269_v46  ;;  %2269 = vmatpush.msra.mxu0 %v3837_v5  ;;  %v5640_v50 = vmul.f32 1.442695, %v1024_v35  ;;  %v1833_v46 = vmul.f32 1.442695, %v1815_v39  ;;  %v3846_v40 = vunpack.i.l.bf16 %v5554_v60  ;;  %v5652_v35 = vpop.permute.xlu2 %3914 }
 0x2c6   : > { %v1316_v49 = vadd.f32 %v5628_v2, %v5548_v47  ;;  %2391 = vmatpush.msra.mxu1 %v3871_v31  ;;  %2524 = vmatpush.msra.mxu2 %v3811_v18  ;;  %v5638_v13 = vpop.eup %4078  ;;  %v3881_v39 = vunpack.i.l.bf16 %v3880_v21  ;;  %vm1882_vm1 = vweird.f32 %v5615_v56 }
 0x2c7   : > { %4086 = vpow2.f32 %v1287_v32  ;;  %v1758_v5 = vpop.f32.mrf.mxu2  ;;  %2270 = vmatpush.msra.mxu0 %v3861_v48  ;;  %v5643_v3 = vpop.eup %4080 }
 0x2c8   : > { %v1589_v33 = vadd.f32 %v5638_v13, %v1316_v49  ;;  %v1800_v31 = vmul.f32 0.17677669, %v1758_v5  ;;  %v1212_v18 = vpop.f32.mrf.mxu0  ;;  %2392 = vmatpush.msra.mxu1 %v3872_v14  ;;  %2525 = vmatpush.msra.mxu2 %v3812_v10  ;;  %v5650_v20 = vpop.eup %4082  ;;  %4088 = vpow2.f32 %v1560_v22  ;;  %v1562_v14 = vmul.f32 1.442695, %v1543_v24 }
 0x2c9   : > { %v1488_v16 = vpop.f32.mrf.mxu1  ;;  %v1254_v48 = vmul.f32 0.17677669, %v1212_v18  ;;  %2271 = vmatpush.msra.mxu0 %v3862_v6  ;;  %4090 = vpow2.f32 %v1833_v46  ;;  %v3882_v10 = vunpack.i.h.bf16 %v3880_v21  ;;  %v3901_v24 = vunpack.i.l.bf16 %v5601_v62 }
 0x2ca   : > { %v1528_v32 = vmul.f32 0.17677669, %v1488_v16  ;;  %v5654_v43 = vpop.eup %4084  ;;  %v5658_v5 = vadd.f32 %v5650_v20, %v1589_v33  ;;  %v1816_v41 = vadd.f32 %v1800_v31, %v5500_v45  ;;  %2393 = vmatpush.msra.mxu1 %v3816_v53  ;;  %2526 = vmatpush.msra.mxu2 %v3826_v55  ;;  %v6824_v49 = vunpack.i.l.bf16 %v5652_v35 }
 0x2cb   : > { %v1270_v16 = vadd.f32 %v1254_v48, %v5500_v45  ;;  %2272 = vmatpush.msra.mxu0 %v3881_v39  ;;  %v5666_v22 = vpop.permute.xlu0 %3874  ;;  %v1878_v6 = vmul.f32 %v5654_v43, %v5615_v56  ;;  %v1886_v45 = vand.u32 2147483647, %v5615_v56  ;;  %vm1883_vm3 = vweird.f32 %v5654_v43 }
 0x2cc   : > { %4092 = vrcp.f32 %v5658_v5  ;;  %v3895_v53 = vpop.permute.xlu1 %3894  ;;  %2394 = vmatpush.msra.mxu1 %v3817_v15  ;;  %2527 = vmatpush.msra.mxu2 %v3827_v54  ;;  %v1544_v31 = vadd.f32 %v1528_v32, %v5506_v51  ;;  %v1835_v44 = vmul.f32 1.442695, %v1816_v41  ;;  %v1888_v32 = vand.u32 2147483648, %v5615_v56  ;;  %vm1884_vm4 = vmor %vm1882_vm1, %vm1883_vm3 }
 0x2cd   : > { %v5678_v55 = vpop.eup %4086  ;;  %v1289_v46 = vmul.f32 1.442695, %v1270_v16  ;;  %v3896_v18 = vunpack.i.l.bf16 %v3895_v53  ;;  %2273 = vmatpush.msra.mxu0 %v3882_v10  ;;  %4094 = vpow2.f32 %v1562_v14  ;;  %v1879_v26 = vsub.f32 1.0, %v1878_v6 }
 0x2ce   : > { %v1317_v39 = vadd.f32 %v5678_v55, %v5556_v58  ;;  %2395 = vmatpush.msra.mxu1 %v3831_v29  ;;  %2528 = vmatpush.msra.mxu2 %v3841_v28  ;;  %v5688_v54 = vpop.eup %4088  ;;  %v3897_v15 = vunpack.i.h.bf16 %v3895_v53  ;;  %v6810_v29 = vunpack.i.h.bf16 %v5533_v37  ;;  %v6811_v28 = vunpack.i.h.bf16 %v5486_v4 }
 0x2cf   : > { %4096 = vpow2.f32 %v1289_v46  ;;  %v1761_v48 = vpop.f32.mrf.mxu2  ;;  %2274 = vmatpush.msra.mxu0 %v3896_v18  ;;  %v1880_v6 = vmul.f32 %v5654_v43, %v1879_v26  ;;  %vm5698_vm2 = vcmp.eq.f32.partialorder %v1886_v45, 8.507059e+37  ;;  %v5702_v46 = vpop.eup %4090  ;;  %v1564_v18 = vmul.f32 1.442695, %v1544_v31 }
 0x2d0   : > { %v1590_v14 = vadd.f32 %v5688_v54, %v1317_v39  ;;  %v1801_v41 = vmul.f32 0.17677669, %v1761_v48  ;;  %v1215_v10 = vpop.f32.mrf.mxu0  ;;  %2396 = vmatpush.msra.mxu1 %v6810_v29  ;;  %2529 = vmatpush.msra.mxu2 %v6811_v28  ;;  %v1902_v39 = vand.u32 2147483648, %v5658_v5  ;;  %4098 = vpow2.f32 %v1835_v44 }
 0x2d1   : > { %v1491_v16 = vpop.f32.mrf.mxu1  ;;  %v1255_v33 = vmul.f32 0.17677669, %v1215_v10  ;;  %2275 = vmatpush.msra.mxu0 %v3897_v15  ;;  %v6814_v45 = vunpack.i.l.bf16 %v5531_v36  ;;  %v1881_v31 = vadd.f32 %v5654_v43, %v1880_v6  ;;  %v1900_v44 = vand.u32 2147483647, %v5658_v5 }
 0x2d2   : > { %v5706_v37 = vpop.eup %4092  ;;  %v5709_v4 = vadd.f32 %v5702_v46, %v1590_v14  ;;  %v1529_v26 = vmul.f32 0.17677669, %v1491_v16  ;;  %2397 = vmatpush.msra.mxu1 %v3846_v40  ;;  %v1817_v15 = vadd.f32 %v1801_v41, %v5506_v51  ;;  %v3877_v40 = vunpack.i.h.bf16 %v5666_v22 }
 0x2d3   : > { %2530 = vmatpush.msra.mxu2 %v6814_v45  ;;  %v1271_v48 = vadd.f32 %v1255_v33, %v5506_v51  ;;  %v5718_v10 = vpop.permute.xlu0 %3889  ;;  %v1892_v14 = vmul.f32 %v5706_v37, %v5658_v5  ;;  %v5723_v16 = vpop.eup %4094  ;;  %v3876_v29 = vunpack.i.l.bf16 %v5666_v22  ;;  %v6815_v41 = vunpack.i.h.bf16 %v5554_v60 }
 0x2d4   : > { %4100 = vrcp.f32 %v5709_v4  ;;  %v3910_v28 = vpop.permute.xlu1 %3909  ;;  %v6816_v51 = vunpack.i.h.bf16 %v5531_v36  ;;  %v1889_v33 = vor.u32 1.1754944e-38, %v1888_v32  ;;  %vm1896_vm5 = vweird.f32 %v5658_v5 }
 0x2d5   : > { %2398 = vmatpush.msra.mxu1 %v6815_v41  ;;  %v5732_v6 = vpop.eup %4096  ;;  %4102 = vpow2.f32 %v1564_v18  ;;  %v1291_v45 = vmul.f32 1.442695, %v1271_v48  ;;  %v3911_v21 = vunpack.i.l.bf16 %v3910_v28  ;;  %v5739_v22 = vor.u32 1.1754944e-38, %v1902_v39 }
 0x2d6   : > { %2531 = vmatpush.msra.mxu2 %v6816_v51  ;;  %v1318_v60 = vadd.f32 %v5732_v6, %v5560_v7  ;;  %v1545_v36 = vadd.f32 %v1529_v26, %v5511_v59  ;;  %v6817_v32 = vunpack.i.l.bf16 %v5562_v9  ;;  %v1885_v18 = vsel %vm1884_vm4, %v5654_v43, %v1881_v31  ;;  %v5755_v26 = vpop.eup %4098 }
 0x2d7   : > { %2399 = vmatpush.msra.mxu1 %v3876_v29  ;;  %v1893_v48 = vsub.f32 1.0, %v1892_v14  ;;  %v1837_v41 = vmul.f32 1.442695, %v1817_v15  ;;  %4104 = vpow2.f32 %v1291_v45  ;;  %v3912_v56 = vunpack.i.h.bf16 %v3910_v28  ;;  %v1764_v51 = vpop.f32.mrf.mxu2  ;;  %2276 = vmatpush.msra.mxu0 %v3911_v21 }
 0x2d8   : > { %2532 = vmatpush.msra.mxu2 %v6817_v32  ;;  %v5749_v39 = vsel %vm5698_vm2, %v1889_v33, %v1885_v18  ;;  %vm5751_vm6 = vcmp.eq.f32.partialorder %v1900_v44, 8.507059e+37  ;;  %v1591_v29 = vadd.f32 %v5723_v16, %v1318_v60  ;;  %v3891_v43 = vunpack.i.l.bf16 %v5718_v10  ;;  %v1218_v14 = vpop.f32.mrf.mxu0 }
 0x2d9   : > { %v1802_v31 = vmul.f32 0.17677669, %v1764_v51  ;;  %v2101_v15 = vmul.f32 %v5546_v19, %v5749_v39  ;;  %v1494_v21 = vpop.f32.mrf.mxu1  ;;  %2400 = vmatpush.msra.mxu1 %v3877_v40  ;;  %v6820_v53 = vunpack.i.h.bf16 %v5562_v9  ;;  %v3892_v44 = vunpack.i.h.bf16 %v5718_v10  ;;  %2277 = vmatpush.msra.mxu0 %v3912_v56 }
 0x2da   : > { %v1256_v28 = vmul.f32 0.17677669, %v1218_v14  ;;  %v1530_v33 = vmul.f32 0.17677669, %v1494_v21  ;;  %v2182_v45 = vmul.f32 %v5591_v0, %v5749_v39  ;;  %v5766_v60 = vpop.eup %4100  ;;  %v5769_v32 = vadd.f32 %v5755_v26, %v1591_v29 }
 0x2db   : > { %2533 = vmatpush.msra.mxu2 %v6820_v53  ;;  %v1566_v19 = vmul.f32 1.442695, %v1545_v36  ;;  %2133 = vmatmul.f32.vlgmr.msrb.gmra.mxu3 %v2101_v15  ;;  %v1894_v40 = vmul.f32 %v5706_v37, %v1893_v48  ;;  %v1914_v9 = vand.u32 2147483647, %v5709_v4  ;;  %v5773_v18 = vpop.eup %4102  ;;  %4106 = vpow2.f32 %v1837_v41  ;;  %v3905_v0 = vpop.permute.xlu0 %3904 }
 0x2dc   : > { %2401 = vmatpush.msra.mxu1 %v3891_v43  ;;  %v1818_v10 = vadd.f32 %v1802_v31, %v5511_v59  ;;  %v1272_v56 = vadd.f32 %v1256_v28, %v5511_v59  ;;  %2278 = vmatmul.f32.vlgmr.msra.gmra.mxu0 %v2182_v45  ;;  %vm1897_vm7 = vweird.f32 %v5706_v37  ;;  %4108 = vrcp.f32 %v5769_v32 }
 0x2dd   : > { %2534 = vmatpush.msra.mxu2 %v3901_v24  ;;  %v1546_v36 = vadd.f32 %v1530_v33, %v5516_v57  ;;  %v3906_v48 = vunpack.i.l.bf16 %v3905_v0  ;;  %v2456_v41 = vmul.f32 %v5609_v8, %v5749_v39  ;;  %v5784_v51 = vpop.eup %4104  ;;  %v6821_v59 = vunpack.i.h.bf16 %v5601_v62  ;;  %vm1898_vm9 = vmor %vm1896_vm5, %vm1897_vm7 }
 0x2de   : > { %2402 = vmatpush.msra.mxu1 %v3892_v44  ;;  %v1293_v29 = vmul.f32 1.442695, %v1272_v56  ;;  %v1895_v24 = vadd.f32 %v5706_v37, %v1894_v40  ;;  %v1906_v43 = vmul.f32 %v5766_v60, %v5709_v4  ;;  %vm1910_vm8 = vweird.f32 %v5709_v4 }
 0x2df   : > { %2535 = vmatpush.msra.mxu2 %v6821_v59  ;;  %v1319_v31 = vadd.f32 %v5784_v51, %v5564_v30  ;;  %4110 = vpow2.f32 %v1566_v19  ;;  %v3907_v15 = vunpack.i.h.bf16 %v3905_v0  ;;  %vm5798_vm10 = vcmp.eq.f32.partialorder %v1914_v9, 8.507059e+37  ;;  %v1767_v14 = vpop.f32.mrf.mxu2 }
 0x2e0   : > { %2536 = vmatmul.f32.vlgmr.msra.gmra.mxu2 %v2456_v41  ;;  %2403 = vmatpush.msra.mxu1 %v3906_v48  ;;  %v1839_v8 = vmul.f32 1.442695, %v1818_v10  ;;  %4112 = vpow2.f32 %v1293_v29  ;;  %v1899_v21 = vsel %vm1898_vm9, %v5706_v37, %v1895_v24  ;;  %v1907_v53 = vsub.f32 1.0, %v1906_v43  ;;  %v1221_v5 = vpop.f32.mrf.mxu0 }
 0x2e1   : > { %v1592_v44 = vadd.f32 %v5773_v18, %v1319_v31  ;;  %v1568_v28 = vmul.f32 1.442695, %v1546_v36  ;;  %v1803_v33 = vmul.f32 0.17677669, %v1767_v14  ;;  %v1904_v45 = vsel %vm5751_vm6, %v5739_v22, %v1899_v21  ;;  %v1497_v19 = vpop.f32.mrf.mxu1  ;;  %v5807_v40 = vpop.eup %4106 }
 0x2e2   : > { %2404 = vmatpush.msra.mxu1 %v3907_v15  ;;  %v2102_v9 = vmul.f32 %v5548_v47, %v1904_v45  ;;  %v1257_v10 = vmul.f32 0.17677669, %v1221_v5  ;;  %v2183_v56 = vmul.f32 %v5628_v2, %v1904_v45  ;;  %v1916_v37 = vand.u32 2147483648, %v5709_v4  ;;  %v5812_v0 = vpop.eup %4108 }
 0x2e3   : > { %v5815_v36 = vadd.f32 %v5807_v40, %v1592_v44  ;;  %v1531_v48 = vmul.f32 0.17677669, %v1497_v19  ;;  %v1908_v22 = vmul.f32 %v5766_v60, %v1907_v53  ;;  %vm1911_vm11 = vweird.f32 %v5766_v60 }
 0x2e4   : > { %2405 = vmatpush.msra.mxu1 %v6824_v49  ;;  %4114 = vpow2.f32 %v1839_v8  ;;  %v1819_v47 = vadd.f32 %v1803_v33, %v5516_v57  ;;  %2136 = vmatmul.f32.gmra.mxu3 %v2102_v9  ;;  %v1273_v2 = vadd.f32 %v1257_v10, %v5516_v57  ;;  %v2327_v41 = vmul.f32 %v5598_v25, %v5749_v39  ;;  %vm1912_vm12 = vmor %vm1910_vm8, %vm1911_vm11 }
 0x2e5   : > { %2281 = vmatmul.f32.gmra.mxu0 %v2183_v56  ;;  %v5825_v29 = vpop.eup %4110  ;;  %4116 = vrcp.f32 %v5815_v36  ;;  %v6825_v59 = vunpack.i.h.bf16 %v5652_v35  ;;  %v2457_v24 = vmul.f32 %v5650_v20, %v1904_v45  ;;  %v1909_v43 = vadd.f32 %v5766_v60, %v1908_v22 }
 0x2e6   : > { %v1920_v31 = vmul.f32 %v5812_v0, %v5769_v32  ;;  %v5834_v15 = vpop.eup %4112  ;;  %4118 = vpow2.f32 %v1568_v28  ;;  %v1295_v57 = vmul.f32 1.442695, %v1273_v2  ;;  %v1917_v25 = vor.u32 1.1754944e-38, %v1916_v37 }
 0x2e7   : > { %2406 = vmatpush.msra.mxu1 %v6825_v59  ;;  %vm1924_vm13 = vweird.f32 %v5769_v32  ;;  %v1320_v20 = vadd.f32 %v5834_v15, %v5566_v61  ;;  %v1547_v35 = vadd.f32 %v1531_v48, %v5520_v63  ;;  %v1913_v39 = vsel %vm1912_vm12, %v5766_v60, %v1909_v43  ;;  %v1770_v21 = vpop.f32.mrf.mxu2 }
 0x2e8   : > { %2407 = vmatmul.f32.vlgmr.msra.gmra.mxu1 %v2327_v41  ;;  %2539 = vmatmul.f32.gmra.mxu2 %v2457_v24  ;;  %v1921_v8 = vsub.f32 1.0, %v1920_v31  ;;  %v1841_v14 = vmul.f32 1.442695, %v1819_v47  ;;  %4120 = vpow2.f32 %v1295_v57  ;;  %v5847_v53 = vsel %vm5798_vm10, %v1917_v25, %v1913_v39  ;;  %v1224_v5 = vpop.f32.mrf.mxu0 }
 0x2e9   : > { %v1928_v4 = vand.u32 2147483647, %v5769_v32  ;;  %v1593_v44 = vadd.f32 %v5825_v29, %v1320_v20  ;;  %v1804_v28 = vmul.f32 0.17677669, %v1770_v21  ;;  %v2103_v33 = vmul.f32 %v5556_v58, %v5847_v53  ;;  %v1500_v19 = vpop.f32.mrf.mxu1 }
 0x2ea   : > { %v2328_v60 = vmul.f32 %v5638_v13, %v1904_v45  ;;  %v5854_v9 = vpop.eup %4114  ;;  %v1258_v10 = vmul.f32 0.17677669, %v1224_v5  ;;  %v1532_v56 = vmul.f32 0.17677669, %v1500_v19  ;;  %v2184_v62 = vmul.f32 %v5678_v55, %v5847_v53 }
 0x2eb   : > { %v1930_v37 = vand.u32 2147483648, %v5769_v32  ;;  %v5859_v48 = vpop.eup %4116  ;;  %v5862_v49 = vadd.f32 %v5854_v9, %v1593_v44  ;;  %v1570_v22 = vmul.f32 1.442695, %v1547_v35  ;;  %v1922_v58 = vmul.f32 %v5812_v0, %v1921_v8 }
 0x2ec   : > { %vm1925_vm14 = vweird.f32 %v5812_v0  ;;  %v5866_v13 = vpop.eup %4118  ;;  %4122 = vpow2.f32 %v1841_v14  ;;  %v1820_v45 = vadd.f32 %v1804_v28, %v5520_v63  ;;  %2139 = vmatmul.f32.gmra.mxu3 %v2103_v33  ;;  %v1274_v55 = vadd.f32 %v1258_v10, %v5520_v63 }
 0x2ed   : > { %2284 = vmatmul.f32.gmra.mxu0 %v2184_v62  ;;  %v2458_v47 = vmul.f32 %v5702_v46, %v5847_v53  ;;  %4124 = vrcp.f32 %v5862_v49  ;;  %v1548_v2 = vadd.f32 %v1532_v56, %v5524_v17  ;;  %v1923_v41 = vadd.f32 %v5812_v0, %v1922_v58  ;;  %vm1926_vm15 = vmor %vm1924_vm13, %vm1925_vm14 }
 0x2ee   : > { %v1934_v59 = vmul.f32 %v5859_v48, %v5815_v36  ;;  %v5877_v24 = vpop.eup %4120  ;;  %4126 = vpow2.f32 %v5640_v50  ;;  %v1297_v43 = vmul.f32 1.442695, %v1274_v55  ;;  %vm1929_vm1 = vcmp.eq.f32.partialorder %v1928_v4, 8.507059e+37 }
 0x2ef   : > { %v1931_v63 = vor.u32 1.1754944e-38, %v1930_v37  ;;  %v1321_v46 = vadd.f32 %v5877_v24, %v5570_v38  ;;  %4128 = vpow2.f32 %v1570_v22  ;;  %v1927_v31 = vsel %vm1926_vm15, %v5812_v0, %v1923_v41  ;;  %v1773_v50 = vpop.f32.mrf.mxu2 }
 0x2f0   : > { %2410 = vmatmul.f32.gmra.mxu1 %v2328_v60  ;;  %2542 = vmatmul.f32.gmra.mxu2 %v2458_v47  ;;  %v1935_v57 = vsub.f32 1.0, %v1934_v59  ;;  %v1843_v25 = vmul.f32 1.442695, %v1820_v45  ;;  %4130 = vpow2.f32 %v1297_v43  ;;  %vm1938_vm2 = vweird.f32 %v5815_v36  ;;  %v1227_v14 = vpop.f32.mrf.mxu0 }
 0x2f1   : > { %v1932_v20 = vsel %vm1929_vm1, %v1931_v63, %v1927_v31  ;;  %v1594_v35 = vadd.f32 %v5866_v13, %v1321_v46  ;;  %v1572_v32 = vmul.f32 1.442695, %v1548_v2  ;;  %v1805_v39 = vmul.f32 0.17677669, %v1773_v50  ;;  %v1503_v21 = vpop.f32.mrf.mxu1 }
 0x2f2   : > { %v2104_v8 = vmul.f32 %v5560_v7, %v1932_v20  ;;  %v5890_v4 = vpop.eup %4122  ;;  %v1259_v44 = vmul.f32 0.17677669, %v1227_v14  ;;  %v2185_v0 = vmul.f32 %v5732_v6, %v1932_v20  ;;  %v1942_v28 = vand.u32 2147483647, %v5815_v36 }
 0x2f3   : > { %v1944_v33 = vand.u32 2147483648, %v5815_v36  ;;  %v5895_v5 = vpop.eup %4124  ;;  %v5898_v19 = vadd.f32 %v5890_v4, %v1594_v35  ;;  %v1533_v60 = vmul.f32 0.17677669, %v1503_v21  ;;  %v1936_v10 = vmul.f32 %v5859_v48, %v1935_v57 }
 0x2f4   : > { %vm1939_vm3 = vweird.f32 %v5859_v48  ;;  %v5902_v7 = vpop.eup %4126  ;;  %4132 = vpow2.f32 %v1843_v25  ;;  %v1821_v56 = vadd.f32 %v1805_v39, %v5524_v17  ;;  %2142 = vmatmul.f32.gmra.mxu3 %v2104_v8  ;;  %v1275_v6 = vadd.f32 %v1259_v44, %v5524_v17 }
 0x2f5   : > { %2287 = vmatmul.f32.gmra.mxu0 %v2185_v0  ;;  %v2329_v62 = vmul.f32 %v5688_v54, %v5847_v53  ;;  %v5908_v37 = vpop.eup %4128  ;;  %4134 = vrcp.f32 %v5898_v19  ;;  %v2459_v22 = vmul.f32 %v5755_v26, %v1932_v20  ;;  %v1937_v58 = vadd.f32 %v5859_v48, %v1936_v10  ;;  %vm1940_vm5 = vmor %vm1938_vm2, %vm1939_vm3 }
 0x2f6   : > { %v1948_v45 = vmul.f32 %v5895_v5, %v5862_v49  ;;  %vm1952_vm4 = vweird.f32 %v5862_v49  ;;  %v5916_v55 = vpop.eup %4130  ;;  %4136 = vpow2.f32 %v1572_v32  ;;  %v1299_v17 = vmul.f32 1.442695, %v1275_v6 }
 0x2f7   : > { %vm1943_vm6 = vcmp.eq.f32.partialorder %v1942_v28, 8.507059e+37  ;;  %v1945_v54 = vor.u32 1.1754944e-38, %v1944_v33  ;;  %v1322_v26 = vadd.f32 %v5916_v55, %v5574_v42  ;;  %v1549_v53 = vadd.f32 %v1533_v60, %v5529_v34  ;;  %v1776_v59 = vpop.f32.mrf.mxu2 }
 0x2f8   : > { %2413 = vmatmul.f32.gmra.mxu1 %v2329_v62  ;;  %2545 = vmatmul.f32.gmra.mxu2 %v2459_v22  ;;  %v1941_v47 = vsel %vm1940_vm5, %v5859_v48, %v1937_v58  ;;  %v1949_v2 = vsub.f32 1.0, %v1948_v45  ;;  %v1845_v41 = vmul.f32 1.442695, %v1821_v56  ;;  %4138 = vpow2.f32 %v1299_v17  ;;  %v1230_v57 = vpop.f32.mrf.mxu0 }
 0x2f9   : > { %v5926_v43 = vsel %vm1943_vm6, %v1945_v54, %v1941_v47  ;;  %v2330_v63 = vmul.f32 %v5723_v16, %v1932_v20  ;;  %v1595_v36 = vadd.f32 %v5908_v37, %v1322_v26  ;;  %v1806_v46 = vmul.f32 0.17677669, %v1776_v59  ;;  %v1506_v25 = vpop.f32.mrf.mxu1  ;;  %v991_v20 = vpop.f32.mrf.mxu3 }
 0x2fa   : > { %v2105_v31 = vmul.f32 %v5564_v30, %v5926_v43  ;;  %v1956_v50 = vand.u32 2147483647, %v5862_v49  ;;  %v5933_v35 = vpop.eup %4132  ;;  %v1260_v48 = vmul.f32 0.17677669, %v1230_v57  ;;  %v1534_v32 = vmul.f32 0.17677669, %v1506_v25 }
 0x2fb   : > { %v2186_v39 = vmul.f32 %v5784_v51, %v5926_v43  ;;  %v1958_v8 = vand.u32 2147483648, %v5862_v49  ;;  %v5938_v16 = vpop.eup %4134  ;;  %v5941_v14 = vadd.f32 %v5933_v35, %v1595_v36  ;;  %v1574_v30 = vmul.f32 1.442695, %v1549_v53 }
 0x2fc   : > { %v1950_v21 = vmul.f32 %v5895_v5, %v1949_v2  ;;  %vm1953_vm7 = vweird.f32 %v5895_v5  ;;  %v5945_v44 = vpop.eup %4136  ;;  %4140 = vpow2.f32 %v1845_v41  ;;  %v1822_v0 = vadd.f32 %v1806_v46, %v5529_v34  ;;  %2145 = vmatmul.f32.gmra.mxu3 %v2105_v31 }
 0x2fd   : > { %v1276_v51 = vadd.f32 %v1260_v48, %v5529_v34  ;;  %2290 = vmatmul.f32.gmra.mxu0 %v2186_v39  ;;  %v2460_v28 = vmul.f32 %v5807_v40, %v5926_v43  ;;  %4142 = vrcp.f32 %v5941_v14  ;;  %v1550_v33 = vadd.f32 %v1534_v32, %v5540_v12  ;;  %vm1954_vm8 = vmor %vm1952_vm4, %vm1953_vm7 }
 0x2fe   : > { %v1951_v60 = vadd.f32 %v5895_v5, %v1950_v21  ;;  %v1962_v10 = vmul.f32 %v5938_v16, %v5898_v19  ;;  %v5956_v56 = vpop.eup %4138  ;;  %v5958_v6 = vmul.f32 0.17677669, %v991_v20  ;;  %vm1957_vm9 = vcmp.eq.f32.partialorder %v1956_v50, 8.507059e+37 }
 0x2ff   : > { %v1301_v62 = vmul.f32 1.442695, %v1276_v51  ;;  %v1959_v34 = vor.u32 1.1754944e-38, %v1958_v8  ;;  %v1323_v12 = vadd.f32 %v5956_v56, %v5578_v1  ;;  %4144 = vpow2.f32 %v1574_v30  ;;  %v1779_v45 = vpop.f32.mrf.mxu2 }
 0x300   : > { %2416 = vmatmul.f32.gmra.mxu1 %v2330_v63  ;;  %2548 = vmatmul.f32.gmra.mxu2 %v2460_v28  ;;  %v1955_v40 = vsel %vm1954_vm8, %v5895_v5, %v1951_v60  ;;  %v1963_v22 = vsub.f32 1.0, %v1962_v10  ;;  %v1847_v58 = vmul.f32 1.442695, %v1822_v0  ;;  %vm1966_vm10 = vweird.f32 %v5898_v19  ;;  %v1233_v47 = vpop.f32.mrf.mxu0 }
 0x301   : > { %4146 = vpow2.f32 %v1301_v62  ;;  %v1960_v17 = vsel %vm1957_vm9, %v1959_v34, %v1955_v40  ;;  %v1596_v54 = vadd.f32 %v5945_v44, %v1323_v12  ;;  %v1576_v49 = vmul.f32 1.442695, %v1550_v33  ;;  %v1509_v2 = vpop.f32.mrf.mxu1 }
 0x302   : > { %v1807_v26 = vmul.f32 0.17677669, %v1779_v45  ;;  %v2106_v53 = vmul.f32 %v5566_v61, %v1960_v17  ;;  %v5970_v41 = vpop.eup %4140  ;;  %v1261_v59 = vmul.f32 0.17677669, %v1233_v47  ;;  %v2187_v5 = vmul.f32 %v5834_v15, %v1960_v17  ;;  %v4238_v61 = vld [vmem:[%s4769_s16 + $0x50] sm:$0xff] }
 0x303   : > { %v1970_v63 = vand.u32 2147483647, %v5898_v19  ;;  %v1972_v36 = vand.u32 2147483648, %v5898_v19  ;;  %v5975_v46 = vpop.eup %4142  ;;  %v5978_v31 = vadd.f32 %v5970_v41, %v1596_v54  ;;  %v1535_v57 = vmul.f32 0.17677669, %v1509_v2 }
 0x304   : > { %v1964_v25 = vmul.f32 %v5938_v16, %v1963_v22  ;;  %vm1967_vm11 = vweird.f32 %v5938_v16  ;;  %4148 = vpow2.f32 %v1847_v58  ;;  %v1823_v50 = vadd.f32 %v4238_v61, %v1807_v26  ;;  %2148 = vmatmul.f32.gmra.mxu3 %v2106_v53  ;;  %v6018_v26 = vld [vmem:[%s4769_s16 + $0x78] sm:$0xff] }
 0x305   : > { %v1277_v48 = vadd.f32 %v4238_v61, %v1261_v59  ;;  %2293 = vmatmul.f32.gmra.mxu0 %v2187_v5  ;;  %v2331_v15 = vmul.f32 %v5773_v18, %v5926_v43  ;;  %v5985_v32 = vpop.eup %4144  ;;  %4150 = vrcp.f32 %v5978_v31  ;;  %v2461_v39 = vmul.f32 %v5854_v9, %v1960_v17  ;;  %vm1968_vm13 = vmor %vm1966_vm10, %vm1967_vm11  ;;  %v4239_v43 = vld [vmem:[%s4769_s16 + $0x58] sm:$0xff] }
 0x306   : > { %v1965_v8 = vadd.f32 %v5938_v16, %v1964_v25  ;;  %v1976_v20 = vmul.f32 %v5975_v46, %v5941_v14  ;;  %vm1980_vm12 = vweird.f32 %v5941_v14  ;;  %4152 = vpow2.f32 %v1576_v49 }
 0x307   : > { %v5993_v30 = vpop.eup %4146  ;;  %v1303_v21 = vmul.f32 1.442695, %v1277_v48  ;;  %vm1971_vm14 = vcmp.eq.f32.partialorder %v1970_v63, 8.507059e+37  ;;  %v1973_v18 = vor.u32 1.1754944e-38, %v1972_v36  ;;  %v1551_v0 = vadd.f32 %v4239_v43, %v1535_v57  ;;  %v1782_v60 = vpop.f32.mrf.mxu2  ;;  %v4240_v63 = vld [vmem:[%s4769_s16 + $0x60] sm:$0xff] }
 0x308   : > { %2419 = vmatmul.f32.gmra.mxu1 %v2331_v15  ;;  %v1324_v9 = vadd.f32 %v5993_v30, %v5584_v52  ;;  %2551 = vmatmul.f32.gmra.mxu2 %v2461_v39  ;;  %v1969_v51 = vsel %vm1968_vm13, %v5938_v16, %v1965_v8  ;;  %v1977_v28 = vsub.f32 1.0, %v1976_v20  ;;  %v1849_v33 = vmul.f32 1.442695, %v1823_v50  ;;  %v1236_v40 = vpop.f32.mrf.mxu0 }
 0x309   : > { %4154 = vpow2.f32 %v1303_v21  ;;  %v6003_v10 = vsel %vm1971_vm14, %v1973_v18, %v1969_v51  ;;  %v2332_v19 = vmul.f32 %v5825_v29, %v1960_v17  ;;  %v1808_v34 = vmul.f32 0.17677669, %v1782_v60  ;;  %v1512_v22 = vpop.f32.mrf.mxu1 }
 0x30a   : > { %v1597_v62 = vadd.f32 %v5985_v32, %v1324_v9  ;;  %v2107_v12 = vmul.f32 %v5570_v38, %v6003_v10  ;;  %v1984_v58 = vand.u32 2147483647, %v5941_v14  ;;  %v6010_v16 = vpop.eup %4148  ;;  %v1262_v45 = vmul.f32 0.17677669, %v1236_v40 }
 0x30b   : > { %v1536_v54 = vmul.f32 0.17677669, %v1512_v22  ;;  %v2188_v49 = vmul.f32 %v5877_v24, %v6003_v10  ;;  %v1986_v29 = vand.u32 2147483648, %v5941_v14  ;;  %v6015_v17 = vpop.eup %4150  ;;  %v1578_v53 = vmul.f32 1.442695, %v1551_v0 }
 0x30c   : > { %v6021_v38 = vadd.f32 %v6010_v16, %v1597_v62  ;;  %v1978_v47 = vmul.f32 %v5975_v46, %v1977_v28  ;;  %vm1981_vm15 = vweird.f32 %v5975_v46  ;;  %v6025_v2 = vpop.eup %4152  ;;  %4156 = vpow2.f32 %v1849_v33  ;;  %2151 = vmatmul.f32.gmra.mxu3 %v2107_v12 }
 0x30d   : > { %v1824_v59 = vadd.f32 %v4239_v43, %v1808_v34  ;;  %v1278_v24 = vadd.f32 %v4239_v43, %v1262_v45  ;;  %2296 = vmatmul.f32.gmra.mxu0 %v2188_v49  ;;  %v2462_v5 = vmul.f32 %v5890_v4, %v6003_v10  ;;  %v1552_v36 = vadd.f32 %v4240_v63, %v1536_v54  ;;  %vm1982_vm1 = vmor %vm1980_vm12, %vm1981_vm15 }
 0x30e   : > { %4158 = vrcp.f32 %v6021_v38  ;;  %v1979_v57 = vadd.f32 %v5975_v46, %v1978_v47  ;;  %v1990_v25 = vmul.f32 %v6015_v17, %v5978_v31  ;;  %v6038_v50 = vadd.f32 %v5958_v6, %v6018_v26 }
 0x30f   : > { %v6034_v61 = vpop.eup %4154  ;;  %v1305_v48 = vmul.f32 1.442695, %v1278_v24  ;;  %vm1985_vm2 = vcmp.eq.f32.partialorder %v1984_v58, 8.507059e+37  ;;  %v1987_v4 = vor.u32 1.1754944e-38, %v1986_v29  ;;  %4160 = vpow2.f32 %v1578_v53  ;;  %v1785_v6 = vpop.f32.mrf.mxu2 }
 0x310   : > { %2422 = vmatmul.f32.gmra.mxu1 %v2332_v19  ;;  %v1325_v15 = vadd.f32 %v6034_v61, %v5594_v23  ;;  %2554 = vmatmul.f32.gmra.mxu2 %v2462_v5  ;;  %v1983_v39 = vsel %vm1982_vm1, %v5975_v46, %v1979_v57  ;;  %v1991_v8 = vsub.f32 1.0, %v1990_v25  ;;  %v1851_v20 = vmul.f32 1.442695, %v1824_v59  ;;  %v1239_v0 = vpop.f32.mrf.mxu0 }
 0x311   : > { %4162 = vpow2.f32 %v1305_v48  ;;  %v1988_v21 = vsel %vm1985_vm2, %v1987_v4, %v1983_v39  ;;  %vm1994_vm3 = vweird.f32 %v5978_v31  ;;  %v1580_v14 = vmul.f32 1.442695, %v1552_v36  ;;  %v1515_v51 = vpop.f32.mrf.mxu1 }
 0x312   : > { %v1598_v18 = vadd.f32 %v6025_v2, %v1325_v15  ;;  %v1809_v9 = vmul.f32 0.17677669, %v1785_v6  ;;  %v2108_v43 = vmul.f32 %v5574_v42, %v1988_v21  ;;  %v6050_v28 = vpop.eup %4156  ;;  %v1263_v33 = vmul.f32 0.17677669, %v1239_v0 }
 0x313   : > { %v2189_v46 = vmul.f32 %v5916_v55, %v1988_v21  ;;  %v1998_v60 = vand.u32 2147483647, %v5978_v31  ;;  %v2000_v19 = vand.u32 2147483648, %v5978_v31  ;;  %v1537_v12 = vmul.f32 0.17677669, %v1515_v51  ;;  %v4242_v51 = vld [vmem:[%s4769_s16 + $0x70] sm:$0xff] }
 0x314   : > { %v6055_v62 = vpop.eup %4158  ;;  %v6058_v34 = vadd.f32 %v6050_v28, %v1598_v18  ;;  %v1992_v40 = vmul.f32 %v6015_v17, %v1991_v8  ;;  %vm1995_vm4 = vweird.f32 %v6015_v17  ;;  %4164 = vpow2.f32 %v1851_v20  ;;  %2154 = vmatmul.f32.gmra.mxu3 %v2108_v43 }
 0x315   : > { %v1825_v42 = vadd.f32 %v4240_v63, %v1809_v9  ;;  %v1279_v22 = vadd.f32 %v4240_v63, %v1263_v33  ;;  %2299 = vmatmul.f32.gmra.mxu0 %v2189_v46  ;;  %v2333_v55 = vmul.f32 %v5866_v13, %v6003_v10  ;;  %v6064_v58 = vpop.eup %4160  ;;  %v2463_v45 = vmul.f32 %v5933_v35, %v1988_v21  ;;  %vm1996_vm6 = vmor %vm1994_vm3, %vm1995_vm4  ;;  %v4241_v10 = vld [vmem:[%s4769_s16 + $0x68] sm:$0xff] }
 0x316   : > { %4166 = vrcp.f32 %v6058_v34  ;;  %v1993_v54 = vadd.f32 %v6015_v17, %v1992_v40  ;;  %v2004_v49 = vmul.f32 %v6055_v62, %v6021_v38  ;;  %vm2008_vm5 = vweird.f32 %v6021_v38 }
 0x317   : > { %v6072_v29 = vpop.eup %4162  ;;  %4168 = vpow2.f32 %v1580_v14  ;;  %v1307_v53 = vmul.f32 1.442695, %v1279_v22  ;;  %vm1999_vm7 = vcmp.eq.f32.partialorder %v1998_v60, 8.507059e+37  ;;  %v2001_v13 = vor.u32 1.1754944e-38, %v2000_v19  ;;  %v1788_v63 = vpop.f32.mrf.mxu2 }
 0x318   : > { %2425 = vmatmul.f32.gmra.mxu1 %v2333_v55  ;;  %v1326_v35 = vadd.f32 %v6072_v29, %v5603_v27  ;;  %v1553_v47 = vadd.f32 %v4241_v10, %v1537_v12  ;;  %2557 = vmatmul.f32.gmra.mxu2 %v2463_v45  ;;  %v1997_v59 = vsel %vm1996_vm6, %v6015_v17, %v1993_v54  ;;  %v2005_v24 = vsub.f32 1.0, %v2004_v49  ;;  %v1242_v4 = vpop.f32.mrf.mxu0 }
 0x319   : > { %v1853_v5 = vmul.f32 1.442695, %v1825_v42  ;;  %4170 = vpow2.f32 %v1307_v53  ;;  %v6082_v36 = vsel %vm1999_vm7, %v2001_v13, %v1997_v59  ;;  %v2334_v57 = vmul.f32 %v5908_v37, %v1988_v21  ;;  %v1518_v15 = vpop.f32.mrf.mxu1 }
 0x31a   : > { %v1599_v31 = vadd.f32 %v6064_v58, %v1326_v35  ;;  %v1810_v25 = vmul.f32 0.17677669, %v1788_v63  ;;  %v2109_v48 = vmul.f32 %v5578_v1, %v6082_v36  ;;  %v2012_v39 = vand.u32 2147483647, %v6021_v38  ;;  %v6089_v8 = vpop.eup %4164 }
 0x31b   : > { %v1264_v17 = vmul.f32 0.17677669, %v1242_v4  ;;  %v1538_v20 = vmul.f32 0.17677669, %v1518_v15  ;;  %v2190_v6 = vmul.f32 %v5956_v56, %v6082_v36  ;;  %v2014_v37 = vand.u32 2147483648, %v6021_v38 }
 0x31c   : > { %v6094_v21 = vpop.eup %4166  ;;  %v6097_v18 = vadd.f32 %v6089_v8, %v1599_v31  ;;  %v1582_v1 = vmul.f32 1.442695, %v1553_v47  ;;  %v2006_v14 = vmul.f32 %v6055_v62, %v2005_v24  ;;  %vm2009_vm8 = vweird.f32 %v6055_v62  ;;  %2157 = vmatmul.f32.gmra.mxu3 %v2109_v48 }
 0x31d   : > { %v6101_v9 = vpop.eup %4168  ;;  %4172 = vpow2.f32 %v1853_v5  ;;  %v1826_v43 = vadd.f32 %v4241_v10, %v1810_v25  ;;  %v1280_v0 = vadd.f32 %v4241_v10, %v1264_v17  ;;  %2302 = vmatmul.f32.gmra.mxu0 %v2190_v6  ;;  %v2464_v56 = vmul.f32 %v5970_v41, %v6082_v36  ;;  %vm2010_vm9 = vmor %vm2008_vm5, %vm2009_vm8 }
 0x31e   : > { %4174 = vrcp.f32 %v6097_v18  ;;  %v1554_v33 = vadd.f32 %v4242_v51, %v1538_v20  ;;  %v2007_v46 = vadd.f32 %v6055_v62, %v2006_v14  ;;  %v2018_v60 = vmul.f32 %v6094_v21, %v6058_v34 }
 0x31f   : > { %v6110_v19 = vpop.eup %4170  ;;  %v6113_v12 = vmul.f32 1.442695, %v6038_v50  ;;  %v1309_v40 = vmul.f32 1.442695, %v1280_v0  ;;  %vm2013_vm10 = vcmp.eq.f32.partialorder %v2012_v39, 8.507059e+37  ;;  %v2015_v41 = vor.u32 1.1754944e-38, %v2014_v37  ;;  %v1791_v50 = vpop.f32.mrf.mxu2 }
 0x320   : > { %2428 = vmatmul.f32.gmra.mxu1 %v2334_v57  ;;  %v1327_v42 = vadd.f32 %v6110_v19, %v5621_v11  ;;  %4176 = vpow2.f32 %v1582_v1  ;;  %2560 = vmatmul.f32.gmra.mxu2 %v2464_v56  ;;  %v2011_v22 = vsel %vm2010_vm9, %v6055_v62, %v2007_v46  ;;  %v2019_v55 = vsub.f32 1.0, %v2018_v60  ;;  %v1245_v35 = vpop.f32.mrf.mxu0 }
 0x321   : > { %v1855_v45 = vmul.f32 1.442695, %v1826_v43  ;;  %4178 = vpow2.f32 %v1309_v40  ;;  %v2016_v54 = vsel %vm2013_vm10, %v2015_v41, %v2011_v22  ;;  %vm2022_vm11 = vweird.f32 %v6058_v34  ;;  %v1521_v10 = vpop.f32.mrf.mxu1 }
 0x322   : > { %v1600_v49 = vadd.f32 %v6101_v9, %v1327_v42  ;;  %v1584_v38 = vmul.f32 1.442695, %v1554_v33  ;;  %v1811_v53 = vmul.f32 0.17677669, %v1791_v50  ;;  %v2110_v13 = vmul.f32 %v5584_v52, %v2016_v54 }
 0x323   : > { %v6125_v47 = vpop.eup %4172  ;;  %v1265_v59 = vmul.f32 0.17677669, %v1245_v35  ;;  %v2191_v62 = vmul.f32 %v5993_v30, %v2016_v54  ;;  %v2026_v24 = vand.u32 2147483647, %v6058_v34  ;;  %v2028_v5 = vand.u32 2147483648, %v6058_v34 }
 0x324   : > { %v6130_v63 = vpop.eup %4174  ;;  %v6133_v57 = vadd.f32 %v6125_v47, %v1600_v49  ;;  %v1539_v31 = vmul.f32 0.17677669, %v1521_v10  ;;  %v2020_v25 = vmul.f32 %v6094_v21, %v2019_v55  ;;  %vm2023_vm12 = vweird.f32 %v6094_v21  ;;  %2160 = vmatmul.f32.gmra.mxu3 %v2110_v13 }
 0x325   : > { %4180 = vpow2.f32 %v1855_v45  ;;  %v1827_v52 = vadd.f32 %v4242_v51, %v1811_v53  ;;  %v1281_v48 = vadd.f32 %v4242_v51, %v1265_v59  ;;  %2305 = vmatmul.f32.gmra.mxu0 %v2191_v62  ;;  %v2335_v30 = vmul.f32 %v5945_v44, %v6082_v36  ;;  %vm2024_vm13 = vmor %vm2022_vm11, %vm2023_vm12 }
 0x326   : > { %v6139_v4 = vpop.eup %4176  ;;  %4182 = vrcp.f32 %v6133_v57  ;;  %v2465_v15 = vmul.f32 %v6010_v16, %v2016_v54  ;;  %v2021_v39 = vadd.f32 %v6094_v21, %v2020_v25  ;;  %v2032_v17 = vmul.f32 %v6130_v63, %v6097_v18 }
 0x327   : > { %v6146_v20 = vpop.eup %4178  ;;  %4184 = vpow2.f32 %v1584_v38  ;;  %v1311_v6 = vmul.f32 1.442695, %v1281_v48  ;;  %vm2027_vm14 = vcmp.eq.f32.partialorder %v2026_v24, 8.507059e+37  ;;  %v2029_v44 = vor.u32 1.1754944e-38, %v2028_v5  ;;  %v1794_v43 = vpop.f32.mrf.mxu2 }
 0x328   : > { %2431 = vmatmul.f32.gmra.mxu1 %v2335_v30  ;;  %v1328_v16 = vadd.f32 %v6146_v20, %v5643_v3  ;;  %v1555_v36 = vadd.f32 %v1539_v31, %v6018_v26  ;;  %2563 = vmatmul.f32.gmra.mxu2 %v2465_v15  ;;  %v2025_v37 = vsel %vm2024_vm13, %v6094_v21, %v2021_v39  ;;  %v2033_v1 = vsub.f32 1.0, %v2032_v17  ;;  %v1248_v33 = vpop.f32.mrf.mxu0 }
 0x329   : > { %v1857_v14 = vmul.f32 1.442695, %v1827_v52  ;;  %4186 = vpow2.f32 %v1311_v6  ;;  %v2030_v0 = vsel %vm2027_vm14, %v2029_v44, %v2025_v37  ;;  %vm2037_vm15 = vweird.f32 %v6130_v63 }
 0x32a   : > { %v1601_v34 = vadd.f32 %v6139_v4, %v1328_v16  ;;  %v1812_v56 = vmul.f32 0.17677669, %v1794_v43  ;;  %v2111_v51 = vmul.f32 %v5594_v23, %v2030_v0  ;;  %v2042_v46 = vand.u32 2147483648, %v6097_v18 }
 0x32b   : > { %v6160_v60 = vpop.eup %4180  ;;  %v1266_v40 = vmul.f32 0.17677669, %v1248_v33  ;;  %v2192_v21 = vmul.f32 %v6034_v61, %v2030_v0  ;;  %v2034_v41 = vmul.f32 %v6130_v63, %v2033_v1  ;;  %v2040_v42 = vand.u32 2147483647, %v6097_v18 }
 0x32c   : > { %v4183_v22 = vpop.eup %4182  ;;  %v6166_v55 = vadd.f32 %v6160_v60, %v1601_v34  ;;  %v1828_v45 = vadd.f32 %v1812_v56, %v6018_v26  ;;  %v2336_v23 = vmul.f32 %v5985_v32, %v2016_v54  ;;  %vm2036_vm1 = vweird.f32 %v6097_v18  ;;  %2163 = vmatmul.f32.gmra.mxu3 %v2111_v51 }
 0x32d   : > { %v6171_v50 = vpop.eup %4184  ;;  %4188 = vpow2.f32 %v1857_v14  ;;  %v1282_v61 = vadd.f32 %v1266_v40, %v6018_v26  ;;  %2308 = vmatmul.f32.gmra.mxu0 %v2192_v21  ;;  %v2035_v49 = vadd.f32 %v6130_v63, %v2034_v41  ;;  %v2046_v38 = vmul.f32 %v4183_v22, %v6133_v57  ;;  %vm2038_vm2 = vmor %vm2036_vm1, %vm2037_vm15 }
 0x32e   : > { %4190 = vrcp.f32 %v6166_v55  ;;  %v1586_v53 = vmul.f32 1.442695, %v1555_v36  ;;  %v2466_v13 = vmul.f32 %v6050_v28, %v2030_v0  ;;  %v2043_v32 = vor.u32 1.1754944e-38, %v2042_v46 }
 0x32f   : > { %v6180_v18 = vpop.eup %4186  ;;  %v1313_v54 = vmul.f32 1.442695, %v1282_v61  ;;  %v2039_v26 = vsel %vm2038_vm2, %v6130_v63, %v2035_v49  ;;  %vm2041_vm3 = vcmp.eq.f32.partialorder %v2040_v42, 8.507059e+37  ;;  %v2047_v35 = vsub.f32 1.0, %v2046_v38 }
 0x330   : > { %2434 = vmatmul.f32.gmra.mxu1 %v2336_v23  ;;  %4192 = vpow2.f32 %v6113_v12  ;;  %v1329_v10 = vadd.f32 %v6180_v18, %v5902_v7  ;;  %2566 = vmatmul.f32.gmra.mxu2 %v2466_v13  ;;  %v2044_v59 = vsel %vm2041_vm3, %v2043_v32, %v2039_v26  ;;  %v1859_v28 = vmul.f32 1.442695, %v1828_v45 }
 0x331   : > { %4194 = vpow2.f32 %v1313_v54  ;;  %v2112_v62 = vmul.f32 %v5603_v27, %v2044_v59  ;;  %v2056_v24 = vand.u32 2147483648, %v6133_v57  ;;  %v2048_v31 = vmul.f32 %v4183_v22, %v2047_v35 }
 0x332   : > { %v1602_v5 = vadd.f32 %v6171_v50, %v1329_v10  ;;  %vm2051_vm4 = vweird.f32 %v4183_v22  ;;  %v2054_v63 = vand.u32 2147483647, %v6133_v57  ;;  %4196 = vpow2.f32 %v1586_v53 }
 0x333   : > { %v6190_v25 = vpop.eup %4188  ;;  %v2193_v12 = vmul.f32 %v6072_v29, %v2044_v59  ;;  %v2049_v30 = vadd.f32 %v4183_v22, %v2048_v31  ;;  %vm2050_vm5 = vweird.f32 %v6133_v57  ;;  %4198 = vpow2.f32 %v1859_v28 }
 0x334   : > { %v4191_v52 = vpop.eup %4190  ;;  %v6194_v48 = vadd.f32 %v6190_v25, %v1602_v5  ;;  %2166 = vmatmul.f32.gmra.mxu3 %v2112_v62  ;;  %v2337_v27 = vmul.f32 %v6025_v2, %v2030_v0  ;;  %vm2052_vm6 = vmor %vm2050_vm5, %vm2051_vm4  ;;  %v2057_v15 = vor.u32 1.1754944e-38, %v2056_v24  ;;  %v2467_v29 = vmul.f32 %v6089_v8, %v2044_v59 }
 0x335   : > { %2311 = vmatmul.f32.gmra.mxu0 %v2193_v12  ;;  %v2060_v39 = vmul.f32 %v4191_v52, %v6166_v55  ;;  %v2053_v6 = vsel %vm2052_vm6, %v4183_v22, %v2049_v30  ;;  %vm2055_vm7 = vcmp.eq.f32.partialorder %v2054_v63, 8.507059e+37  ;;  %v2070_v36 = vand.u32 2147483648, %v6166_v55 }
 0x336   : > { %v6199_v17 = vpop.eup %4192  ;;  %4200 = vrcp.f32 %v6194_v48  ;;  %v2058_v57 = vsel %vm2055_vm7, %v2057_v15, %v2053_v6  ;;  %vm2065_vm8 = vweird.f32 %v4191_v52  ;;  %v2068_v8 = vand.u32 2147483647, %v6166_v55 }
 0x337   : > { %v6203_v44 = vpop.eup %4194  ;;  %v2061_v16 = vsub.f32 1.0, %v2060_v39  ;;  %v2113_v1 = vmul.f32 %v5621_v11, %v2058_v57  ;;  %v2194_v34 = vmul.f32 %v6110_v19, %v2058_v57  ;;  %vm2064_vm9 = vweird.f32 %v6166_v55 }
 0x338   : > { %2437 = vmatmul.f32.gmra.mxu1 %v2337_v27  ;;  %v1330_v2 = vadd.f32 %v6203_v44, %v6199_v17  ;;  %2569 = vmatmul.f32.gmra.mxu2 %v2467_v29  ;;  %v6208_v37 = vpop.eup %4196  ;;  %vm2066_vm10 = vmor %vm2064_vm9, %vm2065_vm8  ;;  %v2071_v46 = vor.u32 1.1754944e-38, %v2070_v36  ;;  %v2338_v11 = vmul.f32 %v6064_v58, %v2044_v59  ;;  %vm2069_vm11 = vcmp.eq.f32.partialorder %v2068_v8, 8.507059e+37 }
 0x339   : > { %v2062_v14 = vmul.f32 %v4191_v52, %v2061_v16  ;;  %v6213_v0 = vpop.eup %4198  ;;  %v2468_v41 = vmul.f32 %v6125_v47, %v2058_v57  ;;  %v2084_v22 = vand.u32 2147483648, %v6194_v48  ;;  %v2082_v23 = vand.u32 2147483647, %v6194_v48 }
 0x33a   : > { %v1603_v43 = vadd.f32 %v6208_v37, %v1330_v2  ;;  %vm2078_vm13 = vweird.f32 %v6194_v48  ;;  %v2339_v38 = vmul.f32 %v6101_v9, %v2058_v57  ;;  %vm2793_vm5 = vcmask 523264  }
 0x33b   : > { %v2063_v56 = vadd.f32 %v4191_v52, %v2062_v14  ;;  %v2085_v47 = vor.u32 1.1754944e-38, %v2084_v22  ;;  %vm2083_vm15 = vcmp.eq.f32.partialorder %v2082_v23, 8.507059e+37  ;;  %vm2810_vm6 = vcmask 785408  }
 0x33c   : > { %v4201_v51 = vpop.eup %4200  ;;  %v1876_v33 = vadd.f32 %v6213_v0, %v1603_v43  ;;  %2169 = vmatmul.f32.gmra.mxu3 %v2113_v1 }
 0x33d   : > { %2314 = vmatmul.f32.gmra.mxu0 %v2194_v34  ;;  %v2067_v40 = vsel %vm2066_vm10, %v4191_v52, %v2063_v56  ;;  %v2074_v21 = vmul.f32 %v4201_v51, %v6194_v48  ;;  %vm2079_vm12 = vweird.f32 %v4201_v51 }
 0x33e   : > { %4202 = vrcp.f32 %v1876_v33  ;;  %v2072_v19 = vsel %vm2069_vm11, %v2071_v46, %v2067_v40  ;;  %vm2080_vm14 = vmor %vm2078_vm13, %vm2079_vm12  ;;  %v2096_v10 = vand.u32 2147483647, %v1876_v33  ;;  %vm2092_vm2 = vweird.f32 %v1876_v33 }
 0x33f   : > { %v2075_v42 = vsub.f32 1.0, %v2074_v21  ;;  %v2114_v55 = vmul.f32 %v5643_v3, %v2072_v19  ;;  %v2195_v58 = vmul.f32 %v6146_v20, %v2072_v19  ;;  %v2469_v3 = vmul.f32 %v6160_v60, %v2072_v19 }
 0x340   : > { %2440 = vmatmul.f32.gmra.mxu1 %v2338_v11  ;;  %2572 = vmatmul.f32.gmra.mxu2 %v2468_v41  ;;  %v2098_v20 = vand.u32 2147483648, %v1876_v33  ;;  %v2340_v60 = vmul.f32 %v6139_v4, %v2072_v19  ;;  %vm2097_vm4 = vcmp.eq.f32.partialorder %v2096_v10, 8.507059e+37 }
 0x341   : > { %v2076_v45 = vmul.f32 %v4201_v51, %v2075_v42 }
 0x342   : > { %v2099_v9 = vor.u32 1.1754944e-38, %v2098_v20 }
 0x343   : > { %v2077_v61 = vadd.f32 %v4201_v51, %v2076_v45 }
 0x344   : > { %v4203_v49 = vpop.eup %4202  ;;  %2172 = vmatmul.f32.gmra.mxu3 %v2114_v55 }
 0x345   : > { %2317 = vmatmul.f32.gmra.mxu0 %v2195_v58  ;;  %v2081_v53 = vsel %vm2080_vm14, %v4201_v51, %v2077_v61  ;;  %v2088_v13 = vmul.f32 %v4203_v49, %v1876_v33  ;;  %vm2093_vm1 = vweird.f32 %v4203_v49 }
 0x346   : > { %v2086_v32 = vsel %vm2083_vm15, %v2085_v47, %v2081_v53  ;;  %vm2094_vm3 = vmor %vm2092_vm2, %vm2093_vm1 }
 0x347   : > { %v2089_v54 = vsub.f32 1.0, %v2088_v13  ;;  %v2115_v26 = vmul.f32 %v5902_v7, %v2086_v32  ;;  %v2196_v59 = vmul.f32 %v6180_v18, %v2086_v32  ;;  %v2470_v24 = vmul.f32 %v6190_v25, %v2086_v32 }
 0x348   : > { %2443 = vmatmul.f32.gmra.mxu1 %v2339_v38  ;;  %2575 = vmatmul.f32.gmra.mxu2 %v2469_v3  ;;  %v2341_v18 = vmul.f32 %v6171_v50, %v2086_v32 }
 0x349   : > { %v2090_v35 = vmul.f32 %v4203_v49, %v2089_v54 }
 0x34b   : > { %v2091_v28 = vadd.f32 %v4203_v49, %v2090_v35 }
 0x34c   : > { %2175 = vmatmul.f32.gmra.mxu3 %v2115_v26 }
 0x34d   : > { %2320 = vmatmul.f32.gmra.mxu0 %v2196_v59  ;;  %v2095_v62 = vsel %vm2094_vm3, %v4203_v49, %v2091_v28  ;;  %v2842_v28 = vld [vmem:[#allocation11 + $0x78] sm:$0xff] }
 0x34e   : > { %v2100_v5 = vsel %vm2097_vm4, %v2099_v9, %v2095_v62  ;;  %3652 = vmatpush.msra.mxu3 %v2842_v28  ;;  %3651 = vmatpush.msrb.mxu2 %v2842_v28  ;;  %v2841_v9 = vld [vmem:[#allocation11 + $0x70] sm:$0xff] }
 0x34f   : > { %v2116_v7 = vmul.f32 %v6199_v17, %v2100_v5  ;;  %v2197_v31 = vmul.f32 %v6203_v44, %v2100_v5  ;;  %v2471_v63 = vmul.f32 %v6213_v0, %v2100_v5  ;;  %v2342_v12 = vmul.f32 %v6208_v37, %v2100_v5  ;;  %2847 = vmatpush.msrb.mxu0 %v2842_v28 }
 0x350   : > { %2446 = vmatmul.f32.gmra.mxu1 %v2340_v60  ;;  %2578 = vmatmul.f32.gmra.mxu2 %v2470_v24  ;;  %v2840_v60 = vld [vmem:[#allocation11 + $0x68] sm:$0xff] }
 0x351   : > { %3650 = vmatpush.msrb.mxu1 %v2842_v28  ;;  %3655 = vmatpush.msra.mxu3 %v2841_v9 }
 0x352   : > { %3654 = vmatpush.msrb.mxu2 %v2841_v9  ;;  %2848 = vmatpush.msrb.mxu0 %v2841_v9 }
 0x353   : > { %3653 = vmatpush.msrb.mxu1 %v2841_v9  ;;  %3658 = vmatpush.msra.mxu3 %v2840_v60 }
 0x354   : > { %2178 = vmatmul.f32.gmra.mxu3 %v2116_v7  ;;  %v2839_v7 = vld [vmem:[#allocation11 + $0x60] sm:$0xff]  ;;  %3657 = vmatpush.msrb.mxu2 %v2840_v60 }
 0x355   : > { %2323 = vmatmul.f32.gmra.mxu0 %v2197_v31  ;;  %3656 = vmatpush.msrb.mxu1 %v2840_v60 }
 0x356   : > { %2849 = vmatpush.msrb.mxu0 %v2840_v60  ;;  %3661 = vmatpush.msra.mxu3 %v2839_v7 }
 0x357   : > { %3660 = vmatpush.msrb.mxu2 %v2839_v7  ;;  %3659 = vmatpush.msrb.mxu1 %v2839_v7 }
 0x358   : > { %2449 = vmatmul.f32.gmra.mxu1 %v2341_v18  ;;  %2581 = vmatmul.f32.gmra.mxu2 %v2471_v63 }
 0x359   : > { %v6236_v4 = vpop.f32.mrf.mxu0  ;;  %2850 = vmatpush.msrb.mxu0 %v2839_v7 }
 0x35e   : > { %v6274_v24 = vpop.f32.mrf.mxu3 }
 0x360   : > { %2452 = vmatmul.f32.gmra.mxu1 %v2342_v12  ;;  %v2838_v12 = vld [vmem:[#allocation11 + $0x58] sm:$0xff] }
 0x361   : > { %3664 = vmatpush.msra.mxu3 %v2838_v12  ;;  %3663 = vmatpush.msrb.mxu2 %v2838_v12 }
 0x362   : > { %v6239_v25 = vpop.f32.mrf.mxu0  ;;  %2851 = vmatpush.msrb.mxu0 %v2838_v12  ;;  %3662 = vmatpush.msrb.mxu1 %v2838_v12 }
 0x363   : > { %v4013_v52 = vpack.i.bf16 %v6239_v25, %v6236_v4  ;;  %v6243_v48 = vpop.f32.mrf.mxu2 }
 0x365   : > { %v6245_v30 = vpop.f32.mrf.mxu1 }
 0x36a   : > { %v6247_v27 = vpop.f32.mrf.mxu0 }
 0x36b   : > { %v6249_v50 = vpop.f32.mrf.mxu2 }
 0x36c   : > { %v4033_v15 = vpack.i.bf16 %v6249_v50, %v6243_v48 }
 0x36d   : > { %v6253_v39 = vpop.f32.mrf.mxu1 }
 0x36e   : > { %v4023_v17 = vpack.i.bf16 %v6253_v39, %v6245_v30 }
 0x372   : > { %v2288_v29 = vpop.f32.mrf.mxu0 }
 0x373   : > { %v6257_v6 = vpop.f32.mrf.mxu2 }
 0x375   : > { %v6259_v44 = vpop.f32.mrf.mxu1 }
 0x37a   : > { %v2291_v57 = vpop.f32.mrf.mxu0 }
 0x37b   : > { %v3918_v16 = vpack.i.bf16 %v2291_v57, %v2288_v29  ;;  %v2546_v2 = vpop.f32.mrf.mxu2  ;;  %v2837_v29 = vld [vmem:[#allocation11 + $0x50] sm:$0xff]  ;;  %v2836_v57 = vld [vmem:[#allocation11 + $0x48] sm:$0xff] }
 0x37c   : > { %3667 = vmatpush.msra.mxu3 %v2837_v29  ;;  %3666 = vmatpush.msrb.mxu2 %v2837_v29 }
 0x37d   : > { %v2417_v36 = vpop.f32.mrf.mxu1  ;;  %3919 = vrot.lane.b32.xlu0 %v3918_v16, %s4531_s18  ;;  %2852 = vmatpush.msrb.mxu0 %v2837_v29 }
 0x37e   : > { %3670 = vmatpush.msra.mxu3 %v2836_v57  ;;  %3669 = vmatpush.msrb.mxu2 %v2836_v57 }
 0x37f   : > { %3665 = vmatpush.msrb.mxu1 %v2837_v29  ;;  %2853 = vmatpush.msrb.mxu0 %v2836_v57 }
 0x381   : > { %3668 = vmatpush.msrb.mxu1 %v2836_v57 }
 0x382   : > { %v2294_v37 = vpop.f32.mrf.mxu0 }
 0x383   : > { %v2549_v1 = vpop.f32.mrf.mxu2 }
 0x384   : > { %v3928_v14 = vpack.i.bf16 %v2549_v1, %v2546_v2 }
 0x385   : > { %v2420_v8 = vpop.f32.mrf.mxu1 }
 0x386   : > { %v3923_v43 = vpack.i.bf16 %v2420_v8, %v2417_v36  ;;  %3929 = vrot.lane.b32.xlu2 %v3928_v14, %s4530_s17  ;;  %v6278_v14 = vpop.f32.mrf.mxu3 }
 0x388   : > { %3924 = vrot.lane.b32.xlu1 %v3923_v43, %s4529_s8  ;;  %v2834_v43 = vld [vmem:[#allocation11 + $0x38] sm:$0xff] }
 0x38a   : > { %v2297_v0 = vpop.f32.mrf.mxu0 }
 0x38b   : > { %v3933_v34 = vpack.i.bf16 %v2297_v0, %v2294_v37  ;;  %v2552_v56 = vpop.f32.mrf.mxu2  ;;  %v2835_v37 = vld [vmem:[#allocation11 + $0x40] sm:$0xff]  ;;  %v2833_v0 = vld [vmem:[#allocation11 + $0x30] sm:$0xff] }
 0x38c   : > { %3673 = vmatpush.msra.mxu3 %v2835_v37  ;;  %3672 = vmatpush.msrb.mxu2 %v2835_v37 }
 0x38d   : > { %v2423_v51 = vpop.f32.mrf.mxu1  ;;  %3934 = vrot.lane.b32.xlu0 %v3933_v34, %s4531_s18  ;;  %2854 = vmatpush.msrb.mxu0 %v2835_v37 }
 0x38e   : > { %3671 = vmatpush.msrb.mxu1 %v2835_v37  ;;  %3676 = vmatpush.msra.mxu3 %v2834_v43 }
 0x38f   : > { %3675 = vmatpush.msrb.mxu2 %v2834_v43  ;;  %2855 = vmatpush.msrb.mxu0 %v2834_v43 }
 0x390   : > { %3674 = vmatpush.msrb.mxu1 %v2834_v43  ;;  %3679 = vmatpush.msra.mxu3 %v2833_v0 }
 0x391   : > { %3678 = vmatpush.msrb.mxu2 %v2833_v0  ;;  %2856 = vmatpush.msrb.mxu0 %v2833_v0 }
 0x392   : > { %v2300_v33 = vpop.f32.mrf.mxu0  ;;  %3677 = vmatpush.msrb.mxu1 %v2833_v0 }
 0x393   : > { %v2555_v46 = vpop.f32.mrf.mxu2 }
 0x394   : > { %v3943_v11 = vpack.i.bf16 %v2555_v46, %v2552_v56  ;;  %v2832_v46 = vld [vmem:[#allocation11 + $0x28] sm:$0xff] }
 0x395   : > { %v2426_v40 = vpop.f32.mrf.mxu1  ;;  %3682 = vmatpush.msra.mxu3 %v2832_v46  ;;  %3681 = vmatpush.msrb.mxu2 %v2832_v46 }
 0x396   : > { %v3938_v21 = vpack.i.bf16 %v2426_v40, %v2423_v51  ;;  %3944 = vrot.lane.b32.xlu2 %v3943_v11, %s4530_s17  ;;  %v2831_v40 = vld [vmem:[#allocation11 + $0x20] sm:$0xff]  ;;  %2857 = vmatpush.msrb.mxu0 %v2832_v46 }
 0x397   : > { %3685 = vmatpush.msra.mxu3 %v2831_v40  ;;  %3684 = vmatpush.msrb.mxu2 %v2831_v40 }
 0x398   : > { %3939 = vrot.lane.b32.xlu1 %v3938_v21, %s4529_s8  ;;  %v6284_v21 = vpop.f32.mrf.mxu3  ;;  %3680 = vmatpush.msrb.mxu1 %v2832_v46 }
 0x399   : > { %2858 = vmatpush.msrb.mxu0 %v2831_v40 }
 0x39a   : > { %v2303_v41 = vpop.f32.mrf.mxu0  ;;  %3683 = vmatpush.msrb.mxu1 %v2831_v40 }
 0x39b   : > { %v3948_v19 = vpack.i.bf16 %v2303_v41, %v2300_v33  ;;  %v2558_v42 = vpop.f32.mrf.mxu2  ;;  %v2829_v41 = vld [vmem:[#allocation11 + $0x10] sm:$0xff] }
 0x39d   : > { %v2429_v22 = vpop.f32.mrf.mxu1  ;;  %3949 = vrot.lane.b32.xlu0 %v3948_v19, %s4531_s18 }
 0x3a2   : > { %v2306_v55 = vpop.f32.mrf.mxu0 }
 0x3a3   : > { %v2561_v45 = vpop.f32.mrf.mxu2 }
 0x3a4   : > { %v3958_v23 = vpack.i.bf16 %v2561_v45, %v2558_v42 }
 0x3a5   : > { %v2432_v58 = vpop.f32.mrf.mxu1 }
 0x3a6   : > { %v3953_v61 = vpack.i.bf16 %v2432_v58, %v2429_v22  ;;  %3959 = vrot.lane.b32.xlu2 %v3958_v23, %s4530_s17  ;;  %v2827_v23 = vld [vmem:[#allocation11] sm:$0xff] }
 0x3a8   : > { %3954 = vrot.lane.b32.xlu1 %v3953_v61, %s4529_s8 }
 0x3aa   : > { %v2309_v49 = vpop.f32.mrf.mxu0 }
 0x3ab   : > { %v3963_v47 = vpack.i.bf16 %v2309_v49, %v2306_v55  ;;  %v2564_v38 = vpop.f32.mrf.mxu2  ;;  %v2828_v55 = vld [vmem:[#allocation11 + $0x8] sm:$0xff] }
 0x3ad   : > { %v2435_v53 = vpop.f32.mrf.mxu1  ;;  %3964 = vrot.lane.b32.xlu0 %v3963_v47, %s4531_s18 }
 0x3b2   : > { %v2312_v13 = vpop.f32.mrf.mxu0 }
 0x3b3   : > { %v2567_v3 = vpop.f32.mrf.mxu2 }
 0x3b4   : > { %v3973_v32 = vpack.i.bf16 %v2567_v3, %v2564_v38 }
 0x3b5   : > { %v2438_v54 = vpop.f32.mrf.mxu1 }
 0x3b6   : > { %v3968_v20 = vpack.i.bf16 %v2438_v54, %v2435_v53  ;;  %3974 = vrot.lane.b32.xlu2 %v3973_v32, %s4530_s17 }
 0x3b8   : > { %3969 = vrot.lane.b32.xlu1 %v3968_v20, %s4529_s8 }
 0x3ba   : > { %v2315_v26 = vpop.f32.mrf.mxu0 }
 0x3bb   : > { %v3978_v35 = vpack.i.bf16 %v2315_v26, %v2312_v13  ;;  %v2570_v10 = vpop.f32.mrf.mxu2 }
 0x3bd   : > { %v2441_v59 = vpop.f32.mrf.mxu1  ;;  %3979 = vrot.lane.b32.xlu0 %v3978_v35, %s4531_s18 }
 0x3c2   : > { %v2318_v62 = vpop.f32.mrf.mxu0 }
 0x3c3   : > { %v2573_v5 = vpop.f32.mrf.mxu2 }
 0x3c4   : > { %v3988_v31 = vpack.i.bf16 %v2573_v5, %v2570_v10 }
 0x3c5   : > { %v2444_v18 = vpop.f32.mrf.mxu1 }
 0x3c6   : > { %v3983_v63 = vpack.i.bf16 %v2444_v18, %v2441_v59  ;;  %3989 = vrot.lane.b32.xlu2 %v3988_v31, %s4530_s17 }
 0x3c8   : > { %3984 = vrot.lane.b32.xlu1 %v3983_v63, %s4529_s8 }
 0x3ca   : > { %v2321_v16 = vpop.f32.mrf.mxu0 }
 0x3cb   : > { %v3993_v2 = vpack.i.bf16 %v2321_v16, %v2318_v62  ;;  %v2576_v36 = vpop.f32.mrf.mxu2 }
 0x3cd   : > { %v2447_v1 = vpop.f32.mrf.mxu1  ;;  %3994 = vrot.lane.b32.xlu0 %v3993_v2, %s4531_s18 }
 0x3d2   : > { %v2324_v8 = vpop.f32.mrf.mxu0 }
 0x3d3   : > { %v4008_v34 = vpack.i.bf16 %v2324_v8, %v6247_v27  ;;  %v2579_v56 = vpop.f32.mrf.mxu2  ;;  %v2830_v27 = vld [vmem:[#allocation11 + $0x18] sm:$0xff] }
 0x3d4   : > { %v4003_v51 = vpack.i.bf16 %v2579_v56, %v2576_v36  ;;  %3688 = vmatpush.msra.mxu3 %v2830_v27  ;;  %3687 = vmatpush.msrb.mxu2 %v2830_v27 }
 0x3d5   : > { %v2450_v33 = vpop.f32.mrf.mxu1  ;;  %4009 = vrot.lane.b32.xlu0 %v4008_v34, %s4531_s18  ;;  %2859 = vmatpush.msrb.mxu0 %v2830_v27 }
 0x3d6   : > { %v3998_v11 = vpack.i.bf16 %v2450_v33, %v2447_v1  ;;  %4004 = vrot.lane.b32.xlu2 %v4003_v51, %s4530_s17  ;;  %3691 = vmatpush.msra.mxu3 %v2829_v41 }
 0x3d7   : > { %3690 = vmatpush.msrb.mxu2 %v2829_v41  ;;  %3686 = vmatpush.msrb.mxu1 %v2830_v27 }
 0x3d8   : > { %3999 = vrot.lane.b32.xlu1 %v3998_v11, %s4529_s8  ;;  %3694 = vmatpush.msra.mxu3 %v2828_v55 }
 0x3d9   : > { %3693 = vmatpush.msrb.mxu2 %v2828_v55  ;;  %2860 = vmatpush.msrb.mxu0 %v2829_v41 }
 0x3da   : > { %3697 = vmatpush.msra.mxu3 %v2827_v23  ;;  %3689 = vmatpush.msrb.mxu1 %v2829_v41 }
 0x3db   : > { %v2582_v19 = vpop.f32.mrf.mxu2  ;;  %3696 = vmatpush.msrb.mxu2 %v2827_v23  ;;  %2861 = vmatpush.msrb.mxu0 %v2828_v55 }
 0x3dc   : > { %v4028_v42 = vpack.i.bf16 %v2582_v19, %v6257_v6  ;;  %v2143_v6 = vpop.f32.mrf.mxu3  ;;  %3692 = vmatpush.msrb.mxu1 %v2828_v55 }
 0x3dd   : > { %v2453_v22 = vpop.f32.mrf.mxu1  ;;  %4014 = vrot.lane.b32.xlu0 %v4013_v52, %s4531_s18  ;;  %2862 = vmatpush.msrb.mxu0 %v2827_v23 }
 0x3de   : > { %v4018_v45 = vpack.i.bf16 %v2453_v22, %v6259_v44  ;;  %4029 = vrot.lane.b32.xlu2 %v4028_v42, %s4530_s17  ;;  %3695 = vmatpush.msrb.mxu1 %v2827_v23 }
 0x3e0   : > { %4019 = vrot.lane.b32.xlu1 %v4018_v45, %s4529_s8  ;;  %v3930_v58 = vpop.permute.xlu2 %3929 }
 0x3e1   : > { %v3931_v47 = vunpack.i.l.bf16 %v3930_v58  ;;  %v3932_v13 = vunpack.i.h.bf16 %v3930_v58 }
 0x3e4   : > { %v2146_v4 = vpop.f32.mrf.mxu3 }
 0x3e6   : > { %4034 = vrot.lane.b32.xlu2 %v4033_v15, %s4530_s17  ;;  %s3344_s17 = scalar_lea.sflag [#allocation4], %s4754_s26 }
 0x3e8   : > { %4024 = vrot.lane.b32.xlu1 %v4023_v17, %s4529_s8  ;;  %s3358_s8 = sshll.u32 %s3355_s25, 4  ;;  %s3359_s8 = int_to_ptr.hbm [resolvable:$true] %s3358_s8 }
 0x3e9   : > { %s4453_s18 = sshra.s32 %s3359_s8, 4  ;;  %s4454_s18 = int_to_ptr.hbm [resolvable:$true] %s4453_s18 }
 0x3ea   : > { %s4455_s28 = scalar_lea.hbm %s4454_s18, 128  ;;  %p4460_p2 = scmp.lt.s32.totalorder %s4454_s18, %s6774_s12 }
 0x3eb   : > { %p4456_p1 = scmp.ne.s32.totalorder %s4454_s18, %s4455_s28  ;;  %p4461_p10 = scmp.lt.s32.totalorder %s4459_s30, %s4455_s28 }
 0x3ec   : > { %v2149_v52 = vpop.f32.mrf.mxu3 }
 0x3ed   : > { %p4457_p4 = pnand %p4456_p1, %p4696_p3  ;;  %p4462_p9 = por %p4461_p10, %p4460_p2 }
 0x3ef   : > { %v3920_v25 = vpop.permute.xlu0 %3919  ;;  %p4458_p8 = pneg %p4457_p4 }
 0x3f0   : > { %v3921_v44 = vunpack.i.l.bf16 %v3920_v25  ;;  %v3922_v15 = vunpack.i.h.bf16 %v3920_v25  ;;  %v3945_v20 = vpop.permute.xlu2 %3944 }
 0x3f1   : > { %v3946_v59 = vunpack.i.l.bf16 %v3945_v20  ;;  %v3947_v63 = vunpack.i.h.bf16 %v3945_v20  ;;  %p4463_p11 = pnand %p4462_p9, %p4458_p8 }
 0x3f2   : > { %v2780_v48 = vsel %vm832_vm0, %v2143_v6, %v3921_v44  ;;  %v2781_v38 = vsel %vm832_vm0, %v2146_v4, %v3922_v15 }
 0x3f4   : > { %v2152_v17 = vpop.f32.mrf.mxu3 }
 0x3fa   : > { %v3925_v61 = vpop.permute.xlu1 %3924 }
 0x3fb   : > { %v3926_v49 = vunpack.i.l.bf16 %v3925_v61  ;;  %v3927_v39 = vunpack.i.h.bf16 %v3925_v61 }
 0x3fc   : > { %v2155_v26 = vpop.f32.mrf.mxu3 }
 0x3fd   : > { %v2797_v50 = vsel %vm2793_vm5, %v2780_v48, %v3926_v49  ;;  %v2798_v53 = vsel %vm2793_vm5, %v2781_v38, %v3927_v39 }
 0x3fe   : > { %v2814_v30 = vsel %vm2810_vm6, %v2797_v50, %v3931_v47  ;;  %v2815_v32 = vsel %vm2810_vm6, %v2798_v53, %v3932_v13 }
 0x3ff   : > { %2872 = vmatmul.f32.vlgmr.msra.gmra.mxu3 %v2814_v30  ;;  %v3935_v3 = vpop.permute.xlu0 %3934 }
 0x400   : > { %v3936_v54 = vunpack.i.l.bf16 %v3935_v3  ;;  %v3937_v60 = vunpack.i.h.bf16 %v3935_v3  ;;  %v3960_v16 = vpop.permute.xlu2 %3959 }
 0x401   : > { %v3961_v37 = vunpack.i.l.bf16 %v3960_v16  ;;  %v3962_v46 = vunpack.i.h.bf16 %v3960_v16 }
 0x402   : > { %v2782_v28 = vsel %vm832_vm0, %v2149_v52, %v3936_v54  ;;  %v2783_v7 = vsel %vm832_vm0, %v2152_v17, %v3937_v60 }
 0x404   : > { %v2158_v18 = vpop.f32.mrf.mxu3 }
 0x407   : > { %2875 = vmatmul.f32.gmra.mxu3 %v2815_v32 }
 0x40a   : > { %v3940_v35 = vpop.permute.xlu1 %3939 }
 0x40b   : > { %v3941_v10 = vunpack.i.l.bf16 %v3940_v35  ;;  %v3942_v5 = vunpack.i.h.bf16 %v3940_v35 }
 0x40c   : > { %v2161_v43 = vpop.f32.mrf.mxu3 }
 0x40d   : > { %v2799_v9 = vsel %vm2793_vm5, %v2782_v28, %v3941_v10  ;;  %v2800_v31 = vsel %vm2793_vm5, %v2783_v7, %v3942_v5 }
 0x40e   : > { %v2816_v62 = vsel %vm2810_vm6, %v2799_v9, %v3946_v59  ;;  %v2817_v29 = vsel %vm2810_vm6, %v2800_v31, %v3947_v63 }
 0x40f   : > { %2878 = vmatmul.f32.gmra.mxu3 %v2816_v62  ;;  %v3950_v12 = vpop.permute.xlu0 %3949 }
 0x410   : > { %v3951_v57 = vunpack.i.l.bf16 %v3950_v12  ;;  %v3952_v0 = vunpack.i.h.bf16 %v3950_v12  ;;  %v3975_v19 = vpop.permute.xlu2 %3974 }
 0x411   : > { %v3976_v55 = vunpack.i.l.bf16 %v3975_v19  ;;  %v3977_v61 = vunpack.i.h.bf16 %v3975_v19 }
 0x412   : > { %v2784_v1 = vsel %vm832_vm0, %v2155_v26, %v3951_v57  ;;  %v2785_v51 = vsel %vm832_vm0, %v2158_v18, %v3952_v0 }
 0x414   : > { %v2164_v27 = vpop.f32.mrf.mxu3 }
 0x417   : > { %2881 = vmatmul.f32.gmra.mxu3 %v2817_v29 }
 0x41a   : > { %v3955_v2 = vpop.permute.xlu1 %3954 }
 0x41b   : > { %v3956_v36 = vunpack.i.l.bf16 %v3955_v2  ;;  %v3957_v56 = vunpack.i.h.bf16 %v3955_v2 }
 0x41c   : > { %v2167_v52 = vpop.f32.mrf.mxu3 }
 0x41d   : > { %v2801_v8 = vsel %vm2793_vm5, %v2784_v1, %v3956_v36  ;;  %v2802_v33 = vsel %vm2793_vm5, %v2785_v51, %v3957_v56 }
 0x41e   : > { %v2818_v34 = vsel %vm2810_vm6, %v2801_v8, %v3961_v37  ;;  %v2819_v40 = vsel %vm2810_vm6, %v2802_v33, %v3962_v46 }
 0x41f   : > { %2884 = vmatmul.f32.gmra.mxu3 %v2818_v34  ;;  %v3965_v11 = vpop.permute.xlu0 %3964 }
 0x420   : > { %v3966_v41 = vunpack.i.l.bf16 %v3965_v11  ;;  %v3967_v6 = vunpack.i.h.bf16 %v3965_v11  ;;  %v3990_v50 = vpop.permute.xlu2 %3989 }
 0x421   : > { %v3991_v17 = vunpack.i.l.bf16 %v3990_v50  ;;  %v3992_v35 = vunpack.i.h.bf16 %v3990_v50 }
 0x422   : > { %v2786_v45 = vsel %vm832_vm0, %v2161_v43, %v3966_v41  ;;  %v2787_v44 = vsel %vm832_vm0, %v2164_v27, %v3967_v6 }
 0x424   : > { %v2170_v39 = vpop.f32.mrf.mxu3 }
 0x427   : > { %2887 = vmatmul.f32.gmra.mxu3 %v2819_v40 }
 0x42a   : > { %v3970_v42 = vpop.permute.xlu1 %3969 }
 0x42b   : > { %v3971_v22 = vunpack.i.l.bf16 %v3970_v42  ;;  %v3972_v25 = vunpack.i.h.bf16 %v3970_v42 }
 0x42c   : > { %v2173_v59 = vpop.f32.mrf.mxu3 }
 0x42d   : > { %v2803_v23 = vsel %vm2793_vm5, %v2786_v45, %v3971_v22  ;;  %v2804_v58 = vsel %vm2793_vm5, %v2787_v44, %v3972_v25 }
 0x42e   : > { %v2820_v4 = vsel %vm2810_vm6, %v2803_v23, %v3976_v55  ;;  %v2821_v47 = vsel %vm2810_vm6, %v2804_v58, %v3977_v61 }
 0x42f   : > { %2890 = vmatmul.f32.gmra.mxu3 %v2820_v4  ;;  %v3980_v49 = vpop.permute.xlu0 %3979 }
 0x430   : > { %v3981_v48 = vunpack.i.l.bf16 %v3980_v49  ;;  %v3982_v13 = vunpack.i.h.bf16 %v3980_v49  ;;  %v4005_v10 = vpop.permute.xlu2 %4004 }
 0x431   : > { %v4006_v7 = vunpack.i.l.bf16 %v4005_v10  ;;  %v4007_v43 = vunpack.i.h.bf16 %v4005_v10 }
 0x432   : > { %v2788_v38 = vsel %vm832_vm0, %v2167_v52, %v3981_v48  ;;  %v2789_v20 = vsel %vm832_vm0, %v2170_v39, %v3982_v13 }
 0x434   : > { %v2176_v16 = vpop.f32.mrf.mxu3 }
 0x437   : > { %2893 = vmatmul.f32.gmra.mxu3 %v2821_v47 }
 0x438   : > { %v4030_v63 = vpop.permute.xlu2 %4029 }
 0x439   : > { %v4031_v0 = vunpack.i.l.bf16 %v4030_v63  ;;  %v4032_v44 = vunpack.i.h.bf16 %v4030_v63 }
 0x43a   : > { %v3985_v15 = vpop.permute.xlu1 %3984 }
 0x43b   : > { %v3986_v30 = vunpack.i.l.bf16 %v3985_v15  ;;  %v3987_v32 = vunpack.i.h.bf16 %v3985_v15 }
 0x43c   : > { %v2179_v42 = vpop.f32.mrf.mxu3 }
 0x43d   : > { %v2805_v53 = vsel %vm2793_vm5, %v2788_v38, %v3986_v30  ;;  %v2806_v26 = vsel %vm2793_vm5, %v2789_v20, %v3987_v32  ;;  %v4243_v32 = vld [vmem:[%s4761_s21 + $0x10] sm:$0xff] }
 0x43e   : > { %v2822_v3 = vsel %vm2810_vm6, %v2805_v53, %v3991_v17  ;;  %v2823_v28 = vsel %vm2810_vm6, %v2806_v26, %v3992_v35  ;;  %v6357_v17 = vld [vmem:[%s6771_s9] ss:$0 sm:$0xff] }
 0x43f   : > { %2896 = vmatmul.f32.gmra.mxu3 %v2822_v3  ;;  %v3995_v54 = vpop.permute.xlu0 %3994  ;;  %v4244_v35 = vld [vmem:[%s4761_s21] sm:$0xff] }
 0x440   : > { %v3996_v9 = vunpack.i.l.bf16 %v3995_v54  ;;  %v3997_v12 = vunpack.i.h.bf16 %v3995_v54  ;;  %v4035_v40 = vpop.permute.xlu2 %4034 }
 0x441   : > { %v4037_v55 = vunpack.i.h.bf16 %v4035_v40  ;;  %v4036_v6 = vunpack.i.l.bf16 %v4035_v40 }
 0x442   : > { %v2790_v31 = vsel %vm832_vm0, %v2173_v59, %v3996_v9  ;;  %v2791_v37 = vsel %vm832_vm0, %v2176_v16, %v3997_v12  ;;  %v4245_v59 = vld [vmem:[%s4761_s21 + $0x8] sm:$0xff]  ;;  %v4247_v12 = vld [vmem:[%s4761_s21 + $0x20] sm:$0xff] }
 0x447   : > { %2899 = vmatmul.f32.gmra.mxu3 %v2823_v28  ;;  %v4010_v62 = vpop.permute.xlu0 %4009 }
 0x448   : > { %v4011_v2 = vunpack.i.l.bf16 %v4010_v62  ;;  %v4012_v11 = vunpack.i.h.bf16 %v4010_v62 }
 0x44a   : > { %v4000_v60 = vpop.permute.xlu1 %3999  ;;  %v2779_v34 = vsel %vm832_vm0, %v6284_v21, %v4011_v2  ;;  %v2792_v21 = vsel %vm832_vm0, %v2179_v42, %v4012_v11 }
 0x44b   : > { %v4001_v5 = vunpack.i.l.bf16 %v4000_v60  ;;  %v4002_v57 = vunpack.i.h.bf16 %v4000_v60 }
 0x44d   : > { %v2807_v18 = vsel %vm2793_vm5, %v2790_v31, %v4001_v5  ;;  %v2808_v8 = vsel %vm2793_vm5, %v2791_v37, %v4002_v57  ;;  %v4248_v37 = vld [vmem:[%s4761_s21 + $0x28] sm:$0xff] }
 0x44e   : > { %v2824_v29 = vsel %vm2810_vm6, %v2807_v18, %v4006_v7  ;;  %v2825_v46 = vsel %vm2810_vm6, %v2808_v8, %v4007_v43  ;;  %v4246_v18 = vld [vmem:[%s4761_s21 + $0x18] sm:$0xff] }
 0x44f   : > { %2902 = vmatmul.f32.gmra.mxu3 %v2824_v29  ;;  %v4015_v56 = vpop.permute.xlu0 %4014 }
 0x450   : > { %v4017_v27 = vunpack.i.h.bf16 %v4015_v56  ;;  %v4016_v41 = vunpack.i.l.bf16 %v4015_v56  ;;  %v4249_v56 = vld [vmem:[%s4761_s21 + $0x30] sm:$0xff] }
 0x452   : > { %v4020_v36 = vpop.permute.xlu1 %4019  ;;  %v2778_v4 = vsel %vm832_vm0, %v6278_v14, %v4017_v27  ;;  %v2777_v25 = vsel %vm832_vm0, %v6274_v24, %v4016_v41 }
 0x453   : > { %v4021_v1 = vunpack.i.l.bf16 %v4020_v36  ;;  %v4022_v19 = vunpack.i.h.bf16 %v4020_v36 }
 0x455   : > { %v2796_v51 = vsel %vm2793_vm5, %v2779_v34, %v4021_v1  ;;  %v2809_v52 = vsel %vm2793_vm5, %v2792_v21, %v4022_v19  ;;  %v4251_v19 = vld [vmem:[%s4761_s21 + $0x40] sm:$0xff]  ;;  %v4252_v21 = vld [vmem:[%s4761_s21 + $0x48] sm:$0xff] }
 0x456   : > { %v2813_v33 = vsel %vm2810_vm6, %v2796_v51, %v4031_v0  ;;  %v2826_v48 = vsel %vm2810_vm6, %v2809_v52, %v4032_v44 }
 0x457   : > { %2869 = vmatmul.f32.vlgmr.msrb.gmra.mxu2 %v2813_v33  ;;  %2905 = vmatmul.f32.gmra.mxu3 %v2825_v46  ;;  %v4250_v33 = vld [vmem:[%s4761_s21 + $0x38] sm:$0xff] }
 0x45a   : > { %v4025_v22 = vpop.permute.xlu1 %4024 }
 0x45b   : > { %v4027_v45 = vunpack.i.h.bf16 %v4025_v22  ;;  %v4026_v23 = vunpack.i.l.bf16 %v4025_v22 }
 0x45d   : > { %v2794_v58 = vsel %vm2793_vm5, %v2777_v25, %v4026_v23  ;;  %v2795_v61 = vsel %vm2793_vm5, %v2778_v4, %v4027_v45  ;;  %v4253_v4 = vld [vmem:[%s4761_s21 + $0x50] sm:$0xff] }
 0x45e   : > { %v2811_v49 = vsel %vm2810_vm6, %v2794_v58, %v4036_v6  ;;  %v2812_v47 = vsel %vm2810_vm6, %v2795_v61, %v4037_v55  ;;  %v4254_v61 = vld [vmem:[%s4761_s21 + $0x58] sm:$0xff] }
 0x45f   : > { %2863 = vmatmul.f32.vlgmr.msrb.gmra.mxu0 %v2811_v49  ;;  %2866 = vmatmul.f32.vlgmr.msrb.gmra.mxu1 %v2812_v47 }
 0x460   : > { %2908 = vmatmul.f32.gmra.mxu3 %v2826_v48 }
 0x482   : > { %v2873_v14 = vpop.f32.mrf.mxu3 }
 0x483   : > { %v2874_v62 = vadd.f32 %v6357_v17, %v2873_v14 }
 0x485   : > { %v6383_v63 = vadd.f32 %v4246_v18, %v2874_v62 }
 0x487   : > { %v2986_v36 = vmul.f32 %v6383_v63, %v6383_v63 }
 0x48a   : > { %v2876_v24 = vpop.f32.mrf.mxu3 }
 0x48b   : > { %v2877_v5 = vadd.f32 %v6357_v17, %v2876_v24  ;;  %v4255_v24 = vld [vmem:[%s4761_s21 + $0x60] sm:$0xff] }
 0x48d   : > { %v6386_v29 = vadd.f32 %v4247_v12, %v2877_v5 }
 0x48f   : > { %v2987_v2 = vmul.f32 %v6386_v29, %v6386_v29 }
 0x492   : > { %v2879_v50 = vpop.f32.mrf.mxu3 }
 0x493   : > { %v2880_v16 = vadd.f32 %v6357_v17, %v2879_v50 }
 0x495   : > { %v6395_v1 = vadd.f32 %v4248_v37, %v2880_v16 }
 0x497   : > { %v2988_v8 = vmul.f32 %v6395_v1, %v6395_v1 }
 0x49a   : > { %v2882_v15 = vpop.f32.mrf.mxu3 }
 0x49b   : > { %v2883_v0 = vadd.f32 %v6357_v17, %v2882_v15 }
 0x49d   : > { %v6404_v51 = vadd.f32 %v4249_v56, %v2883_v0 }
 0x49f   : > { %v2989_v27 = vmul.f32 %v6404_v51, %v6404_v51 }
 0x4a2   : > { %v2885_v30 = vpop.f32.mrf.mxu3 }
 0x4a3   : > { %v2886_v34 = vadd.f32 %v6357_v17, %v2885_v30 }
 0x4a5   : > { %v6407_v46 = vadd.f32 %v4250_v33, %v2886_v34 }
 0x4a7   : > { %v2990_v40 = vmul.f32 %v6407_v46, %v6407_v46 }
 0x4aa   : > { %v2888_v39 = vpop.f32.mrf.mxu3 }
 0x4ab   : > { %v2889_v11 = vadd.f32 %v6357_v17, %v2888_v39 }
 0x4ad   : > { %v6416_v42 = vadd.f32 %v4251_v19, %v2889_v11 }
 0x4af   : > { %v2991_v22 = vmul.f32 %v6416_v42, %v6416_v42 }
 0x4b2   : > { %v2891_v9 = vpop.f32.mrf.mxu3 }
 0x4b3   : > { %v2892_v55 = vadd.f32 %v6357_v17, %v2891_v9 }
 0x4b5   : > { %v6425_v6 = vadd.f32 %v4252_v21, %v2892_v55 }
 0x4b7   : > { %v2992_v58 = vmul.f32 %v6425_v6, %v6425_v6 }
 0x4ba   : > { %v2894_v57 = vpop.f32.mrf.mxu3 }
 0x4bb   : > { %v2895_v45 = vadd.f32 %v6357_v17, %v2894_v57 }
 0x4bd   : > { %v6428_v25 = vadd.f32 %v4253_v4, %v2895_v45 }
 0x4bf   : > { %v2993_v44 = vmul.f32 %v6428_v25, %v6428_v25 }
 0x4c2   : > { %v2897_v43 = vpop.f32.mrf.mxu3 }
 0x4c3   : > { %v2898_v52 = vadd.f32 %v6357_v17, %v2897_v43 }
 0x4c5   : > { %v6437_v49 = vadd.f32 %v4254_v61, %v2898_v52 }
 0x4c7   : > { %v2994_v48 = vmul.f32 %v6437_v49, %v6437_v49 }
 0x4ca   : > { %v2900_v41 = vpop.f32.mrf.mxu3 }
 0x4cb   : > { %v2901_v14 = vadd.f32 %v6357_v17, %v2900_v41 }
 0x4cd   : > { %v6445_v50 = vadd.f32 %v4255_v24, %v2901_v14 }
 0x4d2   : > { %v2903_v23 = vpop.f32.mrf.mxu3 }
 0x4d3   : > { %v2904_v39 = vadd.f32 %v6357_v17, %v2903_v23 }
 0x4da   : > { %v2870_v38 = vpop.f32.mrf.mxu2  ;;  %v2906_v47 = vpop.f32.mrf.mxu3 }
 0x4db   : > { %v2871_v53 = vadd.f32 %v6357_v17, %v2870_v38  ;;  %v2907_v15 = vadd.f32 %v6357_v17, %v2906_v47  ;;  %v4256_v38 = vld [vmem:[%s4761_s21 + $0x70] sm:$0xff] }
 0x4dc   : > { %v2864_v13 = vpop.f32.mrf.mxu0  ;;  %v2867_v3 = vpop.f32.mrf.mxu1 }
 0x4dd   : > { %v6361_v54 = vadd.f32 %v4243_v32, %v2871_v53  ;;  %v2865_v20 = vadd.f32 %v6357_v17, %v2864_v13  ;;  %v2868_v26 = vadd.f32 %v6357_v17, %v2867_v3  ;;  %v6450_v53 = vadd.f32 %v4256_v38, %v2907_v15  ;;  %v4257_v32 = vld [vmem:[%s4761_s21 + $0x68] sm:$0xff] }
 0x4de   : > { %v2995_v13 = vmul.f32 %v6445_v50, %v6445_v50 }
 0x4df   : > { %v6366_v10 = vadd.f32 %v4244_v35, %v2865_v20  ;;  %v6369_v28 = vadd.f32 %v4245_v59, %v2868_v26  ;;  %2932 = vadd.xlane.f32.xlu2 %v6361_v54  ;;  %v2985_v60 = vmul.f32 %v6361_v54, %v6361_v54  ;;  %v6458_v20 = vadd.f32 %v4257_v32, %v2904_v39  ;;  %v4258_v26 = vld [vmem:[%s4761_s21 + $0x78] sm:$0xff] }
 0x4e1   : > { %2930 = vadd.xlane.f32.xlu1 %v6369_v28  ;;  %2928 = vadd.xlane.f32.xlu0 %v6366_v10  ;;  %v2984_v7 = vmul.f32 %v6369_v28, %v6369_v28  ;;  %v2983_v31 = vmul.f32 %v6366_v10, %v6366_v10  ;;  %v2996_v59 = vmul.f32 %v6458_v20, %v6458_v20 }
 0x4e3   : > { %v2909_v30 = vpop.f32.mrf.mxu3 }
 0x4e4   : > { %v2910_v3 = vadd.f32 %v6357_v17, %v2909_v30  ;;  %v2997_v17 = vmul.f32 %v6450_v53, %v6450_v53 }
 0x4e6   : > { %v6461_v35 = vadd.f32 %v4258_v26, %v2910_v3 }
 0x4e7   : > { %3003 = vadd.xlane.f32.xlu2 %v2985_v60  ;;  %v4532_v60 = vmov 128.0  }
 0x4e8   : > { %v2998_v9 = vmul.f32 %v6461_v35, %v6461_v35  ;;  %4204 = vrcp.f32 %v4532_v60 }
 0x4e9   : > { %3001 = vadd.xlane.f32.xlu1 %v2984_v7  ;;  %2999 = vadd.xlane.f32.xlu0 %v2983_v31 }
 0x4ee   : > { %v4205_v62 = vpop.eup %4204 }
 0x4ef   : > { %2934 = vadd.xlane.f32.xlu2 %v6383_v63  ;;  %v2961_v5 = vmul.f32 128.0, %v4205_v62  ;;  %vm2965_vm0 = vweird.f32 %v4205_v62 }
 0x4f1   : > { %3007 = vadd.xlane.f32.xlu1 %v2987_v2  ;;  %3005 = vadd.xlane.f32.xlu0 %v2986_v36  ;;  %v2962_v7 = vsub.f32 1.0, %v2961_v5 }
 0x4f3   : > { %v2963_v31 = vmul.f32 %v4205_v62, %v2962_v7 }
 0x4f5   : > { %v2964_v18 = vadd.f32 %v4205_v62, %v2963_v31 }
 0x4f7   : > { %3009 = vadd.xlane.f32.xlu2 %v2988_v8  ;;  %v6471_v57 = vsel %vm2965_vm0, %v4205_v62, %v2964_v18 }
 0x4f9   : > { %2938 = vadd.xlane.f32.xlu1 %v6395_v1  ;;  %2936 = vadd.xlane.f32.xlu0 %v6386_v29 }
 0x4ff   : > { %2940 = vadd.xlane.f32.xlu2 %v6404_v51 }
 0x501   : > { %3013 = vadd.xlane.f32.xlu1 %v2990_v40  ;;  %3011 = vadd.xlane.f32.xlu0 %v2989_v27 }
 0x507   : > { %3015 = vadd.xlane.f32.xlu2 %v2991_v22 }
 0x509   : > { %2944 = vadd.xlane.f32.xlu1 %v6416_v42  ;;  %2942 = vadd.xlane.f32.xlu0 %v6407_v46 }
 0x50f   : > { %2946 = vadd.xlane.f32.xlu2 %v6425_v6 }
 0x511   : > { %3019 = vadd.xlane.f32.xlu1 %v2993_v44  ;;  %3017 = vadd.xlane.f32.xlu0 %v2992_v58 }
 0x517   : > { %3021 = vadd.xlane.f32.xlu2 %v2994_v48 }
 0x519   : > { %2950 = vadd.xlane.f32.xlu1 %v6437_v49  ;;  %2948 = vadd.xlane.f32.xlu0 %v6428_v25 }
 0x51f   : > { %2952 = vadd.xlane.f32.xlu2 %v6445_v50 }
 0x521   : > { %2956 = vadd.xlane.f32.xlu1 %v6450_v53  ;;  %3023 = vadd.xlane.f32.xlu0 %v2995_v13 }
 0x527   : > { %2958 = vadd.xlane.f32.xlu2 %v6461_v35 }
 0x529   : > { %3025 = vadd.xlane.f32.xlu1 %v2996_v59  ;;  %2954 = vadd.xlane.f32.xlu0 %v6458_v20 }
 0x52f   : > { %3027 = vadd.xlane.f32.xlu2 %v2997_v17 }
 0x531   : > { %3029 = vadd.xlane.f32.xlu0 %v2998_v9 }
 0x552   : > { %v2933_v12 = vpop.xlane.xlu2 %2932 }
 0x553   : > { %v6474_v36 = vmul.f32 %v6471_v57, %v2933_v12 }
 0x554   : > { %v2931_v16 = vpop.xlane.xlu1 %2930  ;;  %v2929_v2 = vpop.xlane.xlu0 %2928 }
 0x555   : > { %v6477_v37 = vmul.f32 %v6471_v57, %v2931_v16  ;;  %v6480_v8 = vmul.f32 %v6471_v57, %v2929_v2  ;;  %v3049_v0 = vmul.f32 %v6474_v36, %v6474_v36  ;;  %v3081_v26 = vsub.f32 %v6361_v54, %v6474_v36 }
 0x557   : > { %v3048_v56 = vmul.f32 %v6477_v37, %v6477_v37  ;;  %v3047_v40 = vmul.f32 %v6480_v8, %v6480_v8  ;;  %v3080_v59 = vsub.f32 %v6369_v28, %v6477_v37 }
 0x55a   : > { %v3004_v43 = vpop.xlane.xlu2 %3003 }
 0x55b   : > { %v3033_v34 = vmul.f32 %v3004_v43, %v6471_v57 }
 0x55c   : > { %v3002_v33 = vpop.xlane.xlu1 %3001  ;;  %v3000_v11 = vpop.xlane.xlu0 %2999 }
 0x55d   : > { %v3065_v27 = vsub.f32 %v3033_v34, %v3049_v0  ;;  %v3032_v41 = vmul.f32 %v3002_v33, %v6471_v57  ;;  %v3031_v19 = vmul.f32 %v3000_v11, %v6471_v57  ;;  %v6523_v34 = vld [vmem:[%s6772_s10] ss:$0 sm:$0xff] }
 0x55f   : > { %v3097_v22 = vadd.f32 1e-12, %v3065_v27  ;;  %v3064_v55 = vsub.f32 %v3032_v41, %v3048_v56  ;;  %v3063_v45 = vsub.f32 %v3031_v19, %v3047_v40 }
 0x561   : > { %4206 = vrsqrt.f32 %v3097_v22  ;;  %v3096_v23 = vadd.f32 1e-12, %v3064_v55  ;;  %v6491_v21 = vadd.f32 1e-12, %v3063_v45  ;;  %vm3137_vm7 = vweird.f32 %v3097_v22  ;;  %v6531_v55 = vld [vmem:[%s6773_s11] ss:$0 sm:$0xff] }
 0x562   : > { %v2935_v4 = vpop.xlane.xlu2 %2934 }
 0x563   : > { %4208 = vrsqrt.f32 %v3096_v23  ;;  %v6494_v52 = vmul.f32 %v6471_v57, %v2935_v4  ;;  %vm3127_vm9 = vweird.f32 %v3096_v23  ;;  %vm3117_vm13 = vweird.f32 %v6491_v21 }
 0x564   : > { %4210 = vrsqrt.f32 %v6491_v21  ;;  %v3008_v44 = vpop.xlane.xlu1 %3007  ;;  %v3006_v58 = vpop.xlane.xlu0 %3005 }
 0x565   : > { %v3050_v61 = vmul.f32 %v6494_v52, %v6494_v52  ;;  %v3034_v47 = vmul.f32 %v3006_v58, %v6471_v57  ;;  %v3035_v54 = vmul.f32 %v3008_v44, %v6471_v57 }
 0x567   : > { %v4207_v48 = vpop.eup %4206  ;;  %v3066_v14 = vsub.f32 %v3034_v47, %v3050_v61 }
 0x568   : > { %v3132_v24 = vmul.f32 %v4207_v48, %v3097_v22  ;;  %vm3138_vm8 = vweird.f32 %v4207_v48 }
 0x569   : > { %v4209_v15 = vpop.eup %4208  ;;  %v6500_v30 = vadd.f32 1e-12, %v3066_v14  ;;  %vm3139_vm11 = vmor %vm3137_vm7, %vm3138_vm8 }
 0x56a   : > { %v4211_v39 = vpop.eup %4210  ;;  %v3133_v38 = vmul.f32 %v4207_v48, %v3132_v24  ;;  %v3122_v13 = vmul.f32 %v4209_v15, %v3096_v23  ;;  %v3010_v3 = vpop.xlane.xlu2 %3009  ;;  %vm3128_vm10 = vweird.f32 %v4209_v15 }
 0x56b   : > { %v3112_v32 = vmul.f32 %v4211_v39, %v6491_v21  ;;  %4212 = vrsqrt.f32 %v6500_v30  ;;  %v3036_v28 = vmul.f32 %v3010_v3, %v6471_v57  ;;  %vm3118_vm12 = vweird.f32 %v4211_v39  ;;  %vm3129_vm14 = vmor %vm3127_vm9, %vm3128_vm10 }
 0x56c   : > { %v3134_v17 = vmul.f32 0.5, %v3133_v38  ;;  %v3123_v9 = vmul.f32 %v4209_v15, %v3122_v13  ;;  %v2939_v60 = vpop.xlane.xlu1 %2938  ;;  %v2937_v62 = vpop.xlane.xlu0 %2936  ;;  %v3079_v21 = vsub.f32 %v6366_v10, %v6480_v8  ;;  %vm3119_vm15 = vmor %vm3117_vm13, %vm3118_vm12  ;;  %vm3147_vm2 = vweird.f32 %v6500_v30 }
 0x56d   : > { %v3113_v5 = vmul.f32 %v4211_v39, %v3112_v32  ;;  %v6509_v7 = vmul.f32 %v6471_v57, %v2939_v60  ;;  %v6512_v31 = vmul.f32 %v6471_v57, %v2937_v62 }
 0x56e   : > { %v3135_v18 = vsub.f32 1.5, %v3134_v17  ;;  %v3124_v12 = vmul.f32 0.5, %v3123_v9 }
 0x56f   : > { %v3114_v16 = vmul.f32 0.5, %v3113_v5  ;;  %v3052_v2 = vmul.f32 %v6509_v7, %v6509_v7  ;;  %v3051_v36 = vmul.f32 %v6512_v31, %v6512_v31  ;;  %v3082_v5 = vsub.f32 %v6383_v63, %v6494_v52 }
 0x570   : > { %v3136_v37 = vmul.f32 %v4207_v48, %v3135_v18  ;;  %v3125_v43 = vsub.f32 1.5, %v3124_v12 }
 0x571   : > { %v4213_v0 = vpop.eup %4212  ;;  %v3115_v56 = vsub.f32 1.5, %v3114_v16  ;;  %v3068_v33 = vsub.f32 %v3036_v28, %v3052_v2  ;;  %v3067_v11 = vsub.f32 %v3035_v54, %v3051_v36 }
 0x572   : > { %v3140_v40 = vsel %vm3139_vm11, %v4207_v48, %v3136_v37  ;;  %v3126_v27 = vmul.f32 %v4209_v15, %v3125_v43  ;;  %v3142_v41 = vmul.f32 %v4213_v0, %v6500_v30  ;;  %v2941_v19 = vpop.xlane.xlu2 %2940  ;;  %vm3148_vm1 = vweird.f32 %v4213_v0 }
 0x573   : > { %v3273_v45 = vmul.f32 %v3140_v40, %v3081_v26  ;;  %v3116_v22 = vmul.f32 %v4211_v39, %v3115_v56  ;;  %v6535_v4 = vadd.f32 1e-12, %v3068_v33  ;;  %v6537_v44 = vadd.f32 1e-12, %v3067_v11  ;;  %vm3149_vm3 = vmor %vm3147_vm2, %vm3148_vm1 }
 0x574   : > { %v3130_v58 = vsel %vm3129_vm14, %v4209_v15, %v3126_v27  ;;  %v3143_v61 = vmul.f32 %v4213_v0, %v3142_v41  ;;  %v6543_v47 = vmul.f32 %v6471_v57, %v2941_v19  ;;  %v3014_v48 = vpop.xlane.xlu1 %3013  ;;  %v3012_v14 = vpop.xlane.xlu0 %3011 }
 0x575   : > { %v3293_v23 = vmul.f32 %v6523_v34, %v3273_v45  ;;  %v3272_v24 = vmul.f32 %v3130_v58, %v3080_v59  ;;  %v3120_v38 = vsel %vm3119_vm15, %v4211_v39, %v3116_v22  ;;  %4214 = vrsqrt.f32 %v6535_v4 }
 0x576   : > { %v3271_v13 = vmul.f32 %v3120_v38, %v3079_v21  ;;  %v3144_v3 = vmul.f32 0.5, %v3143_v61  ;;  %4216 = vrsqrt.f32 %v6537_v44  ;;  %v3053_v15 = vmul.f32 %v6543_v47, %v6543_v47 }
 0x577   : > { %v3313_v10 = vadd.f32 %v6531_v55, %v3293_v23  ;;  %v3292_v8 = vmul.f32 %v6523_v34, %v3272_v24  ;;  %v3037_v59 = vmul.f32 %v3012_v14, %v6471_v57  ;;  %v3038_v33 = vmul.f32 %v3014_v48, %v6471_v57 }
 0x578   : > { %v3291_v32 = vmul.f32 %v6523_v34, %v3271_v13  ;;  %v3145_v26 = vsub.f32 1.5, %v3144_v3  ;;  %vm3167_vm6 = vweird.f32 %v6535_v4  ;;  %vm3157_vm7 = vweird.f32 %v6537_v44 }
 0x579   : > { %3329 = vst [vmem:[%s6554_s4 + $0x10] sm:$0xff] %v3313_v10  ;;  %v3312_v39 = vadd.f32 %v6531_v55, %v3292_v8  ;;  %v3069_v18 = vsub.f32 %v3037_v59, %v3053_v15  ;;  %v3084_v8 = vsub.f32 %v6395_v1, %v6509_v7  ;;  %v3083_v15 = vsub.f32 %v6386_v29, %v6512_v31 }
 0x57a   : > { %v3311_v17 = vadd.f32 %v6531_v55, %v3291_v32  ;;  %v3146_v9 = vmul.f32 %v4213_v0, %v3145_v26  ;;  %v3016_v60 = vpop.xlane.xlu2 %3015 }
 0x57b   : > { %v4215_v62 = vpop.eup %4214  ;;  %3328 = vst [vmem:[%s6554_s4 + $0x8] sm:$0xff] %v3312_v39  ;;  %v6567_v43 = vadd.f32 1e-12, %v3069_v18  ;;  %v3039_v40 = vmul.f32 %v3016_v60, %v6471_v57 }
 0x57c   : > { %v4217_v12 = vpop.eup %4216  ;;  %3327 = vst [vmem:[%s6554_s4] sm:$0xff] %v3311_v17  ;;  %v3150_v54 = vsel %vm3149_vm3, %v4213_v0, %v3146_v9  ;;  %v3162_v16 = vmul.f32 %v4215_v62, %v6535_v4  ;;  %v2945_v28 = vpop.xlane.xlu1 %2944  ;;  %vm3168_vm4 = vweird.f32 %v4215_v62 }
 0x57d   : > { %v2943_v2 = vpop.xlane.xlu0 %2942  ;;  %v3274_v36 = vmul.f32 %v3150_v54, %v3082_v5  ;;  %v3152_v37 = vmul.f32 %v4217_v12, %v6537_v44  ;;  %v6570_v56 = vmul.f32 %v6471_v57, %v2945_v28  ;;  %4218 = vrsqrt.f32 %v6567_v43  ;;  %vm3169_vm0 = vmor %vm3167_vm6, %vm3168_vm4 }
 0x57e   : > { %v3163_v30 = vmul.f32 %v4215_v62, %v3162_v16  ;;  %v6573_v63 = vmul.f32 %v6471_v57, %v2943_v2  ;;  %vm3158_vm5 = vweird.f32 %v4217_v12  ;;  %vm3177_vm10 = vweird.f32 %v6567_v43 }
 0x57f   : > { %v3294_v52 = vmul.f32 %v6523_v34, %v3274_v36  ;;  %v3153_v0 = vmul.f32 %v4217_v12, %v3152_v37  ;;  %v3055_v27 = vmul.f32 %v6570_v56, %v6570_v56  ;;  %vm3159_vm8 = vmor %vm3157_vm7, %vm3158_vm5 }
 0x580   : > { %v3164_v11 = vmul.f32 0.5, %v3163_v30  ;;  %v3054_v41 = vmul.f32 %v6573_v63, %v6573_v63 }
 0x581   : > { %v3314_v19 = vadd.f32 %v6531_v55, %v3294_v52  ;;  %v3154_v45 = vmul.f32 0.5, %v3153_v0  ;;  %v3071_v21 = vsub.f32 %v3039_v40, %v3055_v27 }
 0x582   : > { %v3165_v22 = vsub.f32 1.5, %v3164_v11  ;;  %v3070_v58 = vsub.f32 %v3038_v33, %v3054_v41  ;;  %v2947_v61 = vpop.xlane.xlu2 %2946  ;;  %v3085_v11 = vsub.f32 %v6404_v51, %v6543_v47 }
 0x583   : > { %3330 = vst [vmem:[%s6554_s4 + $0x18] sm:$0xff] %v3314_v19  ;;  %v3155_v48 = vsub.f32 1.5, %v3154_v45  ;;  %v6586_v14 = vmul.f32 %v6471_v57, %v2947_v61  ;;  %v6589_v24 = vadd.f32 1e-12, %v3071_v21  ;;  %v4219_v10 = vpop.eup %4218 }
 0x584   : > { %v3166_v23 = vmul.f32 %v4215_v62, %v3165_v22  ;;  %v6591_v38 = vadd.f32 1e-12, %v3070_v58  ;;  %v3020_v13 = vpop.xlane.xlu1 %3019  ;;  %v3172_v4 = vmul.f32 %v4219_v10, %v6567_v43  ;;  %vm3178_vm9 = vweird.f32 %v4219_v10 }
 0x585   : > { %v3018_v3 = vpop.xlane.xlu0 %3017  ;;  %v3156_v32 = vmul.f32 %v4217_v12, %v3155_v48  ;;  %4220 = vrsqrt.f32 %v6589_v24  ;;  %v3056_v39 = vmul.f32 %v6586_v14, %v6586_v14  ;;  %vm3179_vm11 = vmor %vm3177_vm10, %vm3178_vm9  ;;  %v3041_v22 = vmul.f32 %v3020_v13, %v6471_v57 }
 0x586   : > { %v3170_v26 = vsel %vm3169_vm0, %v4215_v62, %v3166_v23  ;;  %4222 = vrsqrt.f32 %v6591_v38  ;;  %v3173_v17 = vmul.f32 %v4219_v10, %v3172_v4  ;;  %v3040_v29 = vmul.f32 %v3018_v3, %v6471_v57 }
 0x587   : > { %v3276_v59 = vmul.f32 %v3170_v26, %v3084_v8  ;;  %v3160_v1 = vsel %vm3159_vm8, %v4217_v12, %v3156_v32  ;;  %v3087_v13 = vsub.f32 %v6416_v42, %v6570_v56  ;;  %vm3197_vm14 = vweird.f32 %v6589_v24 }
 0x588   : > { %v3275_v7 = vmul.f32 %v3160_v1, %v3083_v15  ;;  %v3174_v9 = vmul.f32 0.5, %v3173_v17  ;;  %v3072_v60 = vsub.f32 %v3040_v29, %v3056_v39  ;;  %vm3187_vm1 = vweird.f32 %v6591_v38 }
 0x589   : > { %v3296_v31 = vmul.f32 %v6523_v34, %v3276_v59 }
 0x58a   : > { %v3295_v44 = vmul.f32 %v6523_v34, %v3275_v7  ;;  %v3022_v62 = vpop.xlane.xlu2 %3021  ;;  %v3175_v54 = vsub.f32 1.5, %v3174_v9  ;;  %v6610_v16 = vadd.f32 1e-12, %v3072_v60  ;;  %v3086_v7 = vsub.f32 %v6407_v46, %v6573_v63 }
 0x58b   : > { %v3316_v5 = vadd.f32 %v6531_v55, %v3296_v31  ;;  %v4221_v18 = vpop.eup %4220  ;;  %v3042_v27 = vmul.f32 %v3022_v62, %v6471_v57 }
 0x58c   : > { %v3315_v12 = vadd.f32 %v6531_v55, %v3295_v44  ;;  %v2951_v28 = vpop.xlane.xlu1 %2950  ;;  %v4223_v36 = vpop.eup %4222  ;;  %v3192_v37 = vmul.f32 %v4221_v18, %v6589_v24  ;;  %v3176_v0 = vmul.f32 %v4219_v10, %v3175_v54  ;;  %4224 = vrsqrt.f32 %v6610_v16 }
 0x58d   : > { %v2949_v2 = vpop.xlane.xlu0 %2948  ;;  %3332 = vst [vmem:[%s6554_s4 + $0x28] sm:$0xff] %v3316_v5  ;;  %v6615_v30 = vmul.f32 %v6471_v57, %v2951_v28  ;;  %v3182_v33 = vmul.f32 %v4223_v36, %v6591_v38  ;;  %vm3198_vm12 = vweird.f32 %v4221_v18  ;;  %vm3188_vm13 = vweird.f32 %v4223_v36 }
 0x58e   : > { %v6618_v52 = vmul.f32 %v6471_v57, %v2949_v2  ;;  %3331 = vst [vmem:[%s6554_s4 + $0x20] sm:$0xff] %v3315_v12  ;;  %v3193_v40 = vmul.f32 %v4221_v18, %v3192_v37  ;;  %v3180_v19 = vsel %vm3179_vm11, %v4219_v10, %v3176_v0  ;;  %vm3199_vm15 = vmor %vm3197_vm14, %vm3198_vm12  ;;  %vm3207_vm4 = vweird.f32 %v6610_v16 }
 0x58f   : > { %v3058_v41 = vmul.f32 %v6615_v30, %v6615_v30  ;;  %v3183_v45 = vmul.f32 %v4223_v36, %v3182_v33  ;;  %v3277_v21 = vmul.f32 %v3180_v19, %v3085_v11  ;;  %vm3189_vm2 = vmor %vm3187_vm1, %vm3188_vm13  ;;  %v3088_v11 = vsub.f32 %v6425_v6, %v6586_v14 }
 0x590   : > { %v3057_v43 = vmul.f32 %v6618_v52, %v6618_v52  ;;  %v3194_v58 = vmul.f32 0.5, %v3193_v40 }
 0x591   : > { %v3074_v61 = vsub.f32 %v3042_v27, %v3058_v41  ;;  %v3184_v51 = vmul.f32 0.5, %v3183_v45  ;;  %v3297_v23 = vmul.f32 %v6523_v34, %v3277_v21 }
 0x592   : > { %v3073_v47 = vsub.f32 %v3041_v22, %v3057_v43  ;;  %v2953_v48 = vpop.xlane.xlu2 %2952  ;;  %v3195_v3 = vsub.f32 1.5, %v3194_v58  ;;  %v4225_v15 = vpop.eup %4224 }
 0x593   : > { %v6634_v8 = vadd.f32 1e-12, %v3074_v61  ;;  %v6637_v10 = vmul.f32 %v6471_v57, %v2953_v48  ;;  %v3185_v32 = vsub.f32 1.5, %v3184_v51  ;;  %v3317_v39 = vadd.f32 %v6531_v55, %v3297_v23 }
 0x594   : > { %v6641_v26 = vadd.f32 1e-12, %v3073_v47  ;;  %v3196_v59 = vmul.f32 %v4221_v18, %v3195_v3  ;;  %v3202_v1 = vmul.f32 %v4225_v15, %v6610_v16  ;;  %v2957_v42 = vpop.xlane.xlu1 %2956  ;;  %vm3208_vm3 = vweird.f32 %v4225_v15 }
 0x595   : > { %v3024_v4 = vpop.xlane.xlu0 %3023  ;;  %v3186_v17 = vmul.f32 %v4223_v36, %v3185_v32  ;;  %4226 = vrsqrt.f32 %v6634_v8  ;;  %3333 = vst [vmem:[%s6554_s4 + $0x30] sm:$0xff] %v3317_v39  ;;  %v3059_v24 = vmul.f32 %v6637_v10, %v6637_v10  ;;  %v6664_v33 = vmul.f32 %v6471_v57, %v2957_v42  ;;  %vm3209_vm5 = vmor %vm3207_vm4, %vm3208_vm3 }
 0x596   : > { %v3200_v56 = vsel %vm3199_vm15, %v4221_v18, %v3196_v59  ;;  %v3203_v29 = vmul.f32 %v4225_v15, %v3202_v1  ;;  %4228 = vrsqrt.f32 %v6641_v26  ;;  %v3043_v63 = vmul.f32 %v3024_v4, %v6471_v57 }
 0x597   : > { %v3279_v31 = vmul.f32 %v3200_v56, %v3087_v13  ;;  %v3190_v44 = vsel %vm3189_vm2, %v4223_v36, %v3186_v17  ;;  %v3061_v21 = vmul.f32 %v6664_v33, %v6664_v33  ;;  %vm3227_vm0 = vweird.f32 %v6634_v8 }
 0x598   : > { %v3278_v9 = vmul.f32 %v3190_v44, %v3086_v7  ;;  %v3204_v46 = vmul.f32 0.5, %v3203_v29  ;;  %v3075_v18 = vsub.f32 %v3043_v63, %v3059_v24  ;;  %v3090_v17 = vsub.f32 %v6437_v49, %v6615_v30 }
 0x599   : > { %v3299_v38 = vmul.f32 %v6523_v34, %v3279_v31  ;;  %vm3217_vm9 = vweird.f32 %v6641_v26  ;;  %v3089_v29 = vsub.f32 %v6428_v25, %v6618_v52 }
 0x59a   : > { %v2959_v60 = vpop.xlane.xlu2 %2958  ;;  %v3298_v62 = vmul.f32 %v6523_v34, %v3278_v9  ;;  %v3205_v5 = vsub.f32 1.5, %v3204_v46  ;;  %v6670_v27 = vadd.f32 1e-12, %v3075_v18 }
 0x59b   : > { %v4227_v12 = vpop.eup %4226  ;;  %v3319_v54 = vadd.f32 %v6531_v55, %v3299_v38  ;;  %v6681_v61 = vmul.f32 %v6471_v57, %v2959_v60 }
 0x59c   : > { %v4229_v2 = vpop.eup %4228  ;;  %v3318_v36 = vadd.f32 %v6531_v55, %v3298_v62  ;;  %v3206_v37 = vmul.f32 %v4225_v15, %v3205_v5  ;;  %v3222_v0 = vmul.f32 %v4227_v12, %v6634_v8  ;;  %4230 = vrsqrt.f32 %v6670_v27  ;;  %v3026_v22 = vpop.xlane.xlu1 %3025 }
 0x59d   : > { %v2955_v28 = vpop.xlane.xlu0 %2954  ;;  %3335 = vst [vmem:[%s6554_s4 + $0x40] sm:$0xff] %v3319_v54  ;;  %v3212_v40 = vmul.f32 %v4229_v2, %v6641_v26  ;;  %vm3228_vm6 = vweird.f32 %v4227_v12  ;;  %v3044_v48 = vmul.f32 %v3026_v22, %v6471_v57  ;;  %vm3218_vm7 = vweird.f32 %v4229_v2 }
 0x59e   : > { %3334 = vst [vmem:[%s6554_s4 + $0x38] sm:$0xff] %v3318_v36  ;;  %v3210_v16 = vsel %vm3209_vm5, %v4225_v15, %v3206_v37  ;;  %v3223_v41 = vmul.f32 %v4227_v12, %v3222_v0  ;;  %v6677_v58 = vmul.f32 %v6471_v57, %v2955_v28  ;;  %vm3229_vm8 = vmor %vm3227_vm0, %vm3228_vm6  ;;  %v3062_v8 = vmul.f32 %v6681_v61, %v6681_v61 }
 0x59f   : > { %v3280_v19 = vmul.f32 %v3210_v16, %v3088_v11  ;;  %v3213_v45 = vmul.f32 %v4229_v2, %v3212_v40  ;;  %vm3219_vm10 = vmor %vm3217_vm9, %vm3218_vm7  ;;  %vm3237_vm12 = vweird.f32 %v6670_v27  ;;  %v3091_v54 = vsub.f32 %v6445_v50, %v6637_v10 }
 0x5a0   : > { %v3224_v43 = vmul.f32 0.5, %v3223_v41  ;;  %v3060_v23 = vmul.f32 %v6677_v58, %v6677_v58 }
 0x5a1   : > { %v3300_v6 = vmul.f32 %v6523_v34, %v3280_v19  ;;  %v3214_v14 = vmul.f32 0.5, %v3213_v45 }
 0x5a2   : > { %v3028_v51 = vpop.xlane.xlu2 %3027  ;;  %v3225_v47 = vsub.f32 1.5, %v3224_v43  ;;  %v3076_v39 = vsub.f32 %v3044_v48, %v3060_v23  ;;  %v4231_v7 = vpop.eup %4230 }
 0x5a3   : > { %v3045_v3 = vmul.f32 %v3028_v51, %v6471_v57  ;;  %v3320_v15 = vadd.f32 %v6531_v55, %v3300_v6  ;;  %v3215_v13 = vsub.f32 1.5, %v3214_v14  ;;  %vm3238_vm11 = vweird.f32 %v4231_v7 }
 0x5a4   : > { %v3226_v4 = vmul.f32 %v4227_v12, %v3225_v47  ;;  %v3108_v24 = vadd.f32 1e-12, %v3076_v39  ;;  %vm3239_vm13 = vmor %vm3237_vm12, %vm3238_vm11  ;;  %v3093_v47 = vsub.f32 %v6450_v53, %v6664_v33 }
 0x5a5   : > { %v3030_v32 = vpop.xlane.xlu0 %3029  ;;  %v3077_v59 = vsub.f32 %v3045_v3, %v3061_v21  ;;  %3336 = vst [vmem:[%s6554_s4 + $0x48] sm:$0xff] %v3320_v15  ;;  %v3216_v42 = vmul.f32 %v4229_v2, %v3215_v13  ;;  %v3092_v21 = vsub.f32 %v6458_v20, %v6677_v58  ;;  %v3094_v20 = vsub.f32 %v6461_v35, %v6681_v61 }
 0x5a6   : > { %v3046_v1 = vmul.f32 %v3030_v32, %v6471_v57  ;;  %v3230_v56 = vsel %vm3229_vm8, %v4227_v12, %v3226_v4  ;;  %v3232_v57 = vmul.f32 %v4231_v7, %v6670_v27  ;;  %4232 = vrsqrt.f32 %v3108_v24 }
 0x5a7   : > { %v3282_v31 = vmul.f32 %v3230_v56, %v3090_v17  ;;  %v3220_v44 = vsel %vm3219_vm10, %v4229_v2, %v3216_v42  ;;  %v3109_v49 = vadd.f32 1e-12, %v3077_v59  ;;  %vm3247_vm1 = vweird.f32 %v3108_v24 }
 0x5a8   : > { %v3078_v30 = vsub.f32 %v3046_v1, %v3062_v8  ;;  %v3281_v9 = vmul.f32 %v3220_v44, %v3089_v29  ;;  %v3233_v26 = vmul.f32 %v4231_v7, %v3232_v57 }
 0x5a9   : > { %v3302_v46 = vmul.f32 %v6523_v34, %v3282_v31  ;;  %4234 = vrsqrt.f32 %v3109_v49  ;;  %vm3257_vm3 = vweird.f32 %v3109_v49 }
 0x5aa   : > { %v3110_v63 = vadd.f32 1e-12, %v3078_v30  ;;  %v3301_v25 = vmul.f32 %v6523_v34, %v3281_v9  ;;  %v3234_v52 = vmul.f32 0.5, %v3233_v26 }
 0x5ab   : > { %v3322_v38 = vadd.f32 %v6531_v55, %v3302_v46 }
 0x5ac   : > { %4236 = vrsqrt.f32 %v3110_v63  ;;  %v3321_v60 = vadd.f32 %v6531_v55, %v3301_v25  ;;  %v3235_v62 = vsub.f32 1.5, %v3234_v52  ;;  %v4233_v5 = vpop.eup %4232  ;;  %vm3267_vm6 = vweird.f32 %v3110_v63 }
 0x5ad   : > { %3338 = vst [vmem:[%s6554_s4 + $0x58] sm:$0xff] %v3322_v38  ;;  %v3242_v28 = vmul.f32 %v4233_v5, %v3108_v24  ;;  %vm3248_vm14 = vweird.f32 %v4233_v5 }
 0x5ae   : > { %3337 = vst [vmem:[%s6554_s4 + $0x50] sm:$0xff] %v3321_v60  ;;  %v3236_v18 = vmul.f32 %v4231_v7, %v3235_v62  ;;  %vm3249_vm2 = vmor %vm3247_vm1, %vm3248_vm14 }
 0x5af   : > { %v4235_v12 = vpop.eup %4234  ;;  %v3243_v11 = vmul.f32 %v4233_v5, %v3242_v28 }
 0x5b0   : > { %v3240_v2 = vsel %vm3239_vm13, %v4231_v7, %v3236_v18  ;;  %v3252_v36 = vmul.f32 %v4235_v12, %v3109_v49  ;;  %vm3258_vm15 = vweird.f32 %v4235_v12 }
 0x5b1   : > { %v3283_v0 = vmul.f32 %v3240_v2, %v3091_v54  ;;  %v3244_v19 = vmul.f32 0.5, %v3243_v11  ;;  %vm3259_vm5 = vmor %vm3257_vm3, %vm3258_vm15 }
 0x5b2   : > { %v4237_v37 = vpop.eup %4236  ;;  %v3253_v40 = vmul.f32 %v4235_v12, %v3252_v36 }
 0x5b3   : > { %v3262_v16 = vmul.f32 %v4237_v37, %v3110_v63  ;;  %v3303_v41 = vmul.f32 %v6523_v34, %v3283_v0  ;;  %v3245_v43 = vsub.f32 1.5, %v3244_v19  ;;  %vm3268_vm4 = vweird.f32 %v4237_v37 }
 0x5b4   : > { %v3254_v45 = vmul.f32 0.5, %v3253_v40  ;;  %vm3269_vm0 = vmor %vm3267_vm6, %vm3268_vm4 }
 0x5b5   : > { %v3263_v27 = vmul.f32 %v4237_v37, %v3262_v16  ;;  %v3323_v22 = vadd.f32 %v6531_v55, %v3303_v41  ;;  %v3246_v6 = vmul.f32 %v4233_v5, %v3245_v43 }
 0x5b6   : > { %v3255_v50 = vsub.f32 1.5, %v3254_v45 }
 0x5b7   : > { %v3264_v10 = vmul.f32 0.5, %v3263_v27  ;;  %3339 = vst [vmem:[%s6554_s4 + $0x60] sm:$0xff] %v3323_v22  ;;  %v3250_v48 = vsel %vm3249_vm2, %v4233_v5, %v3246_v6 }
 0x5b8   : > { %v3256_v14 = vmul.f32 %v4235_v12, %v3255_v50  ;;  %v3284_v23 = vmul.f32 %v3250_v48, %v3092_v21 }
 0x5b9   : > { %v3265_v51 = vsub.f32 1.5, %v3264_v10 }
 0x5ba   : > { %v3260_v3 = vsel %vm3259_vm5, %v4235_v12, %v3256_v14  ;;  %v3304_v53 = vmul.f32 %v6523_v34, %v3284_v23 }
 0x5bb   : > { %v3266_v15 = vmul.f32 %v4237_v37, %v3265_v51  ;;  %v3285_v58 = vmul.f32 %v3260_v3, %v3093_v47 }
 0x5bc   : > { %v3324_v4 = vadd.f32 %v6531_v55, %v3304_v53 }
 0x5bd   : > { %v3270_v33 = vsel %vm3269_vm0, %v4237_v37, %v3266_v15  ;;  %v3305_v13 = vmul.f32 %v6523_v34, %v3285_v58 }
 0x5be   : > { %v3286_v32 = vmul.f32 %v3270_v33, %v3094_v20  ;;  %3340 = vst [vmem:[%s6554_s4 + $0x68] sm:$0xff] %v3324_v4 }
 0x5bf   : > { %v3325_v39 = vadd.f32 %v6531_v55, %v3305_v13 }
 0x5c0   : > { %v3306_v59 = vmul.f32 %v6523_v34, %v3286_v32 }
 0x5c1   : > { %3341 = vst [vmem:[%s6554_s4 + $0x70] sm:$0xff] %v3325_v39 }
 0x5c2   : > { %v3326_v35 = vadd.f32 %v6531_v55, %v3306_v59 }
 0x5c4   : > { %3342 = vst [vmem:[%s6554_s4 + $0x78] sm:$0xff] %v3326_v35 }
 0x5c5   : > { %4466 = shalt.err (!%p4463_p11)
}
 0x5c6   : > { %s4533_s26 = smov 128   ;;  %s4534_s15 = smov 8  }
 0x5c7   : > { %3718 = dma.vmem_to_hbm [thread:$0]  (%p4696_p3), %s3357_s27, 2048, %s3359_s8, %s3344_s17, %s4533_s26, %s4533_s26, %s4534_s15  }
 0x5c8 PF: > { %s6827_s23 = sld [smem:[#allocation20_spill]]  ;;  %p6829_p12 = scmp.ge.s32.totalorder %s4521_s24, 2 }
 0x5ca   : > { %p3741_p13 = pnand %p6829_p12, %p4635_p6 }
 0x5cc   : > { %p3742_p0 = pneg %p3741_p13 }
 0x5ce   : > { %s3373_s21 = sand.u32 1, %s6827_s23  }
 0x5cf   : > { %s3374_s4 = scalar_lea.sflag [#allocation4], %s3373_s21 }
 0x5d0   : > { %4504 = dma.done.wait (%p3742_p0), %s3374_s4, 2048  }
 0x5d1   : > { %4506 = vsyncadd (%p3742_p0), %s3374_s4, 4294965248  ;;  %s6830_s24 = sld [smem:[#allocation23_spill]]  ;;  %s6833_s21 = smov %s4513_s22 }
 0x5d2   : > { %s6831_s29 = sld [smem:[#allocation21_spill]] }
 0x5d3   : > { %s6832_s23 = sld [smem:[#allocation25_spill]] }
 0x5d7   : > { %p30_p5 = scmp.ge.s32.totalorder %s6830_s24, 4  }
 0x5d8   : > { %s6834_s22 = smov %s6831_s29 }
 0x5d9   :  { %32 = sbr.rel (!%p30_p5) target bundleno = 15 (0xf), region = 142 }
 0x5de   :  { %3380 = vsyncpa [#allocation3], 1 }
 0x5df   :  { %3382 = vsyncpa [#allocation3 + $0x1], 1 }
 0x5e0   :  { %3383 = vsyncpa [#allocation6], 1 }
 0x5e1   :  { %3385 = vsyncpa [#allocation6 + $0x1], 1 }
 0x5e2   :  { %3386 = vsyncpa [#allocation9], 1 }
 0x5e3   :  { %3387 = vsyncpa [#allocation12], 1 }
 0x5e4   :  { %3388 = vsyncpa [#allocation4], 1 }
 0x5e5   :  { %3390 = vsyncpa [#allocation4 + $0x1], 1 }

</bundles_post_ra>
